<compile_context>
chip_gen: v5e
topology: v5e:2x2
jax: 0.10.0
libtpu: 0.0.40
codegen_flags: <defaults>
</compile_context>

<pallas_src>
import functools

import jax
import jax.numpy as jnp
from jax.experimental import pallas as pl
from jax.experimental.pallas import tpu as pltpu

_BN_EPS = 1e-5
_VOCAB = 256


# ---------------------------------------------------------------------------
# In-kernel helpers (pure value functions, all shapes static at trace time).
# Activations are flat POSITION-MAJOR: row index = pos * n + batch, shape
# (length * n, channels). This lets padding / windowing / striding act on the
# whole batch with single slices — no per-sample loops.
# ---------------------------------------------------------------------------
def _pad_rows(x, n, pad_front, pad_back, pad_value):
    c = x.shape[1]
    pieces = []
    if pad_front > 0:
        pieces.append(jnp.full((pad_front * n, c), pad_value, jnp.float32))
    pieces.append(x)
    if pad_back > 0:
        pieces.append(jnp.full((pad_back * n, c), pad_value, jnp.float32))
    return jnp.concatenate(pieces, axis=0) if len(pieces) > 1 else x


def _window_taps(x, n, length, k, stride, pad, pad_value):
    """Sliding-window taps over the whole batch: ([k x (l_out*n, c)], l_out)."""
    c = x.shape[1]
    l_pad = length + 2 * pad
    l_full = l_pad - k + 1
    l_out = (l_full - 1) // stride + 1
    need = (k - 1) + l_out * stride           # positions the widest tap spans
    extra = max(0, need - l_pad)              # trailing pad keeps slices in range
    xp = _pad_rows(x, n, pad, pad + extra, pad_value)
    taps = []
    for kk in range(k):
        sl = xp[kk * n:(kk + l_out * stride) * n, :]
        if stride > 1:
            # strided position select (positions kk, kk+s, ...) — reshape trick
            sl = sl.reshape(l_out, stride * n, c)[:, 0:n, :].reshape(l_out * n, c)
        taps.append(sl)
    return taps, l_out


def _conv_bn(x, n, length, p, *, k, stride, pad, relu, eps, residual=None):
    """Conv1d(+bias) -> BatchNorm1d (batch stats) -> [+residual] -> [ReLU]."""
    w2d, bias, gamma, beta = p                 # w2d: (k*cin, cout)
    taps, l_out = _window_taps(x, n, length, k, stride, pad, 0.0)
    xi = taps[0] if k == 1 else jnp.concatenate(taps, axis=1)   # (l_out*n, k*cin)
    y = jnp.dot(xi, w2d, preferred_element_type=jnp.float32) + bias
    # one-pass batch statistics over (batch, length)
    inv_cnt = 1.0 / float(n * l_out)
    mean = jnp.sum(y, axis=0, keepdims=True) * inv_cnt
    var = jnp.sum(y * y, axis=0, keepdims=True) * inv_cnt - mean * mean
    scale = gamma * jax.lax.rsqrt(var + eps)
    shift = beta - mean * scale
    y = y * scale + shift
    if residual is not None:
        y = y + residual
    if relu:
        y = jnp.maximum(y, 0.0)
    return y, l_out


def _maxpool(x, n, length, *, k, stride, pad):
    taps, l_out = _window_taps(x, n, length, k, stride, pad, -jnp.inf)
    m = taps[0]
    for t in taps[1:]:
        m = jnp.maximum(m, t)
    return m, l_out


def _avg_pool(x, n, length):
    c = x.shape[1]
    inv = 1.0 / float(length)
    return jnp.sum(x.reshape(length, n, c), axis=0) * inv       # (n, c)


# ---------------------------------------------------------------------------
# The single fused kernel: whole network in one body.
# ---------------------------------------------------------------------------
def _fused_kernel(*refs, n, l0, ksize, blocks, eps):
    out_inc_ref, out_logits_ref, out_emb_ref = refs[-3:]
    it = iter(refs[:-3])

    tok = next(it)[...]                         # (l0*n, 1) int32, position-major
    emb_tbl = next(it)[...]                     # (vocab, d)

    def read_conv():
        return (next(it)[...], next(it)[...], next(it)[...], next(it)[...])

    stem_p = read_conv()
    blk_ps = []
    for (_, has_down) in blocks:
        c1 = read_conv()
        c2 = read_conv()
        dn = read_conv() if has_down else None
        blk_ps.append((c1, c2, dn))
    fc_w = next(it)[...]
    fc_b = next(it)[...]
    inc_w = next(it)[...]
    inc_b = next(it)[...]

    # --- nn.Embedding lookup as an exact one-hot matmul ----------------------
    vocab = emb_tbl.shape[0]
    onehot = (jax.lax.broadcasted_iota(jnp.int32, (l0 * n, vocab), 1)
              == tok).astype(jnp.float32)
    x = jnp.dot(onehot, emb_tbl, preferred_element_type=jnp.float32)  # (l0*n, d)
    length = l0
    cpad = (ksize - 1) // 2

    # --- stem: conv -> bn -> relu -> maxpool(3, 2, 1) -------------------------
    x, length = _conv_bn(x, n, length, stem_p, k=ksize, stride=1, pad=cpad,
                         relu=True, eps=eps)
    x, length = _maxpool(x, n, length, k=3, stride=2, pad=1)

    # --- residual layers -------------------------------------------------------
    for (stride, _), (c1, c2, dn) in zip(blocks, blk_ps):
        if dn is not None:
            res, _ = _conv_bn(x, n, length, dn, k=1, stride=stride, pad=0,
                              relu=False, eps=eps)
        else:
            res = x
        h, hl = _conv_bn(x, n, length, c1, k=ksize, stride=stride, pad=cpad,
                         relu=True, eps=eps)
        h, hl = _conv_bn(h, n, hl, c2, k=ksize, stride=1, pad=cpad,
                         relu=False, eps=eps)
        x = jnp.maximum(h + res, 0.0)
        length = hl

    # --- avg-pool + both FC heads ----------------------------------------------
    pooled = _avg_pool(x, n, length)                                  # (n, c)
    out_emb_ref[...] = pooled.astype(out_emb_ref.dtype)
    out_logits_ref[...] = (jnp.dot(pooled, fc_w,
                                   preferred_element_type=jnp.float32)
                           + fc_b).astype(out_logits_ref.dtype)
    out_inc_ref[...] = (jnp.dot(pooled, inc_w,
                                preferred_element_type=jnp.float32)
                        + inc_b).astype(out_inc_ref.dtype)


# ---------------------------------------------------------------------------
# Wrapper: flatten params, build the single pallas_call.
# ---------------------------------------------------------------------------
def incremental_embedding_resnet1d(params, tokens):
    """tokens: (N, L) int32 in [0, 256).
    Returns (incremental_logits, resnet_logits, pooled_embedding)."""
    n, l0 = tokens.shape
    # position-major layout: row index = pos * n + batch
    tok_col = tokens.T.reshape(l0 * n, 1).astype(jnp.int32)

    flat = [tok_col, params["emb"]]

    def add_conv(p):
        flat.extend([p["w2d"], p["b"], p["gamma"], p["beta"]])

    add_conv(params["stem"])
    blocks_cfg = []
    for blocks in params["layers"]:
        for blk in blocks:
            add_conv(blk["conv1"])
            add_conv(blk["conv2"])
            has_down = "down" in blk
            if has_down:
                add_conv(blk["down"])
            blocks_cfg.append((blk["stride"], has_down))
    flat.extend([params["fc_w"], params["fc_b"], params["inc_w"], params["inc_b"]])

    c_last = params["fc_w"].shape[0]
    classes = params["fc_w"].shape[1]
    inc_classes = params["inc_w"].shape[1]

    kern = functools.partial(_fused_kernel, n=n, l0=l0, ksize=params["ksize"],
                             blocks=tuple(blocks_cfg), eps=_BN_EPS)
    vmem = lambda: pl.BlockSpec(memory_space=pltpu.MemorySpace.VMEM)
    out_shapes = (
        jax.ShapeDtypeStruct((n, inc_classes), jnp.float32),   # incremental fc
        jax.ShapeDtypeStruct((n, classes), jnp.float32),       # resnet's own fc
        jax.ShapeDtypeStruct((n, c_last), jnp.float32),        # pooled embedding
    )
    return pl.pallas_call(
        kern,
        out_shape=out_shapes,
        in_specs=[vmem() for _ in flat],
        out_specs=tuple(vmem() for _ in out_shapes),
        compiler_params=pltpu.CompilerParams(
            vmem_limit_bytes=32 * 1024 * 1024),
    )(*flat)


# ---------------------------------------------------------------------------
# Deterministic parameter init (plain JAX glue).
# Conv weights are stored directly in im2col layout (k*cin, cout).
# ---------------------------------------------------------------------------
def _init_conv_bn(key, cin, cout, k):
    kw, kb, kg, kbt = jax.random.split(key, 4)
    fan = float(cin * k)
    return dict(
        w2d=jax.random.normal(kw, (k * cin, cout), jnp.float32) / jnp.sqrt(fan),
        b=0.1 * jax.random.normal(kb, (1, cout), jnp.float32),
        gamma=1.0 + 0.1 * jax.random.normal(kg, (1, cout), jnp.float32),
        beta=0.1 * jax.random.normal(kbt, (1, cout), jnp.float32),
    )


def init_model(key, classes, initial_classes, channel_dims, depths,
               embedding_dim, kernel_size=3):
    key, ke, ks = jax.random.split(key, 3)
    params = {
        "ksize": kernel_size,
        "emb": jax.random.normal(ke, (_VOCAB, embedding_dim), jnp.float32),
        "stem": _init_conv_bn(ks, embedding_dim, channel_dims[0], kernel_size),
    }
    layers = []
    cin = channel_dims[0]
    for li, (cout, depth) in enumerate(zip(channel_dims, depths)):
        layer_stride = 1 if li == 0 else 2
        blocks = []
        for d in range(depth):
            key, k1, k2, k3 = jax.random.split(key, 4)
            bcin = cin if d == 0 else cout
            bstride = layer_stride if d == 0 else 1
            blk = {"stride": bstride,
                   "conv1": _init_conv_bn(k1, bcin, cout, kernel_size),
                   "conv2": _init_conv_bn(k2, cout, cout, kernel_size)}
            if bstride != 1 or bcin != cout:
                blk["down"] = _init_conv_bn(k3, bcin, cout, 1)
            blocks.append(blk)
        layers.append(blocks)
        cin = cout
    params["layers"] = layers
    c_last = channel_dims[-1]
    key, kfw, kfb, kiw, kib = jax.random.split(key, 5)
    params["fc_w"] = (jax.random.normal(kfw, (c_last, classes), jnp.float32)
                      / jnp.sqrt(float(c_last)))
    params["fc_b"] = 0.1 * jax.random.normal(kfb, (1, classes), jnp.float32)
    params["inc_w"] = (jax.random.normal(kiw, (c_last, initial_classes),
                                         jnp.float32) / jnp.sqrt(float(c_last)))
    params["inc_b"] = 0.1 * jax.random.normal(kib, (1, initial_classes),
                                              jnp.float32)
    return params


if __name__ == "__main__":
    classes = 10            # resnet's internal head
    initial_classes = 7     # incremental head
    channel_dims = [8, 16, 32, 64]
    depths = [1, 1, 1, 1]
    embedding_dim = 4
    N, L = 2, 16

    root = jax.random.PRNGKey(0)
    ktok, kp = jax.random.split(root)
    tokens = jax.random.randint(ktok, (N, L), 0, _VOCAB, dtype=jnp.int32)
    params = init_model(kp, classes, initial_classes, channel_dims, depths,
                        embedding_dim, kernel_size=3)

    inc_logits, resnet_logits, embedding = incremental_embedding_resnet1d(
        params, tokens)
    inc_logits = jax.block_until_ready(inc_logits)
    resnet_logits = jax.block_until_ready(resnet_logits)
    embedding = jax.block_until_ready(embedding)

    assert inc_logits.shape == (N, initial_classes)
    assert resnet_logits.shape == (N, classes)
    assert embedding.shape == (N, channel_dims[-1])   # L: 16 -> 8 -> 8 -> 4 -> 2 -> 1
    assert bool(jnp.all(jnp.isfinite(inc_logits)))
    assert bool(jnp.all(jnp.isfinite(resnet_logits)))
    assert bool(jnp.all(jnp.isfinite(embedding)))
    print("KERNEL_OK")
</pallas_src>

<mosaic_0001>
module attributes {stable_mosaic.version = 11 : i64} {
  func.func @_fused_kernel(%arg0: memref<32x1xi32, #tpu.memory_space<vmem>>, %arg1: memref<256x4xf32, #tpu.memory_space<vmem>>, %arg2: memref<12x8xf32, #tpu.memory_space<vmem>>, %arg3: memref<1x8xf32, #tpu.memory_space<vmem>>, %arg4: memref<1x8xf32, #tpu.memory_space<vmem>>, %arg5: memref<1x8xf32, #tpu.memory_space<vmem>>, %arg6: memref<24x8xf32, #tpu.memory_space<vmem>>, %arg7: memref<1x8xf32, #tpu.memory_space<vmem>>, %arg8: memref<1x8xf32, #tpu.memory_space<vmem>>, %arg9: memref<1x8xf32, #tpu.memory_space<vmem>>, %arg10: memref<24x8xf32, #tpu.memory_space<vmem>>, %arg11: memref<1x8xf32, #tpu.memory_space<vmem>>, %arg12: memref<1x8xf32, #tpu.memory_space<vmem>>, %arg13: memref<1x8xf32, #tpu.memory_space<vmem>>, %arg14: memref<24x16xf32, #tpu.memory_space<vmem>>, %arg15: memref<1x16xf32, #tpu.memory_space<vmem>>, %arg16: memref<1x16xf32, #tpu.memory_space<vmem>>, %arg17: memref<1x16xf32, #tpu.memory_space<vmem>>, %arg18: memref<48x16xf32, #tpu.memory_space<vmem>>, %arg19: memref<1x16xf32, #tpu.memory_space<vmem>>, %arg20: memref<1x16xf32, #tpu.memory_space<vmem>>, %arg21: memref<1x16xf32, #tpu.memory_space<vmem>>, %arg22: memref<8x16xf32, #tpu.memory_space<vmem>>, %arg23: memref<1x16xf32, #tpu.memory_space<vmem>>, %arg24: memref<1x16xf32, #tpu.memory_space<vmem>>, %arg25: memref<1x16xf32, #tpu.memory_space<vmem>>, %arg26: memref<48x32xf32, #tpu.memory_space<vmem>>, %arg27: memref<1x32xf32, #tpu.memory_space<vmem>>, %arg28: memref<1x32xf32, #tpu.memory_space<vmem>>, %arg29: memref<1x32xf32, #tpu.memory_space<vmem>>, %arg30: memref<96x32xf32, #tpu.memory_space<vmem>>, %arg31: memref<1x32xf32, #tpu.memory_space<vmem>>, %arg32: memref<1x32xf32, #tpu.memory_space<vmem>>, %arg33: memref<1x32xf32, #tpu.memory_space<vmem>>, %arg34: memref<16x32xf32, #tpu.memory_space<vmem>>, %arg35: memref<1x32xf32, #tpu.memory_space<vmem>>, %arg36: memref<1x32xf32, #tpu.memory_space<vmem>>, %arg37: memref<1x32xf32, #tpu.memory_space<vmem>>, %arg38: memref<96x64xf32, #tpu.memory_space<vmem>>, %arg39: memref<1x64xf32, #tpu.memory_space<vmem>>, %arg40: memref<1x64xf32, #tpu.memory_space<vmem>>, %arg41: memref<1x64xf32, #tpu.memory_space<vmem>>, %arg42: memref<192x64xf32, #tpu.memory_space<vmem>>, %arg43: memref<1x64xf32, #tpu.memory_space<vmem>>, %arg44: memref<1x64xf32, #tpu.memory_space<vmem>>, %arg45: memref<1x64xf32, #tpu.memory_space<vmem>>, %arg46: memref<32x64xf32, #tpu.memory_space<vmem>>, %arg47: memref<1x64xf32, #tpu.memory_space<vmem>>, %arg48: memref<1x64xf32, #tpu.memory_space<vmem>>, %arg49: memref<1x64xf32, #tpu.memory_space<vmem>>, %arg50: memref<64x10xf32, #tpu.memory_space<vmem>>, %arg51: memref<1x10xf32, #tpu.memory_space<vmem>>, %arg52: memref<64x7xf32, #tpu.memory_space<vmem>>, %arg53: memref<1x7xf32, #tpu.memory_space<vmem>>, %arg54: memref<2x7xf32, #tpu.memory_space<vmem>>, %arg55: memref<2x10xf32, #tpu.memory_space<vmem>>, %arg56: memref<2x64xf32, #tpu.memory_space<vmem>>) attributes {dimension_semantics = [], scalar_prefetch = 0 : i64, scratch_operands = 0 : i64, tpu.core_type = #tpu.core_type<tc>} {
    %c0 = arith.constant 0 : index
    %c0_0 = arith.constant 0 : index
    %0 = vector.load %arg0[%c0, %c0_0] : memref<32x1xi32, #tpu.memory_space<vmem>>, vector<32x1xi32>
    %c0_1 = arith.constant 0 : index
    %c0_2 = arith.constant 0 : index
    %1 = vector.load %arg1[%c0_1, %c0_2] : memref<256x4xf32, #tpu.memory_space<vmem>>, vector<256x4xf32>
    %c0_3 = arith.constant 0 : index
    %c0_4 = arith.constant 0 : index
    %2 = vector.load %arg2[%c0_3, %c0_4] : memref<12x8xf32, #tpu.memory_space<vmem>>, vector<12x8xf32>
    %c0_5 = arith.constant 0 : index
    %c0_6 = arith.constant 0 : index
    %3 = vector.load %arg3[%c0_5, %c0_6] : memref<1x8xf32, #tpu.memory_space<vmem>>, vector<1x8xf32>
    %c0_7 = arith.constant 0 : index
    %c0_8 = arith.constant 0 : index
    %4 = vector.load %arg4[%c0_7, %c0_8] : memref<1x8xf32, #tpu.memory_space<vmem>>, vector<1x8xf32>
    %c0_9 = arith.constant 0 : index
    %c0_10 = arith.constant 0 : index
    %5 = vector.load %arg5[%c0_9, %c0_10] : memref<1x8xf32, #tpu.memory_space<vmem>>, vector<1x8xf32>
    %c0_11 = arith.constant 0 : index
    %c0_12 = arith.constant 0 : index
    %6 = vector.load %arg6[%c0_11, %c0_12] : memref<24x8xf32, #tpu.memory_space<vmem>>, vector<24x8xf32>
    %c0_13 = arith.constant 0 : index
    %c0_14 = arith.constant 0 : index
    %7 = vector.load %arg7[%c0_13, %c0_14] : memref<1x8xf32, #tpu.memory_space<vmem>>, vector<1x8xf32>
    %c0_15 = arith.constant 0 : index
    %c0_16 = arith.constant 0 : index
    %8 = vector.load %arg8[%c0_15, %c0_16] : memref<1x8xf32, #tpu.memory_space<vmem>>, vector<1x8xf32>
    %c0_17 = arith.constant 0 : index
    %c0_18 = arith.constant 0 : index
    %9 = vector.load %arg9[%c0_17, %c0_18] : memref<1x8xf32, #tpu.memory_space<vmem>>, vector<1x8xf32>
    %c0_19 = arith.constant 0 : index
    %c0_20 = arith.constant 0 : index
    %10 = vector.load %arg10[%c0_19, %c0_20] : memref<24x8xf32, #tpu.memory_space<vmem>>, vector<24x8xf32>
    %c0_21 = arith.constant 0 : index
    %c0_22 = arith.constant 0 : index
    %11 = vector.load %arg11[%c0_21, %c0_22] : memref<1x8xf32, #tpu.memory_space<vmem>>, vector<1x8xf32>
    %c0_23 = arith.constant 0 : index
    %c0_24 = arith.constant 0 : index
    %12 = vector.load %arg12[%c0_23, %c0_24] : memref<1x8xf32, #tpu.memory_space<vmem>>, vector<1x8xf32>
    %c0_25 = arith.constant 0 : index
    %c0_26 = arith.constant 0 : index
    %13 = vector.load %arg13[%c0_25, %c0_26] : memref<1x8xf32, #tpu.memory_space<vmem>>, vector<1x8xf32>
    %c0_27 = arith.constant 0 : index
    %c0_28 = arith.constant 0 : index
    %14 = vector.load %arg14[%c0_27, %c0_28] : memref<24x16xf32, #tpu.memory_space<vmem>>, vector<24x16xf32>
    %c0_29 = arith.constant 0 : index
    %c0_30 = arith.constant 0 : index
    %15 = vector.load %arg15[%c0_29, %c0_30] : memref<1x16xf32, #tpu.memory_space<vmem>>, vector<1x16xf32>
    %c0_31 = arith.constant 0 : index
    %c0_32 = arith.constant 0 : index
    %16 = vector.load %arg16[%c0_31, %c0_32] : memref<1x16xf32, #tpu.memory_space<vmem>>, vector<1x16xf32>
    %c0_33 = arith.constant 0 : index
    %c0_34 = arith.constant 0 : index
    %17 = vector.load %arg17[%c0_33, %c0_34] : memref<1x16xf32, #tpu.memory_space<vmem>>, vector<1x16xf32>
    %c0_35 = arith.constant 0 : index
    %c0_36 = arith.constant 0 : index
    %18 = vector.load %arg18[%c0_35, %c0_36] : memref<48x16xf32, #tpu.memory_space<vmem>>, vector<48x16xf32>
    %c0_37 = arith.constant 0 : index
    %c0_38 = arith.constant 0 : index
    %19 = vector.load %arg19[%c0_37, %c0_38] : memref<1x16xf32, #tpu.memory_space<vmem>>, vector<1x16xf32>
    %c0_39 = arith.constant 0 : index
    %c0_40 = arith.constant 0 : index
    %20 = vector.load %arg20[%c0_39, %c0_40] : memref<1x16xf32, #tpu.memory_space<vmem>>, vector<1x16xf32>
    %c0_41 = arith.constant 0 : index
    %c0_42 = arith.constant 0 : index
    %21 = vector.load %arg21[%c0_41, %c0_42] : memref<1x16xf32, #tpu.memory_space<vmem>>, vector<1x16xf32>
    %c0_43 = arith.constant 0 : index
    %c0_44 = arith.constant 0 : index
    %22 = vector.load %arg22[%c0_43, %c0_44] : memref<8x16xf32, #tpu.memory_space<vmem>>, vector<8x16xf32>
    %c0_45 = arith.constant 0 : index
    %c0_46 = arith.constant 0 : index
    %23 = vector.load %arg23[%c0_45, %c0_46] : memref<1x16xf32, #tpu.memory_space<vmem>>, vector<1x16xf32>
    %c0_47 = arith.constant 0 : index
    %c0_48 = arith.constant 0 : index
    %24 = vector.load %arg24[%c0_47, %c0_48] : memref<1x16xf32, #tpu.memory_space<vmem>>, vector<1x16xf32>
    %c0_49 = arith.constant 0 : index
    %c0_50 = arith.constant 0 : index
    %25 = vector.load %arg25[%c0_49, %c0_50] : memref<1x16xf32, #tpu.memory_space<vmem>>, vector<1x16xf32>
    %c0_51 = arith.constant 0 : index
    %c0_52 = arith.constant 0 : index
    %26 = vector.load %arg26[%c0_51, %c0_52] : memref<48x32xf32, #tpu.memory_space<vmem>>, vector<48x32xf32>
    %c0_53 = arith.constant 0 : index
    %c0_54 = arith.constant 0 : index
    %27 = vector.load %arg27[%c0_53, %c0_54] : memref<1x32xf32, #tpu.memory_space<vmem>>, vector<1x32xf32>
    %c0_55 = arith.constant 0 : index
    %c0_56 = arith.constant 0 : index
    %28 = vector.load %arg28[%c0_55, %c0_56] : memref<1x32xf32, #tpu.memory_space<vmem>>, vector<1x32xf32>
    %c0_57 = arith.constant 0 : index
    %c0_58 = arith.constant 0 : index
    %29 = vector.load %arg29[%c0_57, %c0_58] : memref<1x32xf32, #tpu.memory_space<vmem>>, vector<1x32xf32>
    %c0_59 = arith.constant 0 : index
    %c0_60 = arith.constant 0 : index
    %30 = vector.load %arg30[%c0_59, %c0_60] : memref<96x32xf32, #tpu.memory_space<vmem>>, vector<96x32xf32>
    %c0_61 = arith.constant 0 : index
    %c0_62 = arith.constant 0 : index
    %31 = vector.load %arg31[%c0_61, %c0_62] : memref<1x32xf32, #tpu.memory_space<vmem>>, vector<1x32xf32>
    %c0_63 = arith.constant 0 : index
    %c0_64 = arith.constant 0 : index
    %32 = vector.load %arg32[%c0_63, %c0_64] : memref<1x32xf32, #tpu.memory_space<vmem>>, vector<1x32xf32>
    %c0_65 = arith.constant 0 : index
    %c0_66 = arith.constant 0 : index
    %33 = vector.load %arg33[%c0_65, %c0_66] : memref<1x32xf32, #tpu.memory_space<vmem>>, vector<1x32xf32>
    %c0_67 = arith.constant 0 : index
    %c0_68 = arith.constant 0 : index
    %34 = vector.load %arg34[%c0_67, %c0_68] : memref<16x32xf32, #tpu.memory_space<vmem>>, vector<16x32xf32>
    %c0_69 = arith.constant 0 : index
    %c0_70 = arith.constant 0 : index
    %35 = vector.load %arg35[%c0_69, %c0_70] : memref<1x32xf32, #tpu.memory_space<vmem>>, vector<1x32xf32>
    %c0_71 = arith.constant 0 : index
    %c0_72 = arith.constant 0 : index
    %36 = vector.load %arg36[%c0_71, %c0_72] : memref<1x32xf32, #tpu.memory_space<vmem>>, vector<1x32xf32>
    %c0_73 = arith.constant 0 : index
    %c0_74 = arith.constant 0 : index
    %37 = vector.load %arg37[%c0_73, %c0_74] : memref<1x32xf32, #tpu.memory_space<vmem>>, vector<1x32xf32>
    %c0_75 = arith.constant 0 : index
    %c0_76 = arith.constant 0 : index
    %38 = vector.load %arg38[%c0_75, %c0_76] : memref<96x64xf32, #tpu.memory_space<vmem>>, vector<96x64xf32>
    %c0_77 = arith.constant 0 : index
    %c0_78 = arith.constant 0 : index
    %39 = vector.load %arg39[%c0_77, %c0_78] : memref<1x64xf32, #tpu.memory_space<vmem>>, vector<1x64xf32>
    %c0_79 = arith.constant 0 : index
    %c0_80 = arith.constant 0 : index
    %40 = vector.load %arg40[%c0_79, %c0_80] : memref<1x64xf32, #tpu.memory_space<vmem>>, vector<1x64xf32>
    %c0_81 = arith.constant 0 : index
    %c0_82 = arith.constant 0 : index
    %41 = vector.load %arg41[%c0_81, %c0_82] : memref<1x64xf32, #tpu.memory_space<vmem>>, vector<1x64xf32>
    %c0_83 = arith.constant 0 : index
    %c0_84 = arith.constant 0 : index
    %42 = vector.load %arg42[%c0_83, %c0_84] : memref<192x64xf32, #tpu.memory_space<vmem>>, vector<192x64xf32>
    %c0_85 = arith.constant 0 : index
    %c0_86 = arith.constant 0 : index
    %43 = vector.load %arg43[%c0_85, %c0_86] : memref<1x64xf32, #tpu.memory_space<vmem>>, vector<1x64xf32>
    %c0_87 = arith.constant 0 : index
    %c0_88 = arith.constant 0 : index
    %44 = vector.load %arg44[%c0_87, %c0_88] : memref<1x64xf32, #tpu.memory_space<vmem>>, vector<1x64xf32>
    %c0_89 = arith.constant 0 : index
    %c0_90 = arith.constant 0 : index
    %45 = vector.load %arg45[%c0_89, %c0_90] : memref<1x64xf32, #tpu.memory_space<vmem>>, vector<1x64xf32>
    %c0_91 = arith.constant 0 : index
    %c0_92 = arith.constant 0 : index
    %46 = vector.load %arg46[%c0_91, %c0_92] : memref<32x64xf32, #tpu.memory_space<vmem>>, vector<32x64xf32>
    %c0_93 = arith.constant 0 : index
    %c0_94 = arith.constant 0 : index
    %47 = vector.load %arg47[%c0_93, %c0_94] : memref<1x64xf32, #tpu.memory_space<vmem>>, vector<1x64xf32>
    %c0_95 = arith.constant 0 : index
    %c0_96 = arith.constant 0 : index
    %48 = vector.load %arg48[%c0_95, %c0_96] : memref<1x64xf32, #tpu.memory_space<vmem>>, vector<1x64xf32>
    %c0_97 = arith.constant 0 : index
    %c0_98 = arith.constant 0 : index
    %49 = vector.load %arg49[%c0_97, %c0_98] : memref<1x64xf32, #tpu.memory_space<vmem>>, vector<1x64xf32>
    %c0_99 = arith.constant 0 : index
    %c0_100 = arith.constant 0 : index
    %50 = vector.load %arg50[%c0_99, %c0_100] : memref<64x10xf32, #tpu.memory_space<vmem>>, vector<64x10xf32>
    %c0_101 = arith.constant 0 : index
    %c0_102 = arith.constant 0 : index
    %51 = vector.load %arg51[%c0_101, %c0_102] : memref<1x10xf32, #tpu.memory_space<vmem>>, vector<1x10xf32>
    %c0_103 = arith.constant 0 : index
    %c0_104 = arith.constant 0 : index
    %52 = vector.load %arg52[%c0_103, %c0_104] : memref<64x7xf32, #tpu.memory_space<vmem>>, vector<64x7xf32>
    %c0_105 = arith.constant 0 : index
    %c0_106 = arith.constant 0 : index
    %53 = vector.load %arg53[%c0_105, %c0_106] : memref<1x7xf32, #tpu.memory_space<vmem>>, vector<1x7xf32>
    %54 = tpu.iota {dimensions = array<i32: 1>} : vector<32x256xi32>
    %55 = vector.broadcast %0 : vector<32x1xi32> to vector<32x256xi32>
    %56 = arith.cmpi eq, %54, %55 : vector<32x256xi32>
    %57 = arith.extui %56 : vector<32x256xi1> to vector<32x256xi32>
    %58 = arith.sitofp %57 : vector<32x256xi32> to vector<32x256xf32>
    %cst = arith.constant dense<0.000000e+00> : vector<32x4xf32>
    %59 = tpu.matmul %58, %1, %cst {dimension_numbers = #tpu.dot_dimension_numbers<[1], [0], [0], [1], [0, 0, 1, 1], [], []>} : vector<32x256xf32>, vector<256x4xf32>, vector<32x4xf32> -> vector<32x4xf32>
    %cst_107 = arith.constant 0.000000e+00 : f32
    %60 = vector.broadcast %cst_107 : f32 to vector<2x4xf32>
    %cst_108 = arith.constant 0.000000e+00 : f32
    %61 = vector.broadcast %cst_108 : f32 to vector<2x4xf32>
    %62 = tpu.concatenate %60, %59, %61 in 0 : vector<2x4xf32>, vector<32x4xf32>, vector<2x4xf32> -> vector<36x4xf32>
    %63 = vector.extract_strided_slice %62 {offsets = [0, 0], sizes = [32, 4], strides = [1, 1]} : vector<36x4xf32> to vector<32x4xf32>
    %64 = vector.extract_strided_slice %62 {offsets = [2, 0], sizes = [32, 4], strides = [1, 1]} : vector<36x4xf32> to vector<32x4xf32>
    %65 = vector.extract_strided_slice %62 {offsets = [4, 0], sizes = [32, 4], strides = [1, 1]} : vector<36x4xf32> to vector<32x4xf32>
    %66 = tpu.concatenate %63, %64, %65 in 1 : vector<32x4xf32>, vector<32x4xf32>, vector<32x4xf32> -> vector<32x12xf32>
    %cst_109 = arith.constant dense<0.000000e+00> : vector<32x8xf32>
    %67 = tpu.matmul %66, %2, %cst_109 {dimension_numbers = #tpu.dot_dimension_numbers<[1], [0], [0], [1], [0, 0, 1, 1], [], []>} : vector<32x12xf32>, vector<12x8xf32>, vector<32x8xf32> -> vector<32x8xf32>
    %68 = vector.broadcast %3 : vector<1x8xf32> to vector<32x8xf32>
    %69 = arith.addf %67, %68 : vector<32x8xf32>
    %cst_110 = arith.constant dense<0.000000e+00> : vector<8xf32>
    %70 = vector.multi_reduction <add>, %69, %cst_110 [0] : vector<32x8xf32> to vector<8xf32>
    %71 = vector.shape_cast %70 : vector<8xf32> to vector<1x8xf32>
    %cst_111 = arith.constant 3.125000e-02 : f32
    %72 = vector.broadcast %cst_111 : f32 to vector<1x8xf32>
    %73 = arith.mulf %71, %72 : vector<1x8xf32>
    %74 = arith.mulf %69, %69 : vector<32x8xf32>
    %cst_112 = arith.constant dense<0.000000e+00> : vector<8xf32>
    %75 = vector.multi_reduction <add>, %74, %cst_112 [0] : vector<32x8xf32> to vector<8xf32>
    %76 = vector.shape_cast %75 : vector<8xf32> to vector<1x8xf32>
    %cst_113 = arith.constant 3.125000e-02 : f32
    %77 = vector.broadcast %cst_113 : f32 to vector<1x8xf32>
    %78 = arith.mulf %76, %77 : vector<1x8xf32>
    %79 = arith.mulf %73, %73 : vector<1x8xf32>
    %80 = arith.subf %78, %79 : vector<1x8xf32>
    %cst_114 = arith.constant 9.99999974E-6 : f32
    %81 = vector.broadcast %cst_114 : f32 to vector<1x8xf32>
    %82 = arith.addf %80, %81 : vector<1x8xf32>
    %83 = math.rsqrt %82 : vector<1x8xf32>
    %84 = arith.mulf %4, %83 : vector<1x8xf32>
    %85 = arith.mulf %73, %84 : vector<1x8xf32>
    %86 = arith.subf %5, %85 : vector<1x8xf32>
    %87 = vector.broadcast %84 : vector<1x8xf32> to vector<32x8xf32>
    %88 = arith.mulf %69, %87 : vector<32x8xf32>
    %89 = vector.broadcast %86 : vector<1x8xf32> to vector<32x8xf32>
    %90 = arith.addf %88, %89 : vector<32x8xf32>
    %cst_115 = arith.constant 0.000000e+00 : f32
    %91 = vector.broadcast %cst_115 : f32 to vector<32x8xf32>
    %92 = arith.maximumf %90, %91 : vector<32x8xf32>
    %cst_116 = arith.constant 0xFF800000 : f32
    %93 = vector.broadcast %cst_116 : f32 to vector<2x8xf32>
    %cst_117 = arith.constant 0xFF800000 : f32
    %94 = vector.broadcast %cst_117 : f32 to vector<2x8xf32>
    %95 = tpu.concatenate %93, %92, %94 in 0 : vector<2x8xf32>, vector<32x8xf32>, vector<2x8xf32> -> vector<36x8xf32>
    %96 = vector.extract_strided_slice %95 {offsets = [0, 0], sizes = [32, 8], strides = [1, 1]} : vector<36x8xf32> to vector<32x8xf32>
    %97 = vector.shape_cast %96 : vector<32x8xf32> to vector<8x4x8xf32>
    %98 = vector.extract_strided_slice %97 {offsets = [0, 0, 0], sizes = [8, 2, 8], strides = [1, 1, 1]} : vector<8x4x8xf32> to vector<8x2x8xf32>
    %99 = vector.shape_cast %98 : vector<8x2x8xf32> to vector<16x8xf32>
    %100 = vector.extract_strided_slice %95 {offsets = [2, 0], sizes = [32, 8], strides = [1, 1]} : vector<36x8xf32> to vector<32x8xf32>
    %101 = vector.shape_cast %100 : vector<32x8xf32> to vector<8x4x8xf32>
    %102 = vector.extract_strided_slice %101 {offsets = [0, 0, 0], sizes = [8, 2, 8], strides = [1, 1, 1]} : vector<8x4x8xf32> to vector<8x2x8xf32>
    %103 = vector.shape_cast %102 : vector<8x2x8xf32> to vector<16x8xf32>
    %104 = vector.extract_strided_slice %95 {offsets = [4, 0], sizes = [32, 8], strides = [1, 1]} : vector<36x8xf32> to vector<32x8xf32>
    %105 = vector.shape_cast %104 : vector<32x8xf32> to vector<8x4x8xf32>
    %106 = vector.extract_strided_slice %105 {offsets = [0, 0, 0], sizes = [8, 2, 8], strides = [1, 1, 1]} : vector<8x4x8xf32> to vector<8x2x8xf32>
    %107 = vector.shape_cast %106 : vector<8x2x8xf32> to vector<16x8xf32>
    %108 = arith.maximumf %99, %103 : vector<16x8xf32>
    %109 = arith.maximumf %108, %107 : vector<16x8xf32>
    %cst_118 = arith.constant 0.000000e+00 : f32
    %110 = vector.broadcast %cst_118 : f32 to vector<2x8xf32>
    %cst_119 = arith.constant 0.000000e+00 : f32
    %111 = vector.broadcast %cst_119 : f32 to vector<2x8xf32>
    %112 = tpu.concatenate %110, %109, %111 in 0 : vector<2x8xf32>, vector<16x8xf32>, vector<2x8xf32> -> vector<20x8xf32>
    %113 = vector.extract_strided_slice %112 {offsets = [0, 0], sizes = [16, 8], strides = [1, 1]} : vector<20x8xf32> to vector<16x8xf32>
    %114 = vector.extract_strided_slice %112 {offsets = [2, 0], sizes = [16, 8], strides = [1, 1]} : vector<20x8xf32> to vector<16x8xf32>
    %115 = vector.extract_strided_slice %112 {offsets = [4, 0], sizes = [16, 8], strides = [1, 1]} : vector<20x8xf32> to vector<16x8xf32>
    %116 = tpu.concatenate %113, %114, %115 in 1 : vector<16x8xf32>, vector<16x8xf32>, vector<16x8xf32> -> vector<16x24xf32>
    %cst_120 = arith.constant dense<0.000000e+00> : vector<16x8xf32>
    %117 = tpu.matmul %116, %6, %cst_120 {dimension_numbers = #tpu.dot_dimension_numbers<[1], [0], [0], [1], [0, 0, 1, 1], [], []>} : vector<16x24xf32>, vector<24x8xf32>, vector<16x8xf32> -> vector<16x8xf32>
    %118 = vector.broadcast %7 : vector<1x8xf32> to vector<16x8xf32>
    %119 = arith.addf %117, %118 : vector<16x8xf32>
    %cst_121 = arith.constant dense<0.000000e+00> : vector<8xf32>
    %120 = vector.multi_reduction <add>, %119, %cst_121 [0] : vector<16x8xf32> to vector<8xf32>
    %121 = vector.shape_cast %120 : vector<8xf32> to vector<1x8xf32>
    %cst_122 = arith.constant 6.250000e-02 : f32
    %122 = vector.broadcast %cst_122 : f32 to vector<1x8xf32>
    %123 = arith.mulf %121, %122 : vector<1x8xf32>
    %124 = arith.mulf %119, %119 : vector<16x8xf32>
    %cst_123 = arith.constant dense<0.000000e+00> : vector<8xf32>
    %125 = vector.multi_reduction <add>, %124, %cst_123 [0] : vector<16x8xf32> to vector<8xf32>
    %126 = vector.shape_cast %125 : vector<8xf32> to vector<1x8xf32>
    %cst_124 = arith.constant 6.250000e-02 : f32
    %127 = vector.broadcast %cst_124 : f32 to vector<1x8xf32>
    %128 = arith.mulf %126, %127 : vector<1x8xf32>
    %129 = arith.mulf %123, %123 : vector<1x8xf32>
    %130 = arith.subf %128, %129 : vector<1x8xf32>
    %cst_125 = arith.constant 9.99999974E-6 : f32
    %131 = vector.broadcast %cst_125 : f32 to vector<1x8xf32>
    %132 = arith.addf %130, %131 : vector<1x8xf32>
    %133 = math.rsqrt %132 : vector<1x8xf32>
    %134 = arith.mulf %8, %133 : vector<1x8xf32>
    %135 = arith.mulf %123, %134 : vector<1x8xf32>
    %136 = arith.subf %9, %135 : vector<1x8xf32>
    %137 = vector.broadcast %134 : vector<1x8xf32> to vector<16x8xf32>
    %138 = arith.mulf %119, %137 : vector<16x8xf32>
    %139 = vector.broadcast %136 : vector<1x8xf32> to vector<16x8xf32>
    %140 = arith.addf %138, %139 : vector<16x8xf32>
    %cst_126 = arith.constant 0.000000e+00 : f32
    %141 = vector.broadcast %cst_126 : f32 to vector<16x8xf32>
    %142 = arith.maximumf %140, %141 : vector<16x8xf32>
    %cst_127 = arith.constant 0.000000e+00 : f32
    %143 = vector.broadcast %cst_127 : f32 to vector<2x8xf32>
    %cst_128 = arith.constant 0.000000e+00 : f32
    %144 = vector.broadcast %cst_128 : f32 to vector<2x8xf32>
    %145 = tpu.concatenate %143, %142, %144 in 0 : vector<2x8xf32>, vector<16x8xf32>, vector<2x8xf32> -> vector<20x8xf32>
    %146 = vector.extract_strided_slice %145 {offsets = [0, 0], sizes = [16, 8], strides = [1, 1]} : vector<20x8xf32> to vector<16x8xf32>
    %147 = vector.extract_strided_slice %145 {offsets = [2, 0], sizes = [16, 8], strides = [1, 1]} : vector<20x8xf32> to vector<16x8xf32>
    %148 = vector.extract_strided_slice %145 {offsets = [4, 0], sizes = [16, 8], strides = [1, 1]} : vector<20x8xf32> to vector<16x8xf32>
    %149 = tpu.concatenate %146, %147, %148 in 1 : vector<16x8xf32>, vector<16x8xf32>, vector<16x8xf32> -> vector<16x24xf32>
    %cst_129 = arith.constant dense<0.000000e+00> : vector<16x8xf32>
    %150 = tpu.matmul %149, %10, %cst_129 {dimension_numbers = #tpu.dot_dimension_numbers<[1], [0], [0], [1], [0, 0, 1, 1], [], []>} : vector<16x24xf32>, vector<24x8xf32>, vector<16x8xf32> -> vector<16x8xf32>
    %151 = vector.broadcast %11 : vector<1x8xf32> to vector<16x8xf32>
    %152 = arith.addf %150, %151 : vector<16x8xf32>
    %cst_130 = arith.constant dense<0.000000e+00> : vector<8xf32>
    %153 = vector.multi_reduction <add>, %152, %cst_130 [0] : vector<16x8xf32> to vector<8xf32>
    %154 = vector.shape_cast %153 : vector<8xf32> to vector<1x8xf32>
    %cst_131 = arith.constant 6.250000e-02 : f32
    %155 = vector.broadcast %cst_131 : f32 to vector<1x8xf32>
    %156 = arith.mulf %154, %155 : vector<1x8xf32>
    %157 = arith.mulf %152, %152 : vector<16x8xf32>
    %cst_132 = arith.constant dense<0.000000e+00> : vector<8xf32>
    %158 = vector.multi_reduction <add>, %157, %cst_132 [0] : vector<16x8xf32> to vector<8xf32>
    %159 = vector.shape_cast %158 : vector<8xf32> to vector<1x8xf32>
    %cst_133 = arith.constant 6.250000e-02 : f32
    %160 = vector.broadcast %cst_133 : f32 to vector<1x8xf32>
    %161 = arith.mulf %159, %160 : vector<1x8xf32>
    %162 = arith.mulf %156, %156 : vector<1x8xf32>
    %163 = arith.subf %161, %162 : vector<1x8xf32>
    %cst_134 = arith.constant 9.99999974E-6 : f32
    %164 = vector.broadcast %cst_134 : f32 to vector<1x8xf32>
    %165 = arith.addf %163, %164 : vector<1x8xf32>
    %166 = math.rsqrt %165 : vector<1x8xf32>
    %167 = arith.mulf %12, %166 : vector<1x8xf32>
    %168 = arith.mulf %156, %167 : vector<1x8xf32>
    %169 = arith.subf %13, %168 : vector<1x8xf32>
    %170 = vector.broadcast %167 : vector<1x8xf32> to vector<16x8xf32>
    %171 = arith.mulf %152, %170 : vector<16x8xf32>
    %172 = vector.broadcast %169 : vector<1x8xf32> to vector<16x8xf32>
    %173 = arith.addf %171, %172 : vector<16x8xf32>
    %174 = arith.addf %173, %109 : vector<16x8xf32>
    %cst_135 = arith.constant 0.000000e+00 : f32
    %175 = vector.broadcast %cst_135 : f32 to vector<16x8xf32>
    %176 = arith.maximumf %174, %175 : vector<16x8xf32>
    %177 = vector.shape_cast %176 : vector<16x8xf32> to vector<4x4x8xf32>
    %178 = vector.extract_strided_slice %177 {offsets = [0, 0, 0], sizes = [4, 2, 8], strides = [1, 1, 1]} : vector<4x4x8xf32> to vector<4x2x8xf32>
    %179 = vector.shape_cast %178 : vector<4x2x8xf32> to vector<8x8xf32>
    %cst_136 = arith.constant dense<0.000000e+00> : vector<8x16xf32>
    %180 = tpu.matmul %179, %22, %cst_136 {dimension_numbers = #tpu.dot_dimension_numbers<[1], [0], [0], [1], [0, 0, 1, 1], [], []>} : vector<8x8xf32>, vector<8x16xf32>, vector<8x16xf32> -> vector<8x16xf32>
    %181 = vector.broadcast %23 : vector<1x16xf32> to vector<8x16xf32>
    %182 = arith.addf %180, %181 : vector<8x16xf32>
    %cst_137 = arith.constant dense<0.000000e+00> : vector<16xf32>
    %183 = vector.multi_reduction <add>, %182, %cst_137 [0] : vector<8x16xf32> to vector<16xf32>
    %184 = vector.shape_cast %183 : vector<16xf32> to vector<1x16xf32>
    %cst_138 = arith.constant 1.250000e-01 : f32
    %185 = vector.broadcast %cst_138 : f32 to vector<1x16xf32>
    %186 = arith.mulf %184, %185 : vector<1x16xf32>
    %187 = arith.mulf %182, %182 : vector<8x16xf32>
    %cst_139 = arith.constant dense<0.000000e+00> : vector<16xf32>
    %188 = vector.multi_reduction <add>, %187, %cst_139 [0] : vector<8x16xf32> to vector<16xf32>
    %189 = vector.shape_cast %188 : vector<16xf32> to vector<1x16xf32>
    %cst_140 = arith.constant 1.250000e-01 : f32
    %190 = vector.broadcast %cst_140 : f32 to vector<1x16xf32>
    %191 = arith.mulf %189, %190 : vector<1x16xf32>
    %192 = arith.mulf %186, %186 : vector<1x16xf32>
    %193 = arith.subf %191, %192 : vector<1x16xf32>
    %cst_141 = arith.constant 9.99999974E-6 : f32
    %194 = vector.broadcast %cst_141 : f32 to vector<1x16xf32>
    %195 = arith.addf %193, %194 : vector<1x16xf32>
    %196 = math.rsqrt %195 : vector<1x16xf32>
    %197 = arith.mulf %24, %196 : vector<1x16xf32>
    %198 = arith.mulf %186, %197 : vector<1x16xf32>
    %199 = arith.subf %25, %198 : vector<1x16xf32>
    %200 = vector.broadcast %197 : vector<1x16xf32> to vector<8x16xf32>
    %201 = arith.mulf %182, %200 : vector<8x16xf32>
    %202 = vector.broadcast %199 : vector<1x16xf32> to vector<8x16xf32>
    %203 = arith.addf %201, %202 : vector<8x16xf32>
    %cst_142 = arith.constant 0.000000e+00 : f32
    %204 = vector.broadcast %cst_142 : f32 to vector<2x8xf32>
    %cst_143 = arith.constant 0.000000e+00 : f32
    %205 = vector.broadcast %cst_143 : f32 to vector<2x8xf32>
    %206 = tpu.concatenate %204, %176, %205 in 0 : vector<2x8xf32>, vector<16x8xf32>, vector<2x8xf32> -> vector<20x8xf32>
    %207 = vector.extract_strided_slice %206 {offsets = [0, 0], sizes = [16, 8], strides = [1, 1]} : vector<20x8xf32> to vector<16x8xf32>
    %208 = vector.shape_cast %207 : vector<16x8xf32> to vector<4x4x8xf32>
    %209 = vector.extract_strided_slice %208 {offsets = [0, 0, 0], sizes = [4, 2, 8], strides = [1, 1, 1]} : vector<4x4x8xf32> to vector<4x2x8xf32>
    %210 = vector.shape_cast %209 : vector<4x2x8xf32> to vector<8x8xf32>
    %211 = vector.extract_strided_slice %206 {offsets = [2, 0], sizes = [16, 8], strides = [1, 1]} : vector<20x8xf32> to vector<16x8xf32>
    %212 = vector.shape_cast %211 : vector<16x8xf32> to vector<4x4x8xf32>
    %213 = vector.extract_strided_slice %212 {offsets = [0, 0, 0], sizes = [4, 2, 8], strides = [1, 1, 1]} : vector<4x4x8xf32> to vector<4x2x8xf32>
    %214 = vector.shape_cast %213 : vector<4x2x8xf32> to vector<8x8xf32>
    %215 = vector.extract_strided_slice %206 {offsets = [4, 0], sizes = [16, 8], strides = [1, 1]} : vector<20x8xf32> to vector<16x8xf32>
    %216 = vector.shape_cast %215 : vector<16x8xf32> to vector<4x4x8xf32>
    %217 = vector.extract_strided_slice %216 {offsets = [0, 0, 0], sizes = [4, 2, 8], strides = [1, 1, 1]} : vector<4x4x8xf32> to vector<4x2x8xf32>
    %218 = vector.shape_cast %217 : vector<4x2x8xf32> to vector<8x8xf32>
    %219 = tpu.concatenate %210, %214, %218 in 1 : vector<8x8xf32>, vector<8x8xf32>, vector<8x8xf32> -> vector<8x24xf32>
    %cst_144 = arith.constant dense<0.000000e+00> : vector<8x16xf32>
    %220 = tpu.matmul %219, %14, %cst_144 {dimension_numbers = #tpu.dot_dimension_numbers<[1], [0], [0], [1], [0, 0, 1, 1], [], []>} : vector<8x24xf32>, vector<24x16xf32>, vector<8x16xf32> -> vector<8x16xf32>
    %221 = vector.broadcast %15 : vector<1x16xf32> to vector<8x16xf32>
    %222 = arith.addf %220, %221 : vector<8x16xf32>
    %cst_145 = arith.constant dense<0.000000e+00> : vector<16xf32>
    %223 = vector.multi_reduction <add>, %222, %cst_145 [0] : vector<8x16xf32> to vector<16xf32>
    %224 = vector.shape_cast %223 : vector<16xf32> to vector<1x16xf32>
    %cst_146 = arith.constant 1.250000e-01 : f32
    %225 = vector.broadcast %cst_146 : f32 to vector<1x16xf32>
    %226 = arith.mulf %224, %225 : vector<1x16xf32>
    %227 = arith.mulf %222, %222 : vector<8x16xf32>
    %cst_147 = arith.constant dense<0.000000e+00> : vector<16xf32>
    %228 = vector.multi_reduction <add>, %227, %cst_147 [0] : vector<8x16xf32> to vector<16xf32>
    %229 = vector.shape_cast %228 : vector<16xf32> to vector<1x16xf32>
    %cst_148 = arith.constant 1.250000e-01 : f32
    %230 = vector.broadcast %cst_148 : f32 to vector<1x16xf32>
    %231 = arith.mulf %229, %230 : vector<1x16xf32>
    %232 = arith.mulf %226, %226 : vector<1x16xf32>
    %233 = arith.subf %231, %232 : vector<1x16xf32>
    %cst_149 = arith.constant 9.99999974E-6 : f32
    %234 = vector.broadcast %cst_149 : f32 to vector<1x16xf32>
    %235 = arith.addf %233, %234 : vector<1x16xf32>
    %236 = math.rsqrt %235 : vector<1x16xf32>
    %237 = arith.mulf %16, %236 : vector<1x16xf32>
    %238 = arith.mulf %226, %237 : vector<1x16xf32>
    %239 = arith.subf %17, %238 : vector<1x16xf32>
    %240 = vector.broadcast %237 : vector<1x16xf32> to vector<8x16xf32>
    %241 = arith.mulf %222, %240 : vector<8x16xf32>
    %242 = vector.broadcast %239 : vector<1x16xf32> to vector<8x16xf32>
    %243 = arith.addf %241, %242 : vector<8x16xf32>
    %cst_150 = arith.constant 0.000000e+00 : f32
    %244 = vector.broadcast %cst_150 : f32 to vector<8x16xf32>
    %245 = arith.maximumf %243, %244 : vector<8x16xf32>
    %cst_151 = arith.constant 0.000000e+00 : f32
    %246 = vector.broadcast %cst_151 : f32 to vector<2x16xf32>
    %cst_152 = arith.constant 0.000000e+00 : f32
    %247 = vector.broadcast %cst_152 : f32 to vector<2x16xf32>
    %248 = tpu.concatenate %246, %245, %247 in 0 : vector<2x16xf32>, vector<8x16xf32>, vector<2x16xf32> -> vector<12x16xf32>
    %249 = vector.extract_strided_slice %248 {offsets = [0, 0], sizes = [8, 16], strides = [1, 1]} : vector<12x16xf32> to vector<8x16xf32>
    %250 = vector.extract_strided_slice %248 {offsets = [2, 0], sizes = [8, 16], strides = [1, 1]} : vector<12x16xf32> to vector<8x16xf32>
    %251 = vector.extract_strided_slice %248 {offsets = [4, 0], sizes = [8, 16], strides = [1, 1]} : vector<12x16xf32> to vector<8x16xf32>
    %252 = tpu.concatenate %249, %250, %251 in 1 : vector<8x16xf32>, vector<8x16xf32>, vector<8x16xf32> -> vector<8x48xf32>
    %cst_153 = arith.constant dense<0.000000e+00> : vector<8x16xf32>
    %253 = tpu.matmul %252, %18, %cst_153 {dimension_numbers = #tpu.dot_dimension_numbers<[1], [0], [0], [1], [0, 0, 1, 1], [], []>} : vector<8x48xf32>, vector<48x16xf32>, vector<8x16xf32> -> vector<8x16xf32>
    %254 = vector.broadcast %19 : vector<1x16xf32> to vector<8x16xf32>
    %255 = arith.addf %253, %254 : vector<8x16xf32>
    %cst_154 = arith.constant dense<0.000000e+00> : vector<16xf32>
    %256 = vector.multi_reduction <add>, %255, %cst_154 [0] : vector<8x16xf32> to vector<16xf32>
    %257 = vector.shape_cast %256 : vector<16xf32> to vector<1x16xf32>
    %cst_155 = arith.constant 1.250000e-01 : f32
    %258 = vector.broadcast %cst_155 : f32 to vector<1x16xf32>
    %259 = arith.mulf %257, %258 : vector<1x16xf32>
    %260 = arith.mulf %255, %255 : vector<8x16xf32>
    %cst_156 = arith.constant dense<0.000000e+00> : vector<16xf32>
    %261 = vector.multi_reduction <add>, %260, %cst_156 [0] : vector<8x16xf32> to vector<16xf32>
    %262 = vector.shape_cast %261 : vector<16xf32> to vector<1x16xf32>
    %cst_157 = arith.constant 1.250000e-01 : f32
    %263 = vector.broadcast %cst_157 : f32 to vector<1x16xf32>
    %264 = arith.mulf %262, %263 : vector<1x16xf32>
    %265 = arith.mulf %259, %259 : vector<1x16xf32>
    %266 = arith.subf %264, %265 : vector<1x16xf32>
    %cst_158 = arith.constant 9.99999974E-6 : f32
    %267 = vector.broadcast %cst_158 : f32 to vector<1x16xf32>
    %268 = arith.addf %266, %267 : vector<1x16xf32>
    %269 = math.rsqrt %268 : vector<1x16xf32>
    %270 = arith.mulf %20, %269 : vector<1x16xf32>
    %271 = arith.mulf %259, %270 : vector<1x16xf32>
    %272 = arith.subf %21, %271 : vector<1x16xf32>
    %273 = vector.broadcast %270 : vector<1x16xf32> to vector<8x16xf32>
    %274 = arith.mulf %255, %273 : vector<8x16xf32>
    %275 = vector.broadcast %272 : vector<1x16xf32> to vector<8x16xf32>
    %276 = arith.addf %274, %275 : vector<8x16xf32>
    %277 = arith.addf %276, %203 : vector<8x16xf32>
    %cst_159 = arith.constant 0.000000e+00 : f32
    %278 = vector.broadcast %cst_159 : f32 to vector<8x16xf32>
    %279 = arith.maximumf %277, %278 : vector<8x16xf32>
    %280 = vector.shape_cast %279 : vector<8x16xf32> to vector<2x4x16xf32>
    %281 = vector.extract_strided_slice %280 {offsets = [0, 0, 0], sizes = [2, 2, 16], strides = [1, 1, 1]} : vector<2x4x16xf32> to vector<2x2x16xf32>
    %282 = vector.shape_cast %281 : vector<2x2x16xf32> to vector<4x16xf32>
    %cst_160 = arith.constant dense<0.000000e+00> : vector<4x32xf32>
    %283 = tpu.matmul %282, %34, %cst_160 {dimension_numbers = #tpu.dot_dimension_numbers<[1], [0], [0], [1], [0, 0, 1, 1], [], []>} : vector<4x16xf32>, vector<16x32xf32>, vector<4x32xf32> -> vector<4x32xf32>
    %284 = vector.broadcast %35 : vector<1x32xf32> to vector<4x32xf32>
    %285 = arith.addf %283, %284 : vector<4x32xf32>
    %cst_161 = arith.constant dense<0.000000e+00> : vector<32xf32>
    %286 = vector.multi_reduction <add>, %285, %cst_161 [0] : vector<4x32xf32> to vector<32xf32>
    %287 = vector.shape_cast %286 : vector<32xf32> to vector<1x32xf32>
    %cst_162 = arith.constant 2.500000e-01 : f32
    %288 = vector.broadcast %cst_162 : f32 to vector<1x32xf32>
    %289 = arith.mulf %287, %288 : vector<1x32xf32>
    %290 = arith.mulf %285, %285 : vector<4x32xf32>
    %cst_163 = arith.constant dense<0.000000e+00> : vector<32xf32>
    %291 = vector.multi_reduction <add>, %290, %cst_163 [0] : vector<4x32xf32> to vector<32xf32>
    %292 = vector.shape_cast %291 : vector<32xf32> to vector<1x32xf32>
    %cst_164 = arith.constant 2.500000e-01 : f32
    %293 = vector.broadcast %cst_164 : f32 to vector<1x32xf32>
    %294 = arith.mulf %292, %293 : vector<1x32xf32>
    %295 = arith.mulf %289, %289 : vector<1x32xf32>
    %296 = arith.subf %294, %295 : vector<1x32xf32>
    %cst_165 = arith.constant 9.99999974E-6 : f32
    %297 = vector.broadcast %cst_165 : f32 to vector<1x32xf32>
    %298 = arith.addf %296, %297 : vector<1x32xf32>
    %299 = math.rsqrt %298 : vector<1x32xf32>
    %300 = arith.mulf %36, %299 : vector<1x32xf32>
    %301 = arith.mulf %289, %300 : vector<1x32xf32>
    %302 = arith.subf %37, %301 : vector<1x32xf32>
    %303 = vector.broadcast %300 : vector<1x32xf32> to vector<4x32xf32>
    %304 = arith.mulf %285, %303 : vector<4x32xf32>
    %305 = vector.broadcast %302 : vector<1x32xf32> to vector<4x32xf32>
    %306 = arith.addf %304, %305 : vector<4x32xf32>
    %cst_166 = arith.constant 0.000000e+00 : f32
    %307 = vector.broadcast %cst_166 : f32 to vector<2x16xf32>
    %cst_167 = arith.constant 0.000000e+00 : f32
    %308 = vector.broadcast %cst_167 : f32 to vector<2x16xf32>
    %309 = tpu.concatenate %307, %279, %308 in 0 : vector<2x16xf32>, vector<8x16xf32>, vector<2x16xf32> -> vector<12x16xf32>
    %310 = vector.extract_strided_slice %309 {offsets = [0, 0], sizes = [8, 16], strides = [1, 1]} : vector<12x16xf32> to vector<8x16xf32>
    %311 = vector.shape_cast %310 : vector<8x16xf32> to vector<2x4x16xf32>
    %312 = vector.extract_strided_slice %311 {offsets = [0, 0, 0], sizes = [2, 2, 16], strides = [1, 1, 1]} : vector<2x4x16xf32> to vector<2x2x16xf32>
    %313 = vector.shape_cast %312 : vector<2x2x16xf32> to vector<4x16xf32>
    %314 = vector.extract_strided_slice %309 {offsets = [2, 0], sizes = [8, 16], strides = [1, 1]} : vector<12x16xf32> to vector<8x16xf32>
    %315 = vector.shape_cast %314 : vector<8x16xf32> to vector<2x4x16xf32>
    %316 = vector.extract_strided_slice %315 {offsets = [0, 0, 0], sizes = [2, 2, 16], strides = [1, 1, 1]} : vector<2x4x16xf32> to vector<2x2x16xf32>
    %317 = vector.shape_cast %316 : vector<2x2x16xf32> to vector<4x16xf32>
    %318 = vector.extract_strided_slice %309 {offsets = [4, 0], sizes = [8, 16], strides = [1, 1]} : vector<12x16xf32> to vector<8x16xf32>
    %319 = vector.shape_cast %318 : vector<8x16xf32> to vector<2x4x16xf32>
    %320 = vector.extract_strided_slice %319 {offsets = [0, 0, 0], sizes = [2, 2, 16], strides = [1, 1, 1]} : vector<2x4x16xf32> to vector<2x2x16xf32>
    %321 = vector.shape_cast %320 : vector<2x2x16xf32> to vector<4x16xf32>
    %322 = tpu.concatenate %313, %317, %321 in 1 : vector<4x16xf32>, vector<4x16xf32>, vector<4x16xf32> -> vector<4x48xf32>
    %cst_168 = arith.constant dense<0.000000e+00> : vector<4x32xf32>
    %323 = tpu.matmul %322, %26, %cst_168 {dimension_numbers = #tpu.dot_dimension_numbers<[1], [0], [0], [1], [0, 0, 1, 1], [], []>} : vector<4x48xf32>, vector<48x32xf32>, vector<4x32xf32> -> vector<4x32xf32>
    %324 = vector.broadcast %27 : vector<1x32xf32> to vector<4x32xf32>
    %325 = arith.addf %323, %324 : vector<4x32xf32>
    %cst_169 = arith.constant dense<0.000000e+00> : vector<32xf32>
    %326 = vector.multi_reduction <add>, %325, %cst_169 [0] : vector<4x32xf32> to vector<32xf32>
    %327 = vector.shape_cast %326 : vector<32xf32> to vector<1x32xf32>
    %cst_170 = arith.constant 2.500000e-01 : f32
    %328 = vector.broadcast %cst_170 : f32 to vector<1x32xf32>
    %329 = arith.mulf %327, %328 : vector<1x32xf32>
    %330 = arith.mulf %325, %325 : vector<4x32xf32>
    %cst_171 = arith.constant dense<0.000000e+00> : vector<32xf32>
    %331 = vector.multi_reduction <add>, %330, %cst_171 [0] : vector<4x32xf32> to vector<32xf32>
    %332 = vector.shape_cast %331 : vector<32xf32> to vector<1x32xf32>
    %cst_172 = arith.constant 2.500000e-01 : f32
    %333 = vector.broadcast %cst_172 : f32 to vector<1x32xf32>
    %334 = arith.mulf %332, %333 : vector<1x32xf32>
    %335 = arith.mulf %329, %329 : vector<1x32xf32>
    %336 = arith.subf %334, %335 : vector<1x32xf32>
    %cst_173 = arith.constant 9.99999974E-6 : f32
    %337 = vector.broadcast %cst_173 : f32 to vector<1x32xf32>
    %338 = arith.addf %336, %337 : vector<1x32xf32>
    %339 = math.rsqrt %338 : vector<1x32xf32>
    %340 = arith.mulf %28, %339 : vector<1x32xf32>
    %341 = arith.mulf %329, %340 : vector<1x32xf32>
    %342 = arith.subf %29, %341 : vector<1x32xf32>
    %343 = vector.broadcast %340 : vector<1x32xf32> to vector<4x32xf32>
    %344 = arith.mulf %325, %343 : vector<4x32xf32>
    %345 = vector.broadcast %342 : vector<1x32xf32> to vector<4x32xf32>
    %346 = arith.addf %344, %345 : vector<4x32xf32>
    %cst_174 = arith.constant 0.000000e+00 : f32
    %347 = vector.broadcast %cst_174 : f32 to vector<4x32xf32>
    %348 = arith.maximumf %346, %347 : vector<4x32xf32>
    %cst_175 = arith.constant 0.000000e+00 : f32
    %349 = vector.broadcast %cst_175 : f32 to vector<2x32xf32>
    %cst_176 = arith.constant 0.000000e+00 : f32
    %350 = vector.broadcast %cst_176 : f32 to vector<2x32xf32>
    %351 = tpu.concatenate %349, %348, %350 in 0 : vector<2x32xf32>, vector<4x32xf32>, vector<2x32xf32> -> vector<8x32xf32>
    %352 = vector.extract_strided_slice %351 {offsets = [0, 0], sizes = [4, 32], strides = [1, 1]} : vector<8x32xf32> to vector<4x32xf32>
    %353 = vector.extract_strided_slice %351 {offsets = [2, 0], sizes = [4, 32], strides = [1, 1]} : vector<8x32xf32> to vector<4x32xf32>
    %354 = vector.extract_strided_slice %351 {offsets = [4, 0], sizes = [4, 32], strides = [1, 1]} : vector<8x32xf32> to vector<4x32xf32>
    %355 = tpu.concatenate %352, %353, %354 in 1 : vector<4x32xf32>, vector<4x32xf32>, vector<4x32xf32> -> vector<4x96xf32>
    %cst_177 = arith.constant dense<0.000000e+00> : vector<4x32xf32>
    %356 = tpu.matmul %355, %30, %cst_177 {dimension_numbers = #tpu.dot_dimension_numbers<[1], [0], [0], [1], [0, 0, 1, 1], [], []>} : vector<4x96xf32>, vector<96x32xf32>, vector<4x32xf32> -> vector<4x32xf32>
    %357 = vector.broadcast %31 : vector<1x32xf32> to vector<4x32xf32>
    %358 = arith.addf %356, %357 : vector<4x32xf32>
    %cst_178 = arith.constant dense<0.000000e+00> : vector<32xf32>
    %359 = vector.multi_reduction <add>, %358, %cst_178 [0] : vector<4x32xf32> to vector<32xf32>
    %360 = vector.shape_cast %359 : vector<32xf32> to vector<1x32xf32>
    %cst_179 = arith.constant 2.500000e-01 : f32
    %361 = vector.broadcast %cst_179 : f32 to vector<1x32xf32>
    %362 = arith.mulf %360, %361 : vector<1x32xf32>
    %363 = arith.mulf %358, %358 : vector<4x32xf32>
    %cst_180 = arith.constant dense<0.000000e+00> : vector<32xf32>
    %364 = vector.multi_reduction <add>, %363, %cst_180 [0] : vector<4x32xf32> to vector<32xf32>
    %365 = vector.shape_cast %364 : vector<32xf32> to vector<1x32xf32>
    %cst_181 = arith.constant 2.500000e-01 : f32
    %366 = vector.broadcast %cst_181 : f32 to vector<1x32xf32>
    %367 = arith.mulf %365, %366 : vector<1x32xf32>
    %368 = arith.mulf %362, %362 : vector<1x32xf32>
    %369 = arith.subf %367, %368 : vector<1x32xf32>
    %cst_182 = arith.constant 9.99999974E-6 : f32
    %370 = vector.broadcast %cst_182 : f32 to vector<1x32xf32>
    %371 = arith.addf %369, %370 : vector<1x32xf32>
    %372 = math.rsqrt %371 : vector<1x32xf32>
    %373 = arith.mulf %32, %372 : vector<1x32xf32>
    %374 = arith.mulf %362, %373 : vector<1x32xf32>
    %375 = arith.subf %33, %374 : vector<1x32xf32>
    %376 = vector.broadcast %373 : vector<1x32xf32> to vector<4x32xf32>
    %377 = arith.mulf %358, %376 : vector<4x32xf32>
    %378 = vector.broadcast %375 : vector<1x32xf32> to vector<4x32xf32>
    %379 = arith.addf %377, %378 : vector<4x32xf32>
    %380 = arith.addf %379, %306 : vector<4x32xf32>
    %cst_183 = arith.constant 0.000000e+00 : f32
    %381 = vector.broadcast %cst_183 : f32 to vector<4x32xf32>
    %382 = arith.maximumf %380, %381 : vector<4x32xf32>
    %383 = vector.shape_cast %382 : vector<4x32xf32> to vector<1x4x32xf32>
    %384 = vector.extract_strided_slice %383 {offsets = [0, 0, 0], sizes = [1, 2, 32], strides = [1, 1, 1]} : vector<1x4x32xf32> to vector<1x2x32xf32>
    %385 = vector.shape_cast %384 : vector<1x2x32xf32> to vector<2x32xf32>
    %cst_184 = arith.constant dense<0.000000e+00> : vector<2x64xf32>
    %386 = tpu.matmul %385, %46, %cst_184 {dimension_numbers = #tpu.dot_dimension_numbers<[1], [0], [0], [1], [0, 0, 1, 1], [], []>} : vector<2x32xf32>, vector<32x64xf32>, vector<2x64xf32> -> vector<2x64xf32>
    %387 = vector.broadcast %47 : vector<1x64xf32> to vector<2x64xf32>
    %388 = arith.addf %386, %387 : vector<2x64xf32>
    %cst_185 = arith.constant dense<0.000000e+00> : vector<64xf32>
    %389 = vector.multi_reduction <add>, %388, %cst_185 [0] : vector<2x64xf32> to vector<64xf32>
    %390 = vector.shape_cast %389 : vector<64xf32> to vector<1x64xf32>
    %cst_186 = arith.constant 5.000000e-01 : f32
    %391 = vector.broadcast %cst_186 : f32 to vector<1x64xf32>
    %392 = arith.mulf %390, %391 : vector<1x64xf32>
    %393 = arith.mulf %388, %388 : vector<2x64xf32>
    %cst_187 = arith.constant dense<0.000000e+00> : vector<64xf32>
    %394 = vector.multi_reduction <add>, %393, %cst_187 [0] : vector<2x64xf32> to vector<64xf32>
    %395 = vector.shape_cast %394 : vector<64xf32> to vector<1x64xf32>
    %cst_188 = arith.constant 5.000000e-01 : f32
    %396 = vector.broadcast %cst_188 : f32 to vector<1x64xf32>
    %397 = arith.mulf %395, %396 : vector<1x64xf32>
    %398 = arith.mulf %392, %392 : vector<1x64xf32>
    %399 = arith.subf %397, %398 : vector<1x64xf32>
    %cst_189 = arith.constant 9.99999974E-6 : f32
    %400 = vector.broadcast %cst_189 : f32 to vector<1x64xf32>
    %401 = arith.addf %399, %400 : vector<1x64xf32>
    %402 = math.rsqrt %401 : vector<1x64xf32>
    %403 = arith.mulf %48, %402 : vector<1x64xf32>
    %404 = arith.mulf %392, %403 : vector<1x64xf32>
    %405 = arith.subf %49, %404 : vector<1x64xf32>
    %406 = vector.broadcast %403 : vector<1x64xf32> to vector<2x64xf32>
    %407 = arith.mulf %388, %406 : vector<2x64xf32>
    %408 = vector.broadcast %405 : vector<1x64xf32> to vector<2x64xf32>
    %409 = arith.addf %407, %408 : vector<2x64xf32>
    %cst_190 = arith.constant 0.000000e+00 : f32
    %410 = vector.broadcast %cst_190 : f32 to vector<2x32xf32>
    %cst_191 = arith.constant 0.000000e+00 : f32
    %411 = vector.broadcast %cst_191 : f32 to vector<2x32xf32>
    %412 = tpu.concatenate %410, %382, %411 in 0 : vector<2x32xf32>, vector<4x32xf32>, vector<2x32xf32> -> vector<8x32xf32>
    %413 = vector.extract_strided_slice %412 {offsets = [0, 0], sizes = [4, 32], strides = [1, 1]} : vector<8x32xf32> to vector<4x32xf32>
    %414 = vector.shape_cast %413 : vector<4x32xf32> to vector<1x4x32xf32>
    %415 = vector.extract_strided_slice %414 {offsets = [0, 0, 0], sizes = [1, 2, 32], strides = [1, 1, 1]} : vector<1x4x32xf32> to vector<1x2x32xf32>
    %416 = vector.shape_cast %415 : vector<1x2x32xf32> to vector<2x32xf32>
    %417 = vector.extract_strided_slice %412 {offsets = [2, 0], sizes = [4, 32], strides = [1, 1]} : vector<8x32xf32> to vector<4x32xf32>
    %418 = vector.shape_cast %417 : vector<4x32xf32> to vector<1x4x32xf32>
    %419 = vector.extract_strided_slice %418 {offsets = [0, 0, 0], sizes = [1, 2, 32], strides = [1, 1, 1]} : vector<1x4x32xf32> to vector<1x2x32xf32>
    %420 = vector.shape_cast %419 : vector<1x2x32xf32> to vector<2x32xf32>
    %421 = vector.extract_strided_slice %412 {offsets = [4, 0], sizes = [4, 32], strides = [1, 1]} : vector<8x32xf32> to vector<4x32xf32>
    %422 = vector.shape_cast %421 : vector<4x32xf32> to vector<1x4x32xf32>
    %423 = vector.extract_strided_slice %422 {offsets = [0, 0, 0], sizes = [1, 2, 32], strides = [1, 1, 1]} : vector<1x4x32xf32> to vector<1x2x32xf32>
    %424 = vector.shape_cast %423 : vector<1x2x32xf32> to vector<2x32xf32>
    %425 = tpu.concatenate %416, %420, %424 in 1 : vector<2x32xf32>, vector<2x32xf32>, vector<2x32xf32> -> vector<2x96xf32>
    %cst_192 = arith.constant dense<0.000000e+00> : vector<2x64xf32>
    %426 = tpu.matmul %425, %38, %cst_192 {dimension_numbers = #tpu.dot_dimension_numbers<[1], [0], [0], [1], [0, 0, 1, 1], [], []>} : vector<2x96xf32>, vector<96x64xf32>, vector<2x64xf32> -> vector<2x64xf32>
    %427 = vector.broadcast %39 : vector<1x64xf32> to vector<2x64xf32>
    %428 = arith.addf %426, %427 : vector<2x64xf32>
    %cst_193 = arith.constant dense<0.000000e+00> : vector<64xf32>
    %429 = vector.multi_reduction <add>, %428, %cst_193 [0] : vector<2x64xf32> to vector<64xf32>
    %430 = vector.shape_cast %429 : vector<64xf32> to vector<1x64xf32>
    %cst_194 = arith.constant 5.000000e-01 : f32
    %431 = vector.broadcast %cst_194 : f32 to vector<1x64xf32>
    %432 = arith.mulf %430, %431 : vector<1x64xf32>
    %433 = arith.mulf %428, %428 : vector<2x64xf32>
    %cst_195 = arith.constant dense<0.000000e+00> : vector<64xf32>
    %434 = vector.multi_reduction <add>, %433, %cst_195 [0] : vector<2x64xf32> to vector<64xf32>
    %435 = vector.shape_cast %434 : vector<64xf32> to vector<1x64xf32>
    %cst_196 = arith.constant 5.000000e-01 : f32
    %436 = vector.broadcast %cst_196 : f32 to vector<1x64xf32>
    %437 = arith.mulf %435, %436 : vector<1x64xf32>
    %438 = arith.mulf %432, %432 : vector<1x64xf32>
    %439 = arith.subf %437, %438 : vector<1x64xf32>
    %cst_197 = arith.constant 9.99999974E-6 : f32
    %440 = vector.broadcast %cst_197 : f32 to vector<1x64xf32>
    %441 = arith.addf %439, %440 : vector<1x64xf32>
    %442 = math.rsqrt %441 : vector<1x64xf32>
    %443 = arith.mulf %40, %442 : vector<1x64xf32>
    %444 = arith.mulf %432, %443 : vector<1x64xf32>
    %445 = arith.subf %41, %444 : vector<1x64xf32>
    %446 = vector.broadcast %443 : vector<1x64xf32> to vector<2x64xf32>
    %447 = arith.mulf %428, %446 : vector<2x64xf32>
    %448 = vector.broadcast %445 : vector<1x64xf32> to vector<2x64xf32>
    %449 = arith.addf %447, %448 : vector<2x64xf32>
    %cst_198 = arith.constant 0.000000e+00 : f32
    %450 = vector.broadcast %cst_198 : f32 to vector<2x64xf32>
    %451 = arith.maximumf %449, %450 : vector<2x64xf32>
    %cst_199 = arith.constant 0.000000e+00 : f32
    %452 = vector.broadcast %cst_199 : f32 to vector<2x64xf32>
    %cst_200 = arith.constant 0.000000e+00 : f32
    %453 = vector.broadcast %cst_200 : f32 to vector<2x64xf32>
    %454 = tpu.concatenate %452, %451, %453 in 0 : vector<2x64xf32>, vector<2x64xf32>, vector<2x64xf32> -> vector<6x64xf32>
    %455 = vector.extract_strided_slice %454 {offsets = [0, 0], sizes = [2, 64], strides = [1, 1]} : vector<6x64xf32> to vector<2x64xf32>
    %456 = vector.extract_strided_slice %454 {offsets = [2, 0], sizes = [2, 64], strides = [1, 1]} : vector<6x64xf32> to vector<2x64xf32>
    %457 = vector.extract_strided_slice %454 {offsets = [4, 0], sizes = [2, 64], strides = [1, 1]} : vector<6x64xf32> to vector<2x64xf32>
    %458 = tpu.concatenate %455, %456, %457 in 1 : vector<2x64xf32>, vector<2x64xf32>, vector<2x64xf32> -> vector<2x192xf32>
    %cst_201 = arith.constant dense<0.000000e+00> : vector<2x64xf32>
    %459 = tpu.matmul %458, %42, %cst_201 {dimension_numbers = #tpu.dot_dimension_numbers<[1], [0], [0], [1], [0, 0, 1, 1], [], []>} : vector<2x192xf32>, vector<192x64xf32>, vector<2x64xf32> -> vector<2x64xf32>
    %460 = vector.broadcast %43 : vector<1x64xf32> to vector<2x64xf32>
    %461 = arith.addf %459, %460 : vector<2x64xf32>
    %cst_202 = arith.constant dense<0.000000e+00> : vector<64xf32>
    %462 = vector.multi_reduction <add>, %461, %cst_202 [0] : vector<2x64xf32> to vector<64xf32>
    %463 = vector.shape_cast %462 : vector<64xf32> to vector<1x64xf32>
    %cst_203 = arith.constant 5.000000e-01 : f32
    %464 = vector.broadcast %cst_203 : f32 to vector<1x64xf32>
    %465 = arith.mulf %463, %464 : vector<1x64xf32>
    %466 = arith.mulf %461, %461 : vector<2x64xf32>
    %cst_204 = arith.constant dense<0.000000e+00> : vector<64xf32>
    %467 = vector.multi_reduction <add>, %466, %cst_204 [0] : vector<2x64xf32> to vector<64xf32>
    %468 = vector.shape_cast %467 : vector<64xf32> to vector<1x64xf32>
    %cst_205 = arith.constant 5.000000e-01 : f32
    %469 = vector.broadcast %cst_205 : f32 to vector<1x64xf32>
    %470 = arith.mulf %468, %469 : vector<1x64xf32>
    %471 = arith.mulf %465, %465 : vector<1x64xf32>
    %472 = arith.subf %470, %471 : vector<1x64xf32>
    %cst_206 = arith.constant 9.99999974E-6 : f32
    %473 = vector.broadcast %cst_206 : f32 to vector<1x64xf32>
    %474 = arith.addf %472, %473 : vector<1x64xf32>
    %475 = math.rsqrt %474 : vector<1x64xf32>
    %476 = arith.mulf %44, %475 : vector<1x64xf32>
    %477 = arith.mulf %465, %476 : vector<1x64xf32>
    %478 = arith.subf %45, %477 : vector<1x64xf32>
    %479 = vector.broadcast %476 : vector<1x64xf32> to vector<2x64xf32>
    %480 = arith.mulf %461, %479 : vector<2x64xf32>
    %481 = vector.broadcast %478 : vector<1x64xf32> to vector<2x64xf32>
    %482 = arith.addf %480, %481 : vector<2x64xf32>
    %483 = arith.addf %482, %409 : vector<2x64xf32>
    %cst_207 = arith.constant 0.000000e+00 : f32
    %484 = vector.broadcast %cst_207 : f32 to vector<2x64xf32>
    %485 = arith.maximumf %483, %484 : vector<2x64xf32>
    %486 = vector.shape_cast %485 : vector<2x64xf32> to vector<1x2x64xf32>
    %cst_208 = arith.constant dense<0.000000e+00> : vector<2x64xf32>
    %487 = vector.multi_reduction <add>, %486, %cst_208 [0] : vector<1x2x64xf32> to vector<2x64xf32>
    %cst_209 = arith.constant 1.000000e+00 : f32
    %488 = vector.broadcast %cst_209 : f32 to vector<2x64xf32>
    %489 = arith.mulf %487, %488 : vector<2x64xf32>
    %c0_210 = arith.constant 0 : index
    %c0_211 = arith.constant 0 : index
    %490 = vector.load %arg56[%c0_210, %c0_211] : memref<2x64xf32, #tpu.memory_space<vmem>>, vector<2x64xf32>
    tpu.vector_store %arg56[%c0_210, %c0_211], %489 {strides = array<i32>} : memref<2x64xf32, #tpu.memory_space<vmem>>, vector<2x64xf32>,
    %cst_212 = arith.constant dense<0.000000e+00> : vector<2x10xf32>
    %491 = tpu.matmul %489, %50, %cst_212 {dimension_numbers = #tpu.dot_dimension_numbers<[1], [0], [0], [1], [0, 0, 1, 1], [], []>} : vector<2x64xf32>, vector<64x10xf32>, vector<2x10xf32> -> vector<2x10xf32>
    %492 = vector.broadcast %51 : vector<1x10xf32> to vector<2x10xf32>
    %493 = arith.addf %491, %492 : vector<2x10xf32>
    %c0_213 = arith.constant 0 : index
    %c0_214 = arith.constant 0 : index
    %494 = vector.load %arg55[%c0_213, %c0_214] : memref<2x10xf32, #tpu.memory_space<vmem>>, vector<2x10xf32>
    tpu.vector_store %arg55[%c0_213, %c0_214], %493 {strides = array<i32>} : memref<2x10xf32, #tpu.memory_space<vmem>>, vector<2x10xf32>,
    %cst_215 = arith.constant dense<0.000000e+00> : vector<2x7xf32>
    %495 = tpu.matmul %489, %52, %cst_215 {dimension_numbers = #tpu.dot_dimension_numbers<[1], [0], [0], [1], [0, 0, 1, 1], [], []>} : vector<2x64xf32>, vector<64x7xf32>, vector<2x7xf32> -> vector<2x7xf32>
    %496 = vector.broadcast %53 : vector<1x7xf32> to vector<2x7xf32>
    %497 = arith.addf %495, %496 : vector<2x7xf32>
    %c0_216 = arith.constant 0 : index
    %c0_217 = arith.constant 0 : index
    %498 = vector.load %arg54[%c0_216, %c0_217] : memref<2x7xf32, #tpu.memory_space<vmem>>, vector<2x7xf32>
    tpu.vector_store %arg54[%c0_216, %c0_217], %497 {strides = array<i32>} : memref<2x7xf32, #tpu.memory_space<vmem>>, vector<2x7xf32>,
    return
  }
}

</mosaic_0001>

<bundles_post_ra>
// kernel: tpu_custom_call.1
= control target key start
LH: loop header
LB: loop body
LE: loop exit
PB: predicated region body
PF: predicated region fallthrough
CT: control target
= control target key end

     0   :  { %s2403_s6 = smov 1   ;;  %s2404_s10 = smov 2   ;;  %s3196_s0 = inlined_call_operand.smem [shape: u32[57], index: -1, kind: input, shape index: {}] }
   0x1   :  { %s2480_s5 = sld [smem:[%s3196_s0]]   ;;  %s2405_s14 = smov 3  }
   0x2   :  { %s2485_s9 = sld [smem:[%s3196_s0 + %s2403_s6]]   ;;  %s2406_s18 = smov 4  }
   0x3   :  { %s2490_s13 = sld [smem:[%s3196_s0 + %s2404_s10]]   ;;  %s2407_s22 = smov 5  }
   0x4   :  { %s2495_s17 = sld [smem:[%s3196_s0 + %s2405_s14]]   ;;  %s2408_s26 = smov 6  }
   0x5   :  { %s2500_s21 = sld [smem:[%s3196_s0 + %s2406_s18]]   ;;  %s2409_s30 = smov 7  }
   0x6   :  { %s2505_s25 = sld [smem:[%s3196_s0 + %s2407_s22]]   ;;  %s2410_s4 = smov 8  }
   0x7   :  { %s2510_s29 = sld [smem:[%s3196_s0 + %s2408_s26]]   ;;  %s2411_s10 = smov 9  }
   0x8   :  { %s2515_s3 = sld [smem:[%s3196_s0 + %s2409_s30]]   ;;  %s2412_s15 = smov 10  }
   0x9   :  { %s2520_s8 = sld [smem:[%s3196_s0 + %s2410_s4]]   ;;  %s2413_s20 = smov 11  }
   0xa   :  { %s2525_s14 = sld [smem:[%s3196_s0 + %s2411_s10]]   ;;  %s2414_s26 = smov 12  }
   0xb   :  { %s2530_s19 = sld [smem:[%s3196_s0 + %s2412_s15]]   ;;  %s2415_s1 = smov 13  }
   0xc   :  { %s2535_s24 = sld [smem:[%s3196_s0 + %s2413_s20]]   ;;  %s2416_s7 = smov 14  }
   0xd   :  { %s2540_s30 = sld [smem:[%s3196_s0 + %s2414_s26]]   ;;  %s2417_s15 = smov 15  }
   0xe   :  { %s2545_s6 = sld [smem:[%s3196_s0 + %s2415_s1]]   ;;  %s2418_s22 = smov 16  }
   0xf   :  { %s2550_s12 = sld [smem:[%s3196_s0 + %s2416_s7]]   ;;  %s2419_s28 = smov 17  }
  0x10   :  { %s2555_s20 = sld [smem:[%s3196_s0 + %s2417_s15]]   ;;  %s2420_s7 = smov 18  }
  0x11   :  { %s2560_s27 = sld [smem:[%s3196_s0 + %s2418_s22]]   ;;  %s2421_s15 = smov 19  }
  0x12   :  { %s2565_s4 = sld [smem:[%s3196_s0 + %s2419_s28]]   ;;  %s2422_s22 = smov 20  }
  0x13   :  { %3207 = sst [smem:[#allocation16_spill]] %s2540_s30  ;;  %s2423_s28 = smov 21  }
  0x14   :  { %3208 = sst [smem:[#allocation17_spill]] %s2545_s6  ;;  %s2454_s23 = smov 52  }
  0x15   :  { %3209 = sst [smem:[#allocation18_spill]] %s2550_s12  ;;  %s2455_s1 = smov 53  }
  0x16   :  { %3210 = sst [smem:[#allocation19_spill]] %s2555_s20  ;;  %s2456_s10 = smov 54  }
  0x17   :  { %3211 = sst [smem:[#allocation20_spill]] %s2560_s27  ;;  %s2457_s16 = smov 55  }
  0x18   :  { %3212 = sst [smem:[#allocation21_spill]] %s2565_s4 }
  0x19   :  { %s2570_s12 = sld [smem:[%s3196_s0 + %s2420_s7]]   ;;  %s2424_s7 = smov 22  }
  0x1a   :  { %s2575_s20 = sld [smem:[%s3196_s0 + %s2421_s15]]   ;;  %s2425_s15 = smov 23  }
  0x1b   :  { %s2580_s27 = sld [smem:[%s3196_s0 + %s2422_s22]]   ;;  %s2426_s22 = smov 24  }
  0x1c   :  { %s2585_s4 = sld [smem:[%s3196_s0 + %s2423_s28]]   ;;  %s2427_s28 = smov 25  }
  0x1d   :  { %s2743_s30 = sld [smem:[%s3196_s0 + %s2455_s1]]  }
  0x1f   :  { %3213 = sst [smem:[#allocation22_spill]] %s2570_s12 }
  0x20   :  { %3214 = sst [smem:[#allocation23_spill]] %s2575_s20 }
  0x21   :  { %3215 = sst [smem:[#allocation24_spill]] %s2580_s27 }
  0x22   :  { %3216 = sst [smem:[#allocation25_spill]] %s2585_s4 }
  0x23   :  { %s2590_s12 = sld [smem:[%s3196_s0 + %s2424_s7]]   ;;  %s2428_s7 = smov 26  }
  0x24   :  { %s2595_s20 = sld [smem:[%s3196_s0 + %s2425_s15]]   ;;  %s2429_s15 = smov 27  }
  0x25   :  { %s2600_s27 = sld [smem:[%s3196_s0 + %s2426_s22]]   ;;  %s2430_s22 = smov 28  }
  0x26   :  { %s2605_s4 = sld [smem:[%s3196_s0 + %s2427_s28]]   ;;  %s2431_s28 = smov 29  }
  0x27   :  { %s2610_s6 = sld [smem:[%s3196_s0 + %s2428_s7]]   ;;  %s2432_s7 = smov 30  }
  0x29   :  { %3217 = sst [smem:[#allocation26_spill]] %s2590_s12 }
  0x2a   :  { %3218 = sst [smem:[#allocation27_spill]] %s2595_s20 }
  0x2b   :  { %3219 = sst [smem:[#allocation28_spill]] %s2600_s27 }
  0x2c   :  { %3220 = sst [smem:[#allocation29_spill]] %s2605_s4 }
  0x2d   :  { %3221 = sst [smem:[#allocation30_spill]] %s2610_s6 }
  0x2e   :  { %s2615_s20 = sld [smem:[%s3196_s0 + %s2429_s15]]   ;;  %s2433_s15 = smov 31  }
  0x2f   :  { %s2620_s27 = sld [smem:[%s3196_s0 + %s2430_s22]]   ;;  %s2434_s22 = smov 32  }
  0x30   :  { %s2625_s4 = sld [smem:[%s3196_s0 + %s2431_s28]]   ;;  %s2435_s28 = smov 33  }
  0x31   :  { %s2630_s6 = sld [smem:[%s3196_s0 + %s2432_s7]]   ;;  %s2436_s7 = smov 34  }
  0x32   :  { %s2753_s12 = sld [smem:[%s3196_s0 + %s2457_s16]]  }
  0x34   :  { %3222 = sst [smem:[#allocation31_spill]] %s2615_s20 }
  0x35   :  { %3223 = sst [smem:[#allocation32_spill]] %s2620_s27 }
  0x36   :  { %3224 = sst [smem:[#allocation33_spill]] %s2625_s4 }
  0x37   :  { %3225 = sst [smem:[#allocation34_spill]] %s2630_s6 }
  0x38   :  { %s2635_s20 = sld [smem:[%s3196_s0 + %s2433_s15]]   ;;  %s2437_s15 = smov 35  }
  0x39   :  { %s2640_s27 = sld [smem:[%s3196_s0 + %s2434_s22]]   ;;  %s2438_s22 = smov 36  }
  0x3a   :  { %s2645_s4 = sld [smem:[%s3196_s0 + %s2435_s28]]   ;;  %s2439_s28 = smov 37  }
  0x3b   :  { %s2650_s6 = sld [smem:[%s3196_s0 + %s2436_s7]]   ;;  %s2440_s7 = smov 38  }
  0x3e   :  { %3226 = sst [smem:[#allocation35_spill]] %s2635_s20 }
  0x3f   :  { %3227 = sst [smem:[#allocation36_spill]] %s2640_s27 }
  0x40   :  { %3228 = sst [smem:[#allocation37_spill]] %s2645_s4 }
  0x41   :  { %3229 = sst [smem:[#allocation38_spill]] %s2650_s6 }
  0x42   :  { %s2655_s20 = sld [smem:[%s3196_s0 + %s2437_s15]]   ;;  %s2441_s15 = smov 39  }
  0x43   :  { %s2660_s27 = sld [smem:[%s3196_s0 + %s2438_s22]]   ;;  %s2442_s22 = smov 40  }
  0x44   :  { %s2665_s4 = sld [smem:[%s3196_s0 + %s2439_s28]]   ;;  %s2443_s28 = smov 41  }
  0x45   :  { %s2670_s6 = sld [smem:[%s3196_s0 + %s2440_s7]]   ;;  %s2444_s7 = smov 42  }
  0x48   :  { %3230 = sst [smem:[#allocation39_spill]] %s2655_s20 }
  0x49   :  { %3231 = sst [smem:[#allocation40_spill]] %s2660_s27 }
  0x4a   :  { %3232 = sst [smem:[#allocation41_spill]] %s2665_s4 }
  0x4b   :  { %3233 = sst [smem:[#allocation42_spill]] %s2670_s6 }
  0x4c   :  { %s2675_s20 = sld [smem:[%s3196_s0 + %s2441_s15]]   ;;  %s2445_s15 = smov 43  }
  0x4d   :  { %s2680_s27 = sld [smem:[%s3196_s0 + %s2442_s22]]   ;;  %s2446_s22 = smov 44  }
  0x4e   :  { %s2685_s4 = sld [smem:[%s3196_s0 + %s2443_s28]]   ;;  %s2447_s28 = smov 45  }
  0x4f   :  { %s2690_s6 = sld [smem:[%s3196_s0 + %s2444_s7]]   ;;  %s2448_s7 = smov 46  }
  0x52   :  { %3234 = sst [smem:[#allocation43_spill]] %s2675_s20 }
  0x53   :  { %3235 = sst [smem:[#allocation44_spill]] %s2680_s27 }
  0x54   :  { %3236 = sst [smem:[#allocation45_spill]] %s2685_s4 }
  0x55   :  { %3237 = sst [smem:[#allocation46_spill]] %s2690_s6 }
  0x56   :  { %s2695_s20 = sld [smem:[%s3196_s0 + %s2445_s15]]   ;;  %s2449_s15 = smov 47  }
  0x57   :  { %s2700_s27 = sld [smem:[%s3196_s0 + %s2446_s22]]   ;;  %s2450_s22 = smov 48  }
  0x58   :  { %s2705_s4 = sld [smem:[%s3196_s0 + %s2447_s28]]   ;;  %s2451_s28 = smov 49  }
  0x59   :  { %s2710_s6 = sld [smem:[%s3196_s0 + %s2448_s7]]   ;;  %s2452_s7 = smov 50  }
  0x5c   :  { %3238 = sst [smem:[#allocation47_spill]] %s2695_s20 }
  0x5d   :  { %3239 = sst [smem:[#allocation48_spill]] %s2700_s27 }
  0x5e   :  { %3240 = sst [smem:[#allocation49_spill]] %s2705_s4 }
  0x5f   :  { %3241 = sst [smem:[#allocation50_spill]] %s2710_s6 }
  0x60   :  { %s2715_s20 = sld [smem:[%s3196_s0 + %s2449_s15]]   ;;  %s2453_s15 = smov 51  }
  0x61   :  { %s2720_s27 = sld [smem:[%s3196_s0 + %s2450_s22]]  }
  0x62   :  { %s2725_s4 = sld [smem:[%s3196_s0 + %s2451_s28]]  }
  0x63   :  { %s2730_s6 = sld [smem:[%s3196_s0 + %s2452_s7]]  }
  0x66   :  { %3242 = sst [smem:[#allocation51_spill]] %s2715_s20 }
  0x67   :  { %3243 = sst [smem:[#allocation52_spill]] %s2720_s27 }
  0x68   :  { %s2095_s20 = sld [smem:[%s3196_s0 + %s2453_s15]]  }
  0x69   :  { %3244 = sst [smem:[#allocation53_spill]] %s2730_s6 }
  0x6a   :  { %s2738_s27 = sld [smem:[%s3196_s0 + %s2454_s23]]   ;;  %s2458_s23 = smov 56  }
  0x6b   :  { %s2748_s6 = sld [smem:[%s3196_s0 + %s2456_s10]]  }
  0x70   :  { %3245 = sst [smem:[#allocation54_spill]] %s2738_s27 }
  0x71   :  { %s2758_s27 = sld [smem:[%s3196_s0 + %s2458_s23]]  }
  0x72   :  { %119 = vsyncpa [#allocation3], 0 }
  0x73   :  { %120 = vsyncpa [#allocation6], 0 }
  0x74   :  { %121 = vsyncpa [#allocation4], 0  ;;  %s239_s1 = sshll.u32 %s2095_s20, 4  ;;  %s240_s1 = int_to_ptr.hbm [resolvable:$true] %s239_s1 }
  0x75   :  { %122 = vsyncpa [#allocation10], 0  ;;  %s2459_s28 = smov [#allocation5]   ;;  %s226_s10 = sshll.u32 %s2725_s4, 4  ;;  %s227_s10 = int_to_ptr.hbm [resolvable:$true] %s226_s10 }
  0x76   :  { %s241_s2 = sshll.u32 %s2459_s28, 4  ;;  %s2251_s7 = sshra.s32 %s240_s1, 4  ;;  %s242_s2 = int_to_ptr.vmem [resolvable:$true] %s241_s2  ;;  %s2252_s7 = int_to_ptr.hbm [resolvable:$true] %s2251_s7 }
  0x77   :  { %s2253_s11 = scalar_lea.hbm %s2252_s7, 1  ;;  %s2255_s16 = scalar_lea.hbm %s2095_s20, 1 }
  0x78   :  { %p2254_p0 = scmp.ne.s32.totalorder %s2252_s7, %s2253_s11  ;;  %p2256_p1 = scmp.lt.s32.totalorder %s2252_s7, %s2095_s20 }
  0x79   :  { %p2257_p2 = scmp.lt.s32.totalorder %s2255_s16, %s2253_s11 }
  0x7b   :  { %p2258_p3 = por %p2257_p2, %p2256_p1 }
  0x7d   :  { %p2259_p4 = pnand %p2258_p3, %p2254_p0 }
  0x7f   :  { %2262 = shalt.err (!%p2259_p4)
}
  0x80   :  { %244 = dma.hbm_to_vmem [thread:$0]  %s240_s1, 16, %s242_s2, [#allocation6]  }
  0x81   :  { %s2460_s0 = smov [#allocation2]   ;;  %s252_s18 = sshll.u32 %s2743_s30, 4  ;;  %s253_s18 = int_to_ptr.hbm [resolvable:$true] %s252_s18 }
  0x82   :  { %s228_s15 = sshll.u32 %s2460_s0, 4  ;;  %s2275_s23 = sshra.s32 %s227_s10, 4  ;;  %s229_s15 = int_to_ptr.vmem [resolvable:$true] %s228_s15  ;;  %s2276_s23 = int_to_ptr.hbm [resolvable:$true] %s2275_s23 }
  0x83   :  { %s2277_s22 = scalar_lea.hbm %s2276_s23, 1  ;;  %s2279_s26 = scalar_lea.hbm %s2725_s4, 1 }
  0x84   :  { %p2278_p5 = scmp.ne.s32.totalorder %s2276_s23, %s2277_s22  ;;  %p2280_p6 = scmp.lt.s32.totalorder %s2276_s23, %s2725_s4 }
  0x85   :  { %p2281_p7 = scmp.lt.s32.totalorder %s2279_s26, %s2277_s22 }
  0x87   :  { %p2282_p8 = por %p2281_p7, %p2280_p6 }
  0x89   :  { %p2283_p9 = pnand %p2282_p8, %p2278_p5 }
  0x8b   :  { %2286 = shalt.err (!%p2283_p9)
}
  0x8c   :  { %231 = dma.hbm_to_vmem [thread:$0]  %s227_s10, 16, %s229_s15, [#allocation3]  }
  0x8d   :  { %s2461_s20 = smov [#allocation7]   ;;  %s2299_s28 = sshra.s32 %s253_s18, 4  ;;  %s2300_s28 = int_to_ptr.hbm [resolvable:$true] %s2299_s28 }
  0x8e   :  { %s254_s1 = sshll.u32 %s2461_s20, 4  ;;  %s2301_s2 = scalar_lea.hbm %s2300_s28, 1  ;;  %s255_s1 = int_to_ptr.vmem [resolvable:$true] %s254_s1 }
  0x8f   :  { %p2302_p10 = scmp.ne.s32.totalorder %s2300_s28, %s2301_s2  ;;  %s2303_s7 = scalar_lea.hbm %s2743_s30, 1 }
  0x90   :  { %p2304_p11 = scmp.lt.s32.totalorder %s2300_s28, %s2743_s30  ;;  %p2305_p12 = scmp.lt.s32.totalorder %s2303_s7, %s2301_s2 }
  0x92   :  { %p2306_p13 = por %p2305_p12, %p2304_p11 }
  0x94   :  { %p2307_p0 = pnand %p2306_p13, %p2302_p10 }
  0x96   :  { %2310 = shalt.err (!%p2307_p0)
}
  0x97   :  { %257 = dma.hbm_to_vmem [thread:$0]  %s253_s18, 16, %s255_s1, [#allocation6]  }
  0x98   :  { %2395 = dma.done.wait [#allocation3], 16  }
  0x99   :  { %2396 = vsyncadd [#allocation3], 4294967280 }
  0x9a   :  { %2397 = dma.done.wait [#allocation6], 32  }
  0x9b   :  { %2398 = vsyncadd [#allocation6], 4294967264  ;;  %v2462_v0 = vmov 0   ;;  %v270_v1 = vld [vmem:[%s2480_s5] sm:$0xff]  ;;  %v272_v2 = vld [vmem:[%s2480_s5 + $0x10] sm:$0xff]  ;;  %v438_v37 = vlaneseq  ;;  %v2463_v41 = vmov 1.0  }
  0x9c   :  { %2211 = vset.pattern.permute.xlu0 %v2462_v0  ;;  %2212 = vset.pattern.permute.xlu1 %v2462_v0  ;;  %v289_v3 = vld [vmem:[%s2485_s9 + $0x78] sm:$0xff]  ;;  %v288_v5 = vld [vmem:[%s2485_s9 + $0x70] sm:$0xff]  ;;  %v287_v7 = vld [vmem:[%s2485_s9 + $0x68] sm:$0xff]  ;;  %vm539_vm8 = vcmask 1041408   ;;  %vm556_vm9 = vcmask 1045504   ;;  %vm578_vm10 = vcmask 1043456  }
  0x9d   :  { %442 = vperm.xlu0 %2211, %v270_v1   ;;  %448 = vperm.xlu1 %2212, %v272_v2   ;;  %v305_v4 = vld [vmem:[%s2485_s9 + $0xf8] sm:$0xff]  ;;  %v304_v6 = vld [vmem:[%s2485_s9 + $0xf0] sm:$0xff]  ;;  %v303_v8 = vld [vmem:[%s2485_s9 + $0xe8] sm:$0xff]  ;;  %v439_v38 = vand.u32 127, %v438_v37  ;;  %vm600_vm11 = vcmask 31744   ;;  %vm605_vm12 = vcmask 64512  }
  0x9e   :  { %477 = vmatpush.msra.mxu0 %v289_v3  ;;  %506 = vmatpush.msra.mxu1 %v305_v4  ;;  %v286_v9 = vld [vmem:[%s2485_s9 + $0x60] sm:$0xff]  ;;  %v271_v11 = vld [vmem:[%s2480_s5 + $0x8] sm:$0xff]  ;;  %v273_v12 = vld [vmem:[%s2480_s5 + $0x18] sm:$0xff]  ;;  %s2464_s5 = smov 4   ;;  %vm613_vm13 = vcmask 97280   ;;  %s3256_s30 = sld [smem:[#allocation27_spill]] }
  0x9f   :  { %v302_v10 = vld [vmem:[%s2485_s9 + $0xe0] sm:$0xff]  ;;  %v285_v13 = vld [vmem:[%s2485_s9 + $0x58] sm:$0xff]  ;;  %v284_v15 = vld [vmem:[%s2485_s9 + $0x50] sm:$0xff]  ;;  %v440_v39 = vadd.s32 128, %v439_v38  ;;  %s3257_s4 = sld [smem:[#allocation23_spill]]  ;;  %s2468_s1 = smov 64  }
  0xa0   :  { %478 = vmatpush.msra.mxu0 %v288_v5  ;;  %507 = vmatpush.msra.mxu1 %v304_v6  ;;  %v301_v14 = vld [vmem:[%s2485_s9 + $0xd8] sm:$0xff]  ;;  %v300_v16 = vld [vmem:[%s2485_s9 + $0xd0] sm:$0xff]  ;;  %v283_v17 = vld [vmem:[%s2485_s9 + $0x48] sm:$0xff]  ;;  %s3258_s10 = sld [smem:[#allocation38_spill]] }
  0xa1   :  { %v299_v18 = vld [vmem:[%s2485_s9 + $0xc8] sm:$0xff]  ;;  %v282_v19 = vld [vmem:[%s2485_s9 + $0x40] sm:$0xff]  ;;  %v281_v21 = vld [vmem:[%s2485_s9 + $0x38] sm:$0xff]  ;;  %s3259_s11 = sld [smem:[#allocation28_spill]] }
  0xa2   :  { %479 = vmatpush.msra.mxu0 %v287_v7  ;;  %508 = vmatpush.msra.mxu1 %v303_v8  ;;  %v298_v20 = vld [vmem:[%s2485_s9 + $0xc0] sm:$0xff]  ;;  %v297_v22 = vld [vmem:[%s2485_s9 + $0xb8] sm:$0xff]  ;;  %v280_v23 = vld [vmem:[%s2485_s9 + $0x30] sm:$0xff]  ;;  %s3260_s16 = sld [smem:[#allocation29_spill]] }
  0xa3   :  { %v296_v24 = vld [vmem:[%s2485_s9 + $0xb0] sm:$0xff]  ;;  %v279_v25 = vld [vmem:[%s2485_s9 + $0x28] sm:$0xff]  ;;  %v278_v27 = vld [vmem:[%s2485_s9 + $0x20] sm:$0xff]  ;;  %s3261_s0 = sld [smem:[#allocation24_spill]] }
  0xa4   :  { %480 = vmatpush.msra.mxu0 %v286_v9  ;;  %509 = vmatpush.msra.mxu1 %v302_v10  ;;  %v295_v26 = vld [vmem:[%s2485_s9 + $0xa8] sm:$0xff]  ;;  %v294_v28 = vld [vmem:[%s2485_s9 + $0xa0] sm:$0xff]  ;;  %v277_v29 = vld [vmem:[%s2485_s9 + $0x18] sm:$0xff]  ;;  %s3262_s15 = sld [smem:[#allocation25_spill]] }
  0xa5   :  { %445 = vperm.xlu0 %2211, %v271_v11   ;;  %451 = vperm.xlu1 %2212, %v273_v12   ;;  %v293_v30 = vld [vmem:[%s2485_s9 + $0x98] sm:$0xff]  ;;  %v276_v31 = vld [vmem:[%s2485_s9 + $0x10] sm:$0xff]  ;;  %v275_v33 = vld [vmem:[%s2485_s9 + $0x8] sm:$0xff]  ;;  %s3263_s18 = sld [smem:[#allocation30_spill]] }
  0xa6   :  { %481 = vmatpush.msra.mxu0 %v285_v13  ;;  %510 = vmatpush.msra.mxu1 %v301_v14  ;;  %v292_v32 = vld [vmem:[%s2485_s9 + $0x90] sm:$0xff]  ;;  %v291_v34 = vld [vmem:[%s2485_s9 + $0x88] sm:$0xff]  ;;  %v274_v35 = vld [vmem:[%s2485_s9] sm:$0xff]  ;;  %s3264_s23 = sld [smem:[#allocation31_spill]] }
  0xa7   :  { %v290_v36 = vld [vmem:[%s2485_s9 + $0x80] sm:$0xff]  ;;  %s2465_s9 = smov 8   ;;  %s3265_s22 = sld [smem:[#allocation34_spill]] }
  0xa8   :  { %482 = vmatpush.msra.mxu0 %v284_v15  ;;  %511 = vmatpush.msra.mxu1 %v300_v16  ;;  %s3266_s26 = sld [smem:[#allocation32_spill]] }
  0xa9   :  { %s3267_s20 = sld [smem:[#allocation33_spill]] }
  0xaa   :  { %483 = vmatpush.msra.mxu0 %v283_v17  ;;  %512 = vmatpush.msra.mxu1 %v299_v18  ;;  %s3268_s28 = sld [smem:[#allocation39_spill]] }
  0xab   :  { %s3269_s2 = sld [smem:[#allocation35_spill]] }
  0xac   :  { %484 = vmatpush.msra.mxu0 %v282_v19  ;;  %513 = vmatpush.msra.mxu1 %v298_v20  ;;  %v307_v20 = vld [vmem:[%s2490_s13 + $0x8] sm:$0xf]  ;;  %s3270_s7 = sld [smem:[#allocation50_spill]] }
  0xad   :  { %2117 = vmatpush.msk.msra.mxu2 %vm578_vm10, %v307_v20  ;;  %2140 = vmatpush.msk.msra.mxu3 %vm578_vm10, %v307_v20 }
  0xae   :  { %485 = vmatpush.msra.mxu0 %v281_v21  ;;  %514 = vmatpush.msra.mxu1 %v297_v22  ;;  %v306_v21 = vld [vmem:[%s2490_s13] sm:$0xff]  ;;  %s2466_s13 = smov 16  }
  0xaf   :  { %644 = vmatpush.msra.mxu2 %v306_v21  ;;  %2141 = vmatpush.msra.mxu3 %v306_v21 }
  0xb0   :  { %486 = vmatpush.msra.mxu0 %v280_v23  ;;  %515 = vmatpush.msra.mxu1 %v296_v24 }
  0xb2   :  { %487 = vmatpush.msra.mxu0 %v279_v25  ;;  %516 = vmatpush.msra.mxu1 %v295_v26 }
  0xb4   :  { %488 = vmatpush.msra.mxu0 %v278_v27  ;;  %517 = vmatpush.msra.mxu1 %v294_v28 }
  0xb6   :  { %489 = vmatpush.msra.mxu0 %v277_v29  ;;  %518 = vmatpush.msra.mxu1 %v293_v30 }
  0xb8   :  { %490 = vmatpush.msra.mxu0 %v276_v31  ;;  %519 = vmatpush.msra.mxu1 %v292_v32 }
  0xba   :  { %491 = vmatpush.msra.mxu0 %v275_v33  ;;  %520 = vmatpush.msra.mxu1 %v291_v34 }
  0xbc   :  { %492 = vmatpush.msra.mxu0 %v274_v35  ;;  %521 = vmatpush.msra.mxu1 %v290_v36 }
 0x10f   :  { %v443_v40 = vpop.permute.xlu0 %442  ;;  %v449_v43 = vpop.permute.xlu1 %448 }
 0x110   :  { %vm453_vm0 = vcmp.eq.s32.totalorder %v439_v38, %v443_v40  ;;  %vm454_vm1 = vcmp.eq.s32.totalorder %v440_v39, %v443_v40  ;;  %vm457_vm4 = vcmp.eq.s32.totalorder %v439_v38, %v449_v43  ;;  %vm458_vm5 = vcmp.eq.s32.totalorder %v440_v39, %v449_v43 }
 0x111   :  { %2109 = vmatmul.msk.f32.vlgmr.msra.gmra.mxu0 %vm453_vm0, %v2463_v41  ;;  %2113 = vmatmul.msk.f32.vlgmr.msra.gmra.mxu1 %vm454_vm1, %v2463_v41  ;;  %vm752_vm1 = vcmask 1045508  }
 0x117   :  { %v446_v42 = vpop.permute.xlu0 %445  ;;  %v452_v44 = vpop.permute.xlu1 %451 }
 0x118   :  { %vm455_vm2 = vcmp.eq.s32.totalorder %v439_v38, %v446_v42  ;;  %vm456_vm3 = vcmp.eq.s32.totalorder %v440_v39, %v446_v42  ;;  %vm459_vm6 = vcmp.eq.s32.totalorder %v439_v38, %v452_v44  ;;  %vm460_vm7 = vcmp.eq.s32.totalorder %v440_v39, %v452_v44  ;;  %v2213_v39 = vld [vmem:[%s2495_s17] ss:$0 sm:$0xff]  ;;  %s3248_s17 = sld [smem:[#allocation26_spill]] }
 0x119   :  { %2110 = vmatmul.msk.f32.gmra.mxu0 %vm455_vm2, %v2463_v41  ;;  %2114 = vmatmul.msk.f32.gmra.mxu1 %vm456_vm3, %v2463_v41  ;;  %vm2854_vm2 = vmor %vm539_vm8, %vm752_vm1  ;;  %vm888_vm3 = vcmask 130048   ;;  %vm1349_vm1 = vcmask 261120  }
 0x121   :  { %2111 = vmatmul.msk.f32.gmra.mxu0 %vm457_vm4, %v2463_v41  ;;  %2115 = vmatmul.msk.f32.gmra.mxu1 %vm458_vm5, %v2463_v41  ;;  %vm894_vm4 = vcmask 195584  }
 0x129   :  { %2112 = vmatmul.msk.f32.gmra.mxu0 %vm459_vm6, %v2463_v41  ;;  %2116 = vmatmul.msk.f32.gmra.mxu1 %vm460_vm7, %v2463_v41 }
 0x18e   :  { %v494_v45 = vpop.f32.mrf.mxu0  ;;  %v523_v46 = vpop.f32.mrf.mxu1 }
 0x18f   :  { %v524_v47 = vadd.f32 %v523_v46, %v494_v45 }
 0x191   :  { %v540_v48 = vrot.slane %v524_v47, 6 }
 0x193   :  { %v552_v52 = vsel %vm539_vm8, 0.0, %v540_v48 }
 0x194   :  { %v557_v55 = vrot.slane %v552_v52, 2  ;;  %v579_v0 = vrot.slane %v552_v52, 4 }
 0x196   :  { %v497_v49 = vpop.f32.mrf.mxu0  ;;  %v526_v50 = vpop.f32.mrf.mxu1 }
 0x197   :  { %v527_v51 = vadd.f32 %v526_v50, %v497_v49 }
 0x199   :  { %v541_v53 = vrot.slane %v527_v51, 6 }
 0x19b   :  { %v542_v54 = vsel %vm539_vm8, %v540_v48, %v541_v53 }
 0x19c   :  { %v558_v56 = vrot.slane %v542_v54, 2  ;;  %v580_v62 = vrot.slane %v542_v54, 4 }
 0x19e   :  { %v500_v57 = vpop.f32.mrf.mxu0  ;;  %v529_v58 = vpop.f32.mrf.mxu1  ;;  %v559_v59 = vsel %vm556_vm9, %v557_v55, %v558_v56  ;;  %v581_v5 = vsel %vm578_vm10, %v579_v0, %v580_v62 }
 0x19f   :  { %v530_v60 = vadd.f32 %v529_v58, %v500_v57  ;;  %566 = vrot.lane.b32.xlu2 %v559_v59, %s2464_s5 }
 0x1a1   :  { %v543_v61 = vrot.slane %v530_v60, 6 }
 0x1a3   :  { %v544_v63 = vsel %vm539_vm8, %v541_v53, %v543_v61 }
 0x1a4   :  { %v582_v1 = vrot.slane %v544_v63, 4  ;;  %v560_v2 = vrot.slane %v544_v63, 2 }
 0x1a6   :  { %v503_v3 = vpop.f32.mrf.mxu0  ;;  %v532_v4 = vpop.f32.mrf.mxu1  ;;  %v583_v6 = vsel %vm578_vm10, %v580_v62, %v582_v1  ;;  %v561_v7 = vsel %vm556_vm9, %v558_v56, %v560_v2 }
 0x1a7   :  { %v533_v8 = vadd.f32 %v532_v4, %v503_v3  ;;  %588 = vrot.lane.b32.xlu2 %v581_v5, %s2465_s9  ;;  %590 = vrot.lane.b32.xlu1 %v583_v6, %s2465_s9 }
 0x1a8   :  { %568 = vrot.lane.b32.xlu0 %v561_v7, %s2464_s5 }
 0x1a9   :  { %v545_v9 = vrot.slane %v533_v8, 6 }
 0x1ab   :  { %v546_v10 = vsel %vm539_vm8, %v543_v61, %v545_v9  ;;  %v553_v11 = vsel %vm539_vm8, %v545_v9, 0.0 }
 0x1ac   :  { %v564_v12 = vrot.slane %v553_v11, 2  ;;  %v584_v13 = vrot.slane %v546_v10, 4  ;;  %v562_v14 = vrot.slane %v546_v10, 2  ;;  %v586_v18 = vrot.slane %v553_v11, 4 }
 0x1ae   :  { %v585_v15 = vsel %vm578_vm10, %v582_v1, %v584_v13  ;;  %v565_v16 = vsel %vm556_vm9, %v562_v14, %v564_v12  ;;  %v563_v17 = vsel %vm556_vm9, %v560_v2, %v562_v14  ;;  %v587_v19 = vsel %vm578_vm10, %v584_v13, %v586_v18 }
 0x1af   :  { %572 = vrot.lane.b32.xlu1 %v565_v16, %s2464_s5  ;;  %570 = vrot.lane.b32.xlu2 %v563_v17, %s2464_s5  ;;  %s3271_s5 = sld [smem:[#allocation42_spill]] }
 0x1b0   :  { %592 = vrot.lane.b32.xlu0 %v585_v15, %s2465_s9 }
 0x1b7   :  { %594 = vrot.lane.b32.xlu2 %v587_v19, %s2465_s9 }
 0x1f9   :  { %v567_v22 = vpop.permute.xlu2 %566 }
 0x1fa   :  { %v601_v23 = vsel %vm600_vm11, %v552_v52, %v567_v22 }
 0x201   :  { %v589_v24 = vpop.permute.xlu2 %588 }
 0x202   :  { %v606_v25 = vsel %vm605_vm12, %v601_v23, %v589_v24  ;;  %v309_v23 = vld [vmem:[%s2500_s21] sm:$0x1]  ;;  %s3249_s21 = sld [smem:[#allocation16_spill]] }
 0x203   :  { %2118 = vmatmul.msk.f32.vlgmr.msra.gmra.mxu2 %vm613_vm13, %v606_v25 }
 0x209   :  { %v571_v26 = vpop.permute.xlu2 %570 }
 0x20a   :  { %v603_v32 = vsel %vm600_vm11, %v544_v63, %v571_v26 }
 0x211   :  { %v595_v33 = vpop.permute.xlu2 %594 }
 0x219   :  { %v591_v27 = vpop.permute.xlu1 %590 }
 0x21a   :  { %v569_v28 = vpop.permute.xlu0 %568 }
 0x21b   :  { %v602_v29 = vsel %vm600_vm11, %v542_v54, %v569_v28 }
 0x21c   :  { %v607_v30 = vsel %vm605_vm12, %v602_v29, %v591_v27  ;;  %v310_v27 = vld [vmem:[%s2505_s25] sm:$0x1]  ;;  %s3250_s25 = sld [smem:[#allocation17_spill]] }
 0x21d   :  { %2119 = vmatmul.msk.f32.gmra.mxu2 %vm613_vm13, %v607_v30 }
 0x221   :  { %v573_v31 = vpop.permute.xlu1 %572 }
 0x222   :  { %v593_v34 = vpop.permute.xlu0 %592  ;;  %v604_v35 = vsel %vm600_vm11, %v546_v10, %v573_v31 }
 0x223   :  { %v608_v36 = vsel %vm605_vm12, %v603_v32, %v593_v34  ;;  %v609_v37 = vsel %vm605_vm12, %v604_v35, %v595_v33 }
 0x224   :  { %2121 = vmatmul.msk.f32.vlgmr.msra.gmra.mxu3 %vm613_vm13, %v609_v37 }
 0x225   :  { %2120 = vmatmul.msk.f32.gmra.mxu2 %vm613_vm13, %v608_v36 }
 0x286   :  { %v646_v38 = vpop.f32.mrf.mxu2 }
 0x287   :  { %v647_v42 = vadd.f32 %v2213_v39, %v646_v38 }
 0x289   :  { %v672_v44 = vmul.f32 %v647_v42, %v647_v42  ;;  %v658_v49 = vsel %vm605_vm12, %v647_v42, 0.0 }
 0x28b   :  { %v676_v53 = vsel %vm605_vm12, %v672_v44, 0.0 }
 0x2a0   :  { %v649_v40 = vpop.f32.mrf.mxu2 }
 0x2a1   :  { %v650_v41 = vadd.f32 %v2213_v39, %v649_v40 }
 0x2a3   :  { %v673_v43 = vmul.f32 %v650_v41, %v650_v41  ;;  %v659_v45 = vsel %vm605_vm12, %v650_v41, 0.0 }
 0x2a4   :  { %v660_v52 = vadd.f32 %v659_v45, %v658_v49 }
 0x2a5   :  { %v677_v50 = vsel %vm605_vm12, %v673_v43, 0.0 }
 0x2a6   :  { %v678_v57 = vadd.f32 %v677_v50, %v676_v53 }
 0x2a7   :  { %v655_v46 = vpop.f32.mrf.mxu3 }
 0x2a8   :  { %v652_v47 = vpop.f32.mrf.mxu2  ;;  %v656_v48 = vadd.f32 %v2213_v39, %v655_v46 }
 0x2a9   :  { %v653_v51 = vadd.f32 %v2213_v39, %v652_v47 }
 0x2aa   :  { %v675_v56 = vmul.f32 %v656_v48, %v656_v48  ;;  %v663_v60 = vsel %vm605_vm12, %v656_v48, 0.0 }
 0x2ab   :  { %v661_v54 = vsel %vm605_vm12, %v653_v51, 0.0  ;;  %v674_v55 = vmul.f32 %v653_v51, %v653_v51 }
 0x2ac   :  { %v662_v58 = vadd.f32 %v661_v54, %v660_v52  ;;  %v681_v63 = vsel %vm605_vm12, %v675_v56, 0.0 }
 0x2ad   :  { %v679_v59 = vsel %vm605_vm12, %v674_v55, 0.0 }
 0x2ae   :  { %v680_v61 = vadd.f32 %v679_v59, %v678_v57  ;;  %v664_v62 = vadd.f32 %v663_v60, %v662_v58  ;;  %v345_v58 = vld [vmem:[%s3263_s18 + $0x18] sm:$0xff] }
 0x2b0   :  { %v665_v0 = vrot.slane %v664_v62, 4  ;;  %v682_v1 = vadd.f32 %v681_v63, %v680_v61 }
 0x2b2   :  { %v666_v2 = vadd.f32 %v665_v0, %v664_v62  ;;  %v683_v3 = vrot.slane %v682_v1, 4 }
 0x2b4   :  { %v667_v4 = vrot.slane %v666_v2, 2  ;;  %v684_v5 = vadd.f32 %v683_v3, %v682_v1 }
 0x2b6   :  { %v668_v6 = vadd.f32 %v667_v4, %v666_v2  ;;  %v685_v7 = vrot.slane %v684_v5, 2 }
 0x2b8   :  { %v669_v8 = vrot.slane %v668_v6, 1  ;;  %v686_v9 = vadd.f32 %v685_v7, %v684_v5 }
 0x2ba   :  { %v670_v10 = vadd.f32 %v669_v8, %v668_v6  ;;  %v687_v11 = vrot.slane %v686_v9, 1 }
 0x2bc   :  { %v671_v12 = vmul.f32 0.03125, %v670_v10  ;;  %v688_v13 = vadd.f32 %v687_v11, %v686_v9 }
 0x2be   :  { %v689_v14 = vmul.f32 0.03125, %v688_v13  ;;  %v690_v15 = vmul.f32 %v671_v12, %v671_v12 }
 0x2c0   :  { %v691_v16 = vsub.f32 %v689_v14, %v690_v15 }
 0x2c2   :  { %v692_v17 = vadd.f32 1e-05, %v691_v16 }
 0x2c4   :  { %2227 = vrsqrt.f32 %v692_v17  ;;  %vm699_vm15 = vweird.f32 %v692_v17 }
 0x2ca   :  { %v2228_v18 = vpop.eup %2227 }
 0x2cb   :  { %v694_v19 = vmul.f32 %v2228_v18, %v692_v17  ;;  %vm700_vm14 = vweird.f32 %v2228_v18 }
 0x2cc   :  { %vm701_vm0 = vmor %vm699_vm15, %vm700_vm14 }
 0x2cd   :  { %v695_v20 = vmul.f32 %v2228_v18, %v694_v19 }
 0x2cf   :  { %v696_v21 = vmul.f32 0.5, %v695_v20 }
 0x2d1   :  { %v697_v22 = vsub.f32 1.5, %v696_v21 }
 0x2d3   :  { %v698_v24 = vmul.f32 %v2228_v18, %v697_v22 }
 0x2d5   :  { %v702_v25 = vsel %vm701_vm0, %v2228_v18, %v698_v24 }
 0x2d6   :  { %v703_v26 = vmul.f32 %v702_v25, %v309_v23 }
 0x2d8   :  { %v704_v28 = vmul.f32 %v703_v26, %v671_v12  ;;  %v707_v29 = vperm.slane %v703_v26, 0 }
 0x2da   :  { %v705_v30 = vsub.f32 %v310_v27, %v704_v28  ;;  %v709_v31 = vmul.f32 %v707_v29, %v647_v42  ;;  %v710_v32 = vmul.f32 %v707_v29, %v650_v41  ;;  %v711_v33 = vmul.f32 %v707_v29, %v653_v51 }
 0x2db   :  { %v712_v34 = vmul.f32 %v707_v29, %v656_v48 }
 0x2dc   :  { %v714_v35 = vperm.slane %v705_v30, 0 }
 0x2de   :  { %v716_v36 = vadd.f32 %v714_v35, %v709_v31  ;;  %v717_v37 = vadd.f32 %v714_v35, %v710_v32  ;;  %v718_v38 = vadd.f32 %v714_v35, %v711_v33  ;;  %v719_v39 = vadd.f32 %v714_v35, %v712_v34 }
 0x2e0   :  { %v720_v40 = vmax.f32 %v716_v36, 0.0  ;;  %v721_v43 = vmax.f32 %v717_v37, 0.0  ;;  %v722_v44 = vmax.f32 %v718_v38, 0.0  ;;  %v723_v45 = vmax.f32 %v719_v39, 0.0 }
 0x2e2   :  { %v728_v46 = vrot.slane %v720_v40, 6  ;;  %v729_v47 = vrot.slane %v721_v43, 6  ;;  %v731_v49 = vrot.slane %v722_v44, 6  ;;  %v733_v50 = vrot.slane %v723_v45, 6 }
 0x2e4   :  { %v730_v52 = vsel %vm539_vm8, %v728_v46, %v729_v47  ;;  %v732_v41 = vsel %vm539_vm8, %v729_v47, %v731_v49  ;;  %v2849_v42 = vsel %vm539_vm8, %v731_v49, %v733_v50  ;;  %v740_v48 = vsel %vm539_vm8, -inf, %v728_v46 }
 0x2e5   :  { %v743_v51 = vrot.slane %v740_v48, 4  ;;  %v744_v53 = vrot.slane %v730_v52, 4  ;;  %v745_v54 = vrot.slane %v732_v41, 4  ;;  %v746_v55 = vrot.slane %v2849_v42, 4 }
 0x2e6   :  { %v759_v56 = vrot.slane %v730_v52, 6  ;;  %v765_v57 = vrot.slane %v732_v41, 6  ;;  %v771_v62 = vrot.slane %v2849_v42, 6  ;;  %v2122_v63 = vrot.slane %v740_v48, 10 }
 0x2e7   :  { %v756_v59 = vrot.slane %v743_v51, 6  ;;  %v762_v60 = vrot.slane %v744_v53, 6  ;;  %v768_v61 = vrot.slane %v745_v54, 6  ;;  %787 = vst.sshfl [vmem:[#allocation1] sm:$0xff pattern:$0x75316420] %v740_v48 }
 0x2e8   :  { %v761_v0 = vrot.slane %v759_v56, 4  ;;  %v767_v2 = vrot.slane %v765_v57, 4  ;;  %788 = vst.sshfl [vmem:[#allocation1 + $0x10] sm:$0xff pattern:$0x75316420] %v730_v52  ;;  %v773_v6 = vrot.slane %v771_v62, 4 }
 0x2e9   :  { %v764_v1 = vrot.slane %v762_v60, 4  ;;  %v757_v3 = vsel %vm2854_vm2, %v2122_v63, %v756_v59  ;;  %v770_v4 = vrot.slane %v768_v61, 4  ;;  %v774_v7 = vrot.slane %v746_v55, 6  ;;  %789 = vst.sshfl [vmem:[#allocation1 + $0x20] sm:$0xff pattern:$0x75316420] %v732_v41 }
 0x2ea   :  { %v763_v5 = vsel %vm2854_vm2, %v761_v0, %v762_v60  ;;  %790 = vst.sshfl [vmem:[#allocation1 + $0x30] sm:$0xff pattern:$0x75316420] %v2849_v42  ;;  %v769_v9 = vsel %vm2854_vm2, %v767_v2, %v768_v61  ;;  %v815_v10 = vmax.f32 %v740_v48, %v757_v3  ;;  %v758_v13 = vrot.slane %v756_v59, 4  ;;  %v312_v59 = vld [vmem:[%s2510_s29 + $0x8] sm:$0xff]  ;;  %v311_v60 = vld [vmem:[%s2510_s29] sm:$0xff] }
 0x2eb   :  { %v766_v8 = vsel %vm2854_vm2, %v764_v1, %v765_v57  ;;  %v772_v11 = vsel %vm2854_vm2, %v770_v4, %v771_v62  ;;  %v817_v12 = vmax.f32 %v730_v52, %v763_v5  ;;  %v775_v14 = vsel %vm2854_vm2, %v773_v6, %v774_v7  ;;  %v313_v57 = vld [vmem:[%s2510_s29 + $0x10] sm:$0xff]  ;;  %v2214_v6 = vld [vmem:[%s2515_s3] ss:$0 sm:$0xff]  ;;  %s3251_s29 = sld [smem:[#allocation18_spill]] }
 0x2ec   :  { %v818_v15 = vmax.f32 %v744_v53, %v766_v8  ;;  %v819_v17 = vmax.f32 %v732_v41, %v769_v9  ;;  %v820_v19 = vmax.f32 %v745_v54, %v772_v11  ;;  %v821_v23 = vmax.f32 %v2849_v42, %v775_v14  ;;  %914 = vmatpush.msrb.mxu3 %v313_v57  ;;  %s3252_s3 = sld [smem:[#allocation19_spill]] }
 0x2ed   :  { %v741_v25 = vsel %vm539_vm8, %v733_v50, -inf  ;;  %v760_v26 = vsel %vm2854_vm2, %v758_v13, %v759_v56  ;;  %v776_v35 = vrot.slane %v774_v7, 4 }
 0x2ee   :  { %v792_v16 = vld [vmem:[#allocation1 + $0x1] ss:$2 sm:$0xff]  ;;  %v816_v32 = vmax.f32 %v743_v51, %v760_v26  ;;  %v777_v37 = vrot.slane %v741_v25, 6  ;;  %915 = vmatpush.msrb.mxu3 %v312_v59 }
 0x2ef   :  { %v796_v18 = vld [vmem:[#allocation1 + $0x11] ss:$2 sm:$0xff]  ;;  %v823_v20 = vmax.f32 %v815_v10, %v792_v16  ;;  %805 = vst.sshfl [vmem:[#allocation1] sm:$0xff pattern:$0x75316420] %v741_v25 }
 0x2f0   :  { %v798_v21 = vld [vmem:[#allocation1 + $0x20] ss:$2 sm:$0xff]  ;;  %v800_v22 = vld [vmem:[#allocation1 + $0x21] ss:$2 sm:$0xff]  ;;  %v825_v24 = vmax.f32 %v817_v12, %v796_v18  ;;  %v794_v34 = vld [vmem:[#allocation1 + $0x10] ss:$2 sm:$0xff]  ;;  %v778_v39 = vsel %vm2854_vm2, %v776_v35, %v777_v37  ;;  %916 = vmatpush.msrb.mxu3 %v311_v60 }
 0x2f1   :  { %v802_v27 = vld [vmem:[#allocation1 + $0x30] ss:$2 sm:$0xff]  ;;  %v804_v28 = vld [vmem:[#allocation1 + $0x31] ss:$2 sm:$0xff]  ;;  %v826_v29 = vmax.f32 %v818_v15, %v798_v21  ;;  %v827_v30 = vmax.f32 %v819_v17, %v800_v22  ;;  %840 = vst [vmem:[#allocation1 + $0x1] ss:$4 sm:$0xff] %v823_v20  ;;  %v824_v36 = vmax.f32 %v816_v32, %v794_v34  ;;  %v822_v40 = vmax.f32 %v746_v55, %v778_v39 }
 0x2f2   :  { %v828_v31 = vmax.f32 %v820_v19, %v802_v27  ;;  %v829_v33 = vmax.f32 %v821_v23, %v804_v28  ;;  %844 = vst [vmem:[#allocation1 + $0x3] ss:$4 sm:$0xff] %v825_v24 }
 0x2f3   :  { %846 = vst [vmem:[#allocation1 + $0x20] ss:$4 sm:$0xff] %v826_v29 }
 0x2f4   :  { %848 = vst [vmem:[#allocation1 + $0x21] ss:$4 sm:$0xff] %v827_v30 }
 0x2f5   :  { %850 = vst [vmem:[#allocation1 + $0x22] ss:$4 sm:$0xff] %v828_v31 }
 0x2f6   :  { %852 = vst [vmem:[#allocation1 + $0x23] ss:$4 sm:$0xff] %v829_v33  ;;  %v806_v38 = vld [vmem:[#allocation1] ss:$2 sm:$0xff] }
 0x2f7   :  { %842 = vst [vmem:[#allocation1 + $0x2] ss:$4 sm:$0xff] %v824_v36  ;;  %v830_v44 = vmax.f32 %v822_v40, %v806_v38  ;;  %v315_v40 = vld [vmem:[%s2520_s8] sm:$0x1]  ;;  %s3253_s8 = sld [smem:[#allocation20_spill]] }
 0x2fd   :  { %v854_v43 = vld.sshfl [vmem:[#allocation1 + $0x20] sm:$0xff pattern:$0x73625140] }
 0x2fe   :  { %1100 = vst [vmem:[#allocation1 + $0x20] ss:$4 sm:$0xff] %v827_v30  ;;  %v853_v45 = vld.sshfl [vmem:[#allocation1] sm:$0xff pattern:$0x73625140]  ;;  %v876_v49 = vrot.slane %v854_v43, 4 }
 0x2ff   :  { %1102 = vst [vmem:[#allocation1 + $0x21] ss:$4 sm:$0xff] %v828_v31  ;;  %v860_v46 = vsel %vm539_vm8, 0.0, %v853_v45  ;;  %v865_v52 = vrot.slane %v854_v43, 2 }
 0x300   :  { %855 = vst [vmem:[#allocation1] ss:$4 sm:$0xff] %v830_v44  ;;  %v875_v47 = vrot.slane %v860_v46, 4  ;;  %v864_v50 = vrot.slane %v860_v46, 2 }
 0x301   :  { %1104 = vst [vmem:[#allocation1 + $0x22] ss:$4 sm:$0xff] %v829_v33 }
 0x302   :  { %1106 = vst [vmem:[#allocation1 + $0x23] ss:$4 sm:$0xff] %v830_v44  ;;  %v877_v41 = vsel %vm578_vm10, %v875_v47, %v876_v49  ;;  %v866_v42 = vsel %vm556_vm9, %v864_v50, %v865_v52 }
 0x303   :  { %880 = vrot.lane.b32.xlu1 %v877_v41, %s2466_s13  ;;  %869 = vrot.lane.b32.xlu0 %v866_v42, %s2465_s9 }
 0x307   :  { %v856_v48 = vld.sshfl [vmem:[#allocation1] sm:$0xff pattern:$0x73625140] }
 0x308   :  { %v861_v51 = vsel %vm539_vm8, %v856_v48, 0.0  ;;  %1092 = vst [vmem:[#allocation1] ss:$4 sm:$0xff] %v823_v20 }
 0x309   :  { %v878_v53 = vrot.slane %v861_v51, 4  ;;  %1094 = vst [vmem:[#allocation1 + $0x1] ss:$4 sm:$0xff] %v824_v36  ;;  %v867_v54 = vrot.slane %v861_v51, 2 }
 0x30a   :  { %1096 = vst [vmem:[#allocation1 + $0x2] ss:$4 sm:$0xff] %v825_v24 }
 0x30b   :  { %v879_v55 = vsel %vm578_vm10, %v876_v49, %v878_v53  ;;  %1098 = vst [vmem:[#allocation1 + $0x3] ss:$4 sm:$0xff] %v826_v29  ;;  %v868_v56 = vsel %vm556_vm9, %v865_v52, %v867_v54 }
 0x30c   :  { %882 = vrot.lane.b32.xlu0 %v879_v55, %s2466_s13  ;;  %871 = vrot.lane.b32.xlu2 %v868_v56, %s2465_s9 }
 0x366   :  { %v872_v1 = vpop.permute.xlu2 %871 }
 0x367   :  { %v887_v2 = vsel %vm605_vm12, %v854_v43, %v872_v1 }
 0x375   :  { %v881_v61 = vpop.permute.xlu1 %880  ;;  %v870_v62 = vpop.permute.xlu0 %869 }
 0x376   :  { %v886_v63 = vsel %vm605_vm12, %v860_v46, %v870_v62  ;;  %v316_v46 = vld [vmem:[%s2525_s14] sm:$0x1]  ;;  %s3254_s14 = sld [smem:[#allocation21_spill]] }
 0x377   :  { %v889_v0 = vsel %vm888_vm3, %v886_v63, %v881_v61 }
 0x378   :  { %2123 = vmatmul.msk.f32.vlgmr.msrb.gmra.mxu3 %vm894_vm4, %v889_v0 }
 0x37e   :  { %v883_v3 = vpop.permute.xlu0 %882 }
 0x37f   :  { %v890_v4 = vsel %vm888_vm3, %v887_v2, %v883_v3 }
 0x380   :  { %2124 = vmatmul.msk.f32.gmra.mxu3 %vm894_vm4, %v890_v4 }
 0x3fb   :  { %v918_v5 = vpop.f32.mrf.mxu3 }
 0x3fc   :  { %v919_v7 = vadd.f32 %v2214_v6, %v918_v5 }
 0x3fe   :  { %v934_v9 = vmul.f32 %v919_v7, %v919_v7  ;;  %v924_v11 = vsel %vm605_vm12, %v919_v7, 0.0 }
 0x400   :  { %v936_v15 = vsel %vm605_vm12, %v934_v9, 0.0  ;;  %v317_v9 = vld [vmem:[%s2530_s19] sm:$0xff] }
 0x403   :  { %v921_v8 = vpop.f32.mrf.mxu3 }
 0x404   :  { %v922_v10 = vadd.f32 %v2214_v6, %v921_v8  ;;  %v318_v8 = vld [vmem:[%s2530_s19 + $0x8] sm:$0xff] }
 0x406   :  { %v925_v12 = vsel %vm605_vm12, %v922_v10, 0.0  ;;  %v935_v13 = vmul.f32 %v922_v10, %v922_v10 }
 0x407   :  { %v926_v14 = vadd.f32 %v925_v12, %v924_v11 }
 0x408   :  { %v937_v16 = vsel %vm605_vm12, %v935_v13, 0.0 }
 0x409   :  { %v927_v17 = vrot.slane %v926_v14, 4  ;;  %v938_v18 = vadd.f32 %v937_v16, %v936_v15 }
 0x40b   :  { %v928_v19 = vadd.f32 %v927_v17, %v926_v14  ;;  %v939_v20 = vrot.slane %v938_v18, 4 }
 0x40d   :  { %v929_v21 = vrot.slane %v928_v19, 2  ;;  %v940_v22 = vadd.f32 %v939_v20, %v938_v18 }
 0x40f   :  { %v930_v23 = vadd.f32 %v929_v21, %v928_v19  ;;  %v941_v24 = vrot.slane %v940_v22, 2  ;;  %v2215_v19 = vld [vmem:[%s2535_s24] ss:$0 sm:$0xff]  ;;  %s2467_s24 = smov 32  }
 0x411   :  { %v931_v25 = vrot.slane %v930_v23, 1  ;;  %v942_v26 = vadd.f32 %v941_v24, %v940_v22 }
 0x413   :  { %v932_v27 = vadd.f32 %v931_v25, %v930_v23  ;;  %v943_v28 = vrot.slane %v942_v26, 1 }
 0x415   :  { %v933_v29 = vmul.f32 0.0625, %v932_v27  ;;  %v944_v30 = vadd.f32 %v943_v28, %v942_v26 }
 0x417   :  { %v945_v31 = vmul.f32 0.0625, %v944_v30  ;;  %v946_v32 = vmul.f32 %v933_v29, %v933_v29 }
 0x419   :  { %v947_v33 = vsub.f32 %v945_v31, %v946_v32 }
 0x41b   :  { %v948_v34 = vadd.f32 1e-05, %v947_v33 }
 0x41d   :  { %2229 = vrsqrt.f32 %v948_v34  ;;  %vm955_vm6 = vweird.f32 %v948_v34 }
 0x423   :  { %v2230_v35 = vpop.eup %2229 }
 0x424   :  { %v950_v36 = vmul.f32 %v2230_v35, %v948_v34  ;;  %vm956_vm5 = vweird.f32 %v2230_v35 }
 0x425   :  { %vm957_vm7 = vmor %vm955_vm6, %vm956_vm5 }
 0x426   :  { %v951_v37 = vmul.f32 %v2230_v35, %v950_v36 }
 0x428   :  { %v952_v38 = vmul.f32 0.5, %v951_v37 }
 0x42a   :  { %v953_v39 = vsub.f32 1.5, %v952_v38 }
 0x42c   :  { %v954_v43 = vmul.f32 %v2230_v35, %v953_v39 }
 0x42e   :  { %v958_v44 = vsel %vm957_vm7, %v2230_v35, %v954_v43 }
 0x42f   :  { %v959_v45 = vmul.f32 %v958_v44, %v315_v40 }
 0x431   :  { %v960_v47 = vmul.f32 %v959_v45, %v933_v29  ;;  %v963_v49 = vperm.slane %v959_v45, 0 }
 0x433   :  { %v961_v50 = vsub.f32 %v316_v46, %v960_v47  ;;  %v965_v52 = vmul.f32 %v963_v49, %v919_v7  ;;  %v966_v41 = vmul.f32 %v963_v49, %v922_v10  ;;  %v319_v7 = vld [vmem:[%s2530_s19 + $0x10] sm:$0xff]  ;;  %s3255_s19 = sld [smem:[#allocation22_spill]] }
 0x434   :  { %1034 = vmatpush.msra.mxu3 %v319_v7 }
 0x435   :  { %v968_v42 = vperm.slane %v961_v50, 0 }
 0x436   :  { %1035 = vmatpush.msra.mxu3 %v318_v8 }
 0x437   :  { %v970_v48 = vadd.f32 %v968_v42, %v965_v52  ;;  %v971_v51 = vadd.f32 %v968_v42, %v966_v41 }
 0x438   :  { %1036 = vmatpush.msra.mxu3 %v317_v9 }
 0x439   :  { %v973_v53 = vmax.f32 %v971_v51, 0.0  ;;  %v972_v54 = vmax.f32 %v970_v48, 0.0  ;;  %v338_v51 = vld [vmem:[%s3248_s17] sm:$0xff]  ;;  %s3274_s17 = sld [smem:[#allocation36_spill]] }
 0x43a   :  { %1147 = vmatpush.msrb.mxu2 %v338_v51 }
 0x43b   :  { %v977_v55 = vrot.slane %v973_v53, 6  ;;  %v976_v56 = vrot.slane %v972_v54, 6  ;;  %v321_v54 = vld [vmem:[%s3249_s21] sm:$0x1]  ;;  %s3275_s21 = sld [smem:[#allocation37_spill]] }
 0x43d   :  { %v978_v57 = vsel %vm539_vm8, %v976_v56, %v977_v55  ;;  %v982_v59 = vsel %vm539_vm8, 0.0, %v976_v56  ;;  %v983_v60 = vsel %vm539_vm8, %v977_v55, 0.0 }
 0x43e   :  { %v997_v61 = vrot.slane %v982_v59, 4  ;;  %v998_v62 = vrot.slane %v978_v57, 4  ;;  %v987_v63 = vrot.slane %v978_v57, 2  ;;  %v989_v0 = vrot.slane %v983_v60, 2 }
 0x43f   :  { %v986_v1 = vrot.slane %v982_v59, 2  ;;  %v1000_v5 = vrot.slane %v983_v60, 4 }
 0x440   :  { %v999_v2 = vsel %vm578_vm10, %v997_v61, %v998_v62  ;;  %v990_v3 = vsel %vm556_vm9, %v987_v63, %v989_v0 }
 0x441   :  { %1002 = vrot.lane.b32.xlu2 %v999_v2, %s2466_s13  ;;  %993 = vrot.lane.b32.xlu0 %v990_v3, %s2465_s9  ;;  %v988_v4 = vsel %vm556_vm9, %v986_v1, %v987_v63  ;;  %v1001_v6 = vsel %vm578_vm10, %v998_v62, %v1000_v5  ;;  %v1108_v5 = vld.sshfl [vmem:[#allocation1 + $0x20] sm:$0xff pattern:$0x73625140] }
 0x442   :  { %991 = vrot.lane.b32.xlu1 %v988_v4, %s2465_s9  ;;  %v1107_v4 = vld.sshfl [vmem:[#allocation1] sm:$0xff pattern:$0x73625140] }
 0x44a   :  { %1004 = vrot.lane.b32.xlu1 %v1001_v6, %s2466_s13 }
 0x49b   :  { %v1003_v11 = vpop.permute.xlu2 %1002 }
 0x4b3   :  { %v994_v14 = vpop.permute.xlu0 %993 }
 0x4b4   :  { %v992_v10 = vpop.permute.xlu1 %991  ;;  %v1009_v15 = vsel %vm605_vm12, %v978_v57, %v994_v14 }
 0x4b5   :  { %v1008_v12 = vsel %vm605_vm12, %v982_v59, %v992_v10  ;;  %v322_v59 = vld [vmem:[%s3250_s25] sm:$0x1]  ;;  %s3276_s25 = sld [smem:[#allocation43_spill]] }
 0x4b6   :  { %v1010_v13 = vsel %vm888_vm3, %v1008_v12, %v1003_v11 }
 0x4b7   :  { %2125 = vmatmul.msk.f32.vlgmr.msra.gmra.mxu3 %vm894_vm4, %v1010_v13 }
 0x4bc   :  { %v1005_v16 = vpop.permute.xlu1 %1004 }
 0x4bd   :  { %v1011_v17 = vsel %vm888_vm3, %v1009_v15, %v1005_v16 }
 0x4bf   :  { %2126 = vmatmul.msk.f32.gmra.mxu3 %vm894_vm4, %v1011_v17 }
 0x53a   :  { %v1038_v18 = vpop.f32.mrf.mxu3 }
 0x53b   :  { %v1039_v20 = vadd.f32 %v2215_v19, %v1038_v18 }
 0x53d   :  { %v1054_v22 = vmul.f32 %v1039_v20, %v1039_v20  ;;  %v1044_v24 = vsel %vm605_vm12, %v1039_v20, 0.0 }
 0x53f   :  { %v1056_v28 = vsel %vm605_vm12, %v1054_v22, 0.0 }
 0x542   :  { %v1041_v21 = vpop.f32.mrf.mxu3 }
 0x543   :  { %v1042_v23 = vadd.f32 %v2215_v19, %v1041_v21 }
 0x545   :  { %v1045_v25 = vsel %vm605_vm12, %v1042_v23, 0.0  ;;  %v1055_v26 = vmul.f32 %v1042_v23, %v1042_v23 }
 0x546   :  { %v1046_v27 = vadd.f32 %v1045_v25, %v1044_v24 }
 0x547   :  { %v1057_v29 = vsel %vm605_vm12, %v1055_v26, 0.0 }
 0x548   :  { %v1047_v30 = vrot.slane %v1046_v27, 4  ;;  %v1058_v31 = vadd.f32 %v1057_v29, %v1056_v28 }
 0x54a   :  { %v1048_v32 = vadd.f32 %v1047_v30, %v1046_v27  ;;  %v1059_v33 = vrot.slane %v1058_v31, 4 }
 0x54c   :  { %v1049_v34 = vrot.slane %v1048_v32, 2  ;;  %v1060_v35 = vadd.f32 %v1059_v33, %v1058_v31 }
 0x54e   :  { %v1050_v36 = vadd.f32 %v1049_v34, %v1048_v32  ;;  %v1061_v37 = vrot.slane %v1060_v35, 2 }
 0x550   :  { %v1051_v38 = vrot.slane %v1050_v36, 1  ;;  %v1062_v39 = vadd.f32 %v1061_v37, %v1060_v35 }
 0x552   :  { %v1052_v40 = vadd.f32 %v1051_v38, %v1050_v36  ;;  %v1063_v43 = vrot.slane %v1062_v39, 1 }
 0x554   :  { %v1053_v44 = vmul.f32 0.0625, %v1052_v40  ;;  %v1064_v45 = vadd.f32 %v1063_v43, %v1062_v39  ;;  %v325_v39 = vld [vmem:[%s3251_s29 + $0x10] sm:$0xff]  ;;  %v324_v40 = vld [vmem:[%s3251_s29 + $0x8] sm:$0xff]  ;;  %v323_v43 = vld [vmem:[%s3251_s29] sm:$0xff]  ;;  %s3277_s29 = sld [smem:[#allocation46_spill]] }
 0x555   :  { %1280 = vmatpush.msrb.mxu3 %v325_v39 }
 0x556   :  { %v1065_v46 = vmul.f32 0.0625, %v1064_v45  ;;  %v1066_v47 = vmul.f32 %v1053_v44, %v1053_v44 }
 0x557   :  { %1281 = vmatpush.msrb.mxu3 %v324_v40 }
 0x558   :  { %v1067_v49 = vsub.f32 %v1065_v46, %v1066_v47 }
 0x559   :  { %1282 = vmatpush.msrb.mxu3 %v323_v43 }
 0x55a   :  { %v1068_v50 = vadd.f32 1e-05, %v1067_v49  ;;  %v2217_v49 = vld [vmem:[%s3252_s3] ss:$0 sm:$0xff]  ;;  %s3278_s3 = sld [smem:[#allocation44_spill]] }
 0x55c   :  { %2231 = vrsqrt.f32 %v1068_v50  ;;  %vm1075_vm13 = vweird.f32 %v1068_v50 }
 0x562   :  { %v2232_v52 = vpop.eup %2231 }
 0x563   :  { %v1070_v41 = vmul.f32 %v2232_v52, %v1068_v50  ;;  %vm1076_vm11 = vweird.f32 %v2232_v52 }
 0x564   :  { %vm1077_vm14 = vmor %vm1075_vm13, %vm1076_vm11 }
 0x565   :  { %v1071_v42 = vmul.f32 %v2232_v52, %v1070_v41 }
 0x567   :  { %v1072_v48 = vmul.f32 0.5, %v1071_v42 }
 0x569   :  { %v1073_v53 = vsub.f32 1.5, %v1072_v48 }
 0x56b   :  { %v1074_v55 = vmul.f32 %v2232_v52, %v1073_v53 }
 0x56d   :  { %v1078_v56 = vsel %vm1077_vm14, %v2232_v52, %v1074_v55 }
 0x56e   :  { %v1079_v57 = vmul.f32 %v1078_v56, %v321_v54 }
 0x570   :  { %v1080_v60 = vmul.f32 %v1079_v57, %v1053_v44  ;;  %v1083_v61 = vperm.slane %v1079_v57, 0 }
 0x572   :  { %v1081_v62 = vsub.f32 %v322_v59, %v1080_v60  ;;  %v1085_v63 = vmul.f32 %v1083_v61, %v1039_v20  ;;  %v1086_v0 = vmul.f32 %v1083_v61, %v1042_v23 }
 0x574   :  { %v1088_v1 = vperm.slane %v1081_v62, 0 }
 0x576   :  { %v1090_v2 = vadd.f32 %v1088_v1, %v1085_v63  ;;  %v1091_v3 = vadd.f32 %v1088_v1, %v1086_v0 }
 0x578   :  { %v1111_v6 = vadd.f32 %v1107_v4, %v1090_v2  ;;  %v1112_v7 = vadd.f32 %v1108_v5, %v1091_v3 }
 0x57a   :  { %v1113_v8 = vmax.f32 %v1111_v6, 0.0  ;;  %v1114_v9 = vmax.f32 %v1112_v7, 0.0 }
 0x57c   :  { %v1117_v10 = vrot.slane %v1113_v8, 4  ;;  %v1118_v11 = vrot.slane %v1114_v9, 4  ;;  %1122 = vst [vmem:[#allocation1] ss:$4 sm:$0xff] %v1113_v8  ;;  %v1193_v12 = vrot.slane %v1113_v8, 6  ;;  %v1194_v13 = vrot.slane %v1114_v9, 6 }
 0x57d   :  { %1126 = vst [vmem:[#allocation1 + $0x2] ss:$4 sm:$0xff] %v1114_v9 }
 0x57e   :  { %1124 = vst [vmem:[#allocation1 + $0x1] ss:$4 sm:$0xff] %v1117_v10  ;;  %v1195_v14 = vsel %vm539_vm8, %v1193_v12, %v1194_v13  ;;  %v1199_v15 = vsel %vm539_vm8, %v1194_v13, 0.0  ;;  %v1198_v17 = vsel %vm539_vm8, 0.0, %v1193_v12 }
 0x57f   :  { %1128 = vst [vmem:[#allocation1 + $0x3] ss:$4 sm:$0xff] %v1118_v11  ;;  %v1201_v19 = vrot.slane %v1198_v17, 4  ;;  %v1202_v20 = vrot.slane %v1195_v14, 4  ;;  %v1209_v24 = vrot.slane %v1195_v14, 6  ;;  %v2128_v27 = vrot.slane %v1198_v17, 10 }
 0x580   :  { %1218 = vst.sshfl [vmem:[#allocation1 + $0x10] sm:$0xff pattern:$0x75316420] %v1195_v14  ;;  %v1215_v33 = vrot.slane %v1199_v15, 6  ;;  %v327_v11 = vld [vmem:[%s3253_s8] sm:$0x1] }
 0x581   :  { %1219 = vst.sshfl [vmem:[#allocation1 + $0x20] sm:$0xff pattern:$0x75316420] %v1199_v15  ;;  %v1206_v23 = vrot.slane %v1201_v19, 6  ;;  %v1212_v25 = vrot.slane %v1202_v20, 6  ;;  %v1211_v28 = vrot.slane %v1209_v24, 4 }
 0x582   :  { %v328_v15 = vld [vmem:[%s3254_s14] sm:$0x1]  ;;  %s3279_s8 = sld [smem:[#allocation45_spill]] }
 0x583   :  { %v1208_v26 = vrot.slane %v1206_v23, 4  ;;  %v1214_v29 = vrot.slane %v1212_v25, 4  ;;  %v1207_v30 = vsel %vm2854_vm2, %v2128_v27, %v1206_v23  ;;  %v1213_v34 = vsel %vm2854_vm2, %v1211_v28, %v1212_v25  ;;  %s3280_s14 = sld [smem:[#allocation51_spill]] }
 0x585   :  { %v1210_v32 = vsel %vm2854_vm2, %v1208_v26, %v1209_v24  ;;  %v1216_v35 = vsel %vm2854_vm2, %v1214_v29, %v1215_v33  ;;  %v333_v33 = vld [vmem:[%s3255_s19 + $0x20] sm:$0xff] }
 0x586   :  { %v1129_v16 = vld.sshfl [vmem:[#allocation1] sm:$0xff pattern:$0x73625140] }
 0x587   :  { %v1223_v18 = vld [vmem:[#allocation1 + $0x10] ss:$2 sm:$0xff]  ;;  %2127 = vmatmul.msk.f32.vlgmr.msrb.gmra.mxu2 %vm605_vm12, %v1129_v16  ;;  %1217 = vst.sshfl [vmem:[#allocation1] sm:$0xff pattern:$0x75316420] %v1198_v17 }
 0x588   :  { %1228 = vst [vmem:[#allocation1] ss:$4 sm:$0xff] %v1198_v17  ;;  %v1225_v21 = vld [vmem:[#allocation1 + $0x11] ss:$2 sm:$0xff]  ;;  %v1227_v37 = vld [vmem:[#allocation1 + $0x20] ss:$2 sm:$0xff] }
 0x589   :  { %1232 = vst [vmem:[#allocation1 + $0x2] ss:$4 sm:$0xff] %v1195_v14 }
 0x58e   :  { %v1221_v22 = vld [vmem:[#allocation1 + $0x1] ss:$2 sm:$0xff] }
 0x58f   :  { %1230 = vst [vmem:[#allocation1 + $0x1] ss:$4 sm:$0xff] %v1201_v19 }
 0x590   :  { %1234 = vst [vmem:[#allocation1 + $0x3] ss:$4 sm:$0xff] %v1202_v20 }
 0x597   :  { %v1235_v31 = vld.sshfl [vmem:[#allocation1] sm:$0xff pattern:$0x73625140] }
 0x598   :  { %1237 = vst [vmem:[#allocation1] ss:$4 sm:$0xff] %v1207_v30 }
 0x599   :  { %1239 = vst [vmem:[#allocation1 + $0x1] ss:$4 sm:$0xff] %v1210_v32  ;;  %v334_v32 = vld [vmem:[%s3255_s19 + $0x28] sm:$0xff] }
 0x59a   :  { %1241 = vst [vmem:[#allocation1 + $0x2] ss:$4 sm:$0xff] %v1213_v34  ;;  %1368 = vmatpush.msra.mxu2 %v334_v32  ;;  %v332_v34 = vld [vmem:[%s3255_s19 + $0x18] sm:$0xff]  ;;  %v367_v32 = vld [vmem:[%s3258_s10 + $0x8] sm:$0xff] }
 0x59b   :  { %1243 = vst [vmem:[#allocation1 + $0x3] ss:$4 sm:$0xff] %v1216_v35  ;;  %v331_v35 = vld [vmem:[%s3255_s19 + $0x10] sm:$0xff]  ;;  %1446 = vmatpush.msra.mxu3 %v367_v32 }
 0x59c   :  { %1369 = vmatpush.msra.mxu2 %v333_v33  ;;  %v340_v33 = vld [vmem:[%s3259_s11] sm:$0x1]  ;;  %s3286_s11 = sld [smem:[#allocation49_spill]] }
 0x59e   :  { %1370 = vmatpush.msra.mxu2 %v332_v34 }
 0x5a0   :  { %1371 = vmatpush.msra.mxu2 %v331_v35 }
 0x5a2   :  { %v1244_v36 = vld.sshfl [vmem:[#allocation1] sm:$0xff pattern:$0x73625140] }
 0x5a3   :  { %1245 = vrot.lane.b32.xlu2 %v1244_v36, %s2465_s9  ;;  %1248 = vst [vmem:[#allocation1] ss:$4 sm:$0xff] %v1221_v22  ;;  %v330_v36 = vld [vmem:[%s3255_s19 + $0x8] sm:$0xff]  ;;  %s3272_s9 = sld [smem:[#allocation40_spill]] }
 0x5a4   :  { %1252 = vst [vmem:[#allocation1 + $0x2] ss:$4 sm:$0xff] %v1225_v21  ;;  %1372 = vmatpush.msra.mxu2 %v330_v36  ;;  %v366_v36 = vld [vmem:[%s3258_s10] sm:$0xff]  ;;  %s3285_s10 = sld [smem:[#allocation48_spill]] }
 0x5a5   :  { %1250 = vst [vmem:[#allocation1 + $0x1] ss:$4 sm:$0xff] %v1223_v18  ;;  %1447 = vmatpush.msra.mxu3 %v366_v36 }
 0x5a6   :  { %1254 = vst [vmem:[#allocation1 + $0x3] ss:$4 sm:$0xff] %v1227_v37  ;;  %v329_v37 = vld [vmem:[%s3255_s19] sm:$0xff]  ;;  %s3281_s19 = sld [smem:[#allocation47_spill]] }
 0x5a7   :  { %1373 = vmatpush.msra.mxu2 %v329_v37 }
 0x5ad   :  { %v1255_v38 = vld.sshfl [vmem:[#allocation1] sm:$0xff pattern:$0x73625140] }
 0x5ae   :  { %1256 = vrot.lane.b32.xlu0 %v1255_v38, %s2466_s13 }
 0x5fd   :  { %v1246_v44 = vpop.permute.xlu2 %1245 }
 0x5fe   :  { %v1259_v45 = vsel %vm605_vm12, %v1235_v31, %v1246_v44  ;;  %v2216_v44 = vld [vmem:[%s3256_s30] ss:$0 sm:$0xff]  ;;  %s3283_s30 = sld [smem:[#allocation54_spill]] }
 0x620   :  { %v1257_v46 = vpop.permute.xlu0 %1256 }
 0x621   :  { %v1260_v47 = vsel %vm888_vm3, %v1259_v45, %v1257_v46  ;;  %v1149_v45 = vpop.f32.mrf.mxu2 }
 0x622   :  { %2129 = vmatmul.msk.f32.vlgmr.msrb.gmra.mxu3 %vm894_vm4, %v1260_v47  ;;  %vm1354_vm4 = vcmask 392192   ;;  %v2973_v46 = vadd.f32 %v2216_v44, %v1149_v45  ;;  %v341_v44 = vld [vmem:[%s3260_s16] sm:$0x1]  ;;  %s2469_s16 = smov [#allocation9]  }
 0x623   :  { %v336_v45 = vld [vmem:[%s3261_s0] sm:$0x1]  ;;  %s3171_s0 = sshll.u32 %s2469_s16, 4  ;;  %s2013_s0 = int_to_ptr.vmem [resolvable:$true] %s3171_s0 }
 0x624   :  { %v1152_v47 = vsel %vm888_vm3, %v2973_v46, 0.0 }
 0x6a5   :  { %v1284_v50 = vpop.f32.mrf.mxu3 }
 0x6a6   :  { %v1285_v52 = vadd.f32 %v2217_v49, %v1284_v50  ;;  %v1160_v49 = vmul.f32 %v2973_v46, %v2973_v46  ;;  %v1153_v50 = vrot.slane %v1152_v47, 4 }
 0x6a8   :  { %v1287_v41 = vsel %vm888_vm3, %v1285_v52, 0.0  ;;  %v1295_v42 = vmul.f32 %v1285_v52, %v1285_v52 }
 0x6a9   :  { %v1288_v48 = vrot.slane %v1287_v41, 4 }
 0x6aa   :  { %v1296_v51 = vsel %vm888_vm3, %v1295_v42, 0.0 }
 0x6ab   :  { %v1289_v53 = vadd.f32 %v1288_v48, %v1287_v41  ;;  %v1297_v54 = vrot.slane %v1296_v51, 4  ;;  %v1154_v41 = vadd.f32 %v1153_v50, %v1152_v47 }
 0x6ad   :  { %v1290_v55 = vrot.slane %v1289_v53, 2  ;;  %v1298_v56 = vadd.f32 %v1297_v54, %v1296_v51  ;;  %v1155_v48 = vrot.slane %v1154_v41, 2 }
 0x6af   :  { %v1291_v57 = vadd.f32 %v1290_v55, %v1289_v53  ;;  %v1299_v59 = vrot.slane %v1298_v56, 2  ;;  %v1156_v53 = vadd.f32 %v1155_v48, %v1154_v41  ;;  %v337_v41 = vld [vmem:[%s3262_s15] sm:$0x1]  ;;  %s2014_s15 = sshll.u32 %s2753_s12, 4  ;;  %s2015_s15 = int_to_ptr.hbm [resolvable:$true] %s2014_s15 }
 0x6b1   :  { %v1292_v60 = vrot.slane %v1291_v57, 1  ;;  %v1300_v61 = vadd.f32 %v1299_v59, %v1298_v56  ;;  %v1157_v55 = vrot.slane %v1156_v53, 1 }
 0x6b3   :  { %v1293_v62 = vadd.f32 %v1292_v60, %v1291_v57  ;;  %v1301_v63 = vrot.slane %v1300_v61, 1  ;;  %v1158_v57 = vadd.f32 %v1157_v55, %v1156_v53 }
 0x6b5   :  { %v1294_v0 = vmul.f32 0.125, %v1293_v62  ;;  %v1302_v1 = vadd.f32 %v1301_v63, %v1300_v61  ;;  %v1159_v60 = vmul.f32 0.125, %v1158_v57 }
 0x6b7   :  { %v1303_v2 = vmul.f32 0.125, %v1302_v1  ;;  %v1304_v3 = vmul.f32 %v1294_v0, %v1294_v0  ;;  %v1169_v63 = vmul.f32 %v1159_v60, %v1159_v60  ;;  %v2218_v1 = vld [vmem:[%s3257_s4] ss:$0 sm:$0xff]  ;;  %s3284_s4 = sld [smem:[#allocation52_spill]] }
 0x6b9   :  { %v1305_v4 = vsub.f32 %v1303_v2, %v1304_v3 }
 0x6bb   :  { %v1306_v5 = vadd.f32 1e-05, %v1305_v4 }
 0x6bd   :  { %2233 = vrsqrt.f32 %v1306_v5  ;;  %vm1313_vm15 = vweird.f32 %v1306_v5 }
 0x6c3   :  { %v2234_v6 = vpop.eup %2233 }
 0x6c4   :  { %v1308_v7 = vmul.f32 %v2234_v6, %v1306_v5  ;;  %vm1314_vm12 = vweird.f32 %v2234_v6 }
 0x6c5   :  { %vm1315_vm0 = vmor %vm1313_vm15, %vm1314_vm12 }
 0x6c6   :  { %v1309_v8 = vmul.f32 %v2234_v6, %v1308_v7 }
 0x6c8   :  { %v1310_v9 = vmul.f32 0.5, %v1309_v8 }
 0x6ca   :  { %v1311_v10 = vsub.f32 1.5, %v1310_v9 }
 0x6cc   :  { %v1312_v12 = vmul.f32 %v2234_v6, %v1311_v10 }
 0x6ce   :  { %v1316_v13 = vsel %vm1315_vm0, %v2234_v6, %v1312_v12  ;;  %vm1618_vm0 = vcmask 523264  }
 0x6cf   :  { %v1317_v14 = vmul.f32 %v1316_v13, %v327_v11 }
 0x6d1   :  { %v1318_v16 = vmul.f32 %v1317_v14, %v1294_v0  ;;  %v1321_v17 = vperm.slane %v1317_v14, 0 }
 0x6d3   :  { %v1319_v18 = vsub.f32 %v328_v15, %v1318_v16  ;;  %v1323_v19 = vmul.f32 %v1321_v17, %v1285_v52  ;;  %v1161_v52 = vsel %vm888_vm3, %v1160_v49, 0.0 }
 0x6d4   :  { %v1162_v42 = vrot.slane %v1161_v52, 4 }
 0x6d5   :  { %v1325_v20 = vperm.slane %v1319_v18, 0 }
 0x6d6   :  { %v1163_v51 = vadd.f32 %v1162_v42, %v1161_v52 }
 0x6d7   :  { %v1327_v21 = vadd.f32 %v1325_v20, %v1323_v19 }
 0x6d8   :  { %v1164_v54 = vrot.slane %v1163_v51, 2 }
 0x6d9   :  { %v1328_v22 = vmax.f32 %v1327_v21, 0.0 }
 0x6da   :  { %v1165_v56 = vadd.f32 %v1164_v54, %v1163_v51 }
 0x6db   :  { %v1330_v23 = vrot.slane %v1328_v22, 6 }
 0x6dc   :  { %v1166_v59 = vrot.slane %v1165_v56, 1 }
 0x6dd   :  { %v1332_v24 = vsel %vm539_vm8, 0.0, %v1330_v23  ;;  %v1333_v25 = vsel %vm539_vm8, %v1330_v23, 0.0 }
 0x6de   :  { %v1342_v26 = vrot.slane %v1332_v24, 4  ;;  %v1343_v27 = vrot.slane %v1333_v25, 4  ;;  %v1336_v28 = vrot.slane %v1332_v24, 2  ;;  %v1337_v29 = vrot.slane %v1333_v25, 2 }
 0x6df   :  { %v1167_v61 = vadd.f32 %v1166_v59, %v1165_v56 }
 0x6e0   :  { %v1344_v30 = vsel %vm578_vm10, %v1342_v26, %v1343_v27  ;;  %v1338_v31 = vsel %vm556_vm9, %v1336_v28, %v1337_v29 }
 0x6e1   :  { %1345 = vrot.lane.b32.xlu2 %v1344_v30, %s2467_s24  ;;  %1339 = vrot.lane.b32.xlu1 %v1338_v31, %s2466_s13  ;;  %v1168_v62 = vmul.f32 0.125, %v1167_v61 }
 0x6e3   :  { %v1170_v0 = vsub.f32 %v1168_v62, %v1169_v63 }
 0x6e5   :  { %v1171_v2 = vadd.f32 1e-05, %v1170_v0 }
 0x6e7   :  { %2235 = vrsqrt.f32 %v1171_v2  ;;  %vm1178_vm6 = vweird.f32 %v1171_v2 }
 0x6ed   :  { %v2236_v11 = vpop.eup %2235 }
 0x6ee   :  { %v1173_v16 = vmul.f32 %v2236_v11, %v1171_v2  ;;  %vm1179_vm5 = vweird.f32 %v2236_v11 }
 0x6ef   :  { %vm1180_vm7 = vmor %vm1178_vm6, %vm1179_vm5 }
 0x6f0   :  { %v1174_v21 = vmul.f32 %v2236_v11, %v1173_v16  ;;  %v346_v16 = vld [vmem:[%s3263_s18 + $0x20] sm:$0xff] }
 0x6f2   :  { %v1175_v26 = vmul.f32 0.5, %v1174_v21 }
 0x6f4   :  { %v1176_v29 = vsub.f32 1.5, %v1175_v26 }
 0x6f6   :  { %v1177_v30 = vmul.f32 %v2236_v11, %v1176_v29 }
 0x6f8   :  { %v1181_v34 = vsel %vm1180_vm7, %v2236_v11, %v1177_v30 }
 0x73b   :  { %v1346_v39 = vpop.permute.xlu2 %1345 }
 0x753   :  { %v1340_v38 = vpop.permute.xlu1 %1339 }
 0x754   :  { %v1348_v40 = vsel %vm888_vm3, %v1332_v24, %v1340_v38  ;;  %v1182_v38 = vmul.f32 %v1181_v34, %v340_v33 }
 0x755   :  { %v1350_v43 = vsel %vm1349_vm1, %v1348_v40, %v1346_v39 }
 0x756   :  { %2130 = vmatmul.msk.f32.vlgmr.msra.gmra.mxu2 %vm1354_vm4, %v1350_v43  ;;  %v1183_v43 = vmul.f32 %v1182_v38, %v1159_v60  ;;  %v1186_v42 = vperm.slane %v1182_v38, 0 }
 0x758   :  { %v1184_v50 = vsub.f32 %v341_v44, %v1183_v43  ;;  %v1188_v55 = vmul.f32 %v1186_v42, %v2973_v46  ;;  %v361_v42 = vld [vmem:[%s3265_s22 + $0x50] sm:$0xff] }
 0x75a   :  { %v1190_v53 = vperm.slane %v1184_v50, 0 }
 0x75c   :  { %v1192_v59 = vadd.f32 %v1190_v53, %v1188_v55 }
 0x7d9   :  { %v1375_v3 = vpop.f32.mrf.mxu2 }
 0x7da   :  { %v1376_v4 = vadd.f32 %v2218_v1, %v1375_v3 }
 0x7dc   :  { %v1378_v5 = vsel %vm888_vm3, %v1376_v4, 0.0  ;;  %v1386_v6 = vmul.f32 %v1376_v4, %v1376_v4 }
 0x7dd   :  { %v1379_v7 = vrot.slane %v1378_v5, 4 }
 0x7de   :  { %v1387_v8 = vsel %vm888_vm3, %v1386_v6, 0.0 }
 0x7df   :  { %v1380_v9 = vadd.f32 %v1379_v7, %v1378_v5  ;;  %v1388_v10 = vrot.slane %v1387_v8, 4 }
 0x7e1   :  { %v1381_v12 = vrot.slane %v1380_v9, 2  ;;  %v1389_v13 = vadd.f32 %v1388_v10, %v1387_v8 }
 0x7e3   :  { %v1382_v14 = vadd.f32 %v1381_v12, %v1380_v9  ;;  %v1390_v15 = vrot.slane %v1389_v13, 2 }
 0x7e5   :  { %v1383_v17 = vrot.slane %v1382_v14, 1  ;;  %v1391_v18 = vadd.f32 %v1390_v15, %v1389_v13  ;;  %v347_v15 = vld [vmem:[%s3263_s18 + $0x28] sm:$0xff] }
 0x7e6   :  { %1551 = vmatpush.msrb.mxu3 %v347_v15  ;;  %v354_v15 = vld [vmem:[%s3265_s22 + $0x18] sm:$0xff] }
 0x7e7   :  { %v1384_v19 = vadd.f32 %v1383_v17, %v1382_v14  ;;  %v1392_v20 = vrot.slane %v1391_v18, 1  ;;  %v344_v17 = vld [vmem:[%s3263_s18 + $0x10] sm:$0xff] }
 0x7e8   :  { %1552 = vmatpush.msrb.mxu3 %v346_v16  ;;  %v353_v16 = vld [vmem:[%s3265_s22 + $0x10] sm:$0xff] }
 0x7e9   :  { %v1385_v22 = vmul.f32 0.125, %v1384_v19  ;;  %v1393_v23 = vadd.f32 %v1392_v20, %v1391_v18  ;;  %v343_v18 = vld [vmem:[%s3263_s18 + $0x8] sm:$0xff]  ;;  %v342_v19 = vld [vmem:[%s3263_s18] sm:$0xff]  ;;  %s2470_s18 = smov [#allocation8]  }
 0x7ea   :  { %1553 = vmatpush.msrb.mxu3 %v345_v58  ;;  %v352_v58 = vld [vmem:[%s3265_s22 + $0x8] sm:$0xff] }
 0x7eb   :  { %v1394_v24 = vmul.f32 0.125, %v1393_v23  ;;  %v1395_v25 = vmul.f32 %v1385_v22, %v1385_v22 }
 0x7ec   :  { %1554 = vmatpush.msrb.mxu3 %v344_v17  ;;  %v351_v17 = vld [vmem:[%s3265_s22] sm:$0xff] }
 0x7ed   :  { %v1396_v27 = vsub.f32 %v1394_v24, %v1395_v25  ;;  %v2220_v25 = vld [vmem:[%s3264_s23] ss:$0 sm:$0xff]  ;;  %s3174_s23 = sshll.u32 %s2470_s18, 4  ;;  %s2002_s23 = int_to_ptr.vmem [resolvable:$true] %s3174_s23 }
 0x7ee   :  { %1555 = vmatpush.msrb.mxu3 %v343_v18 }
 0x7ef   :  { %v1397_v28 = vadd.f32 1e-05, %v1396_v27 }
 0x7f0   :  { %1556 = vmatpush.msrb.mxu3 %v342_v19 }
 0x7f1   :  { %2237 = vrsqrt.f32 %v1397_v28  ;;  %vm1404_vm13 = vweird.f32 %v1397_v28 }
 0x7f7   :  { %v2238_v31 = vpop.eup %2237 }
 0x7f8   :  { %v1399_v35 = vmul.f32 %v2238_v31, %v1397_v28  ;;  %vm1405_vm11 = vweird.f32 %v2238_v31 }
 0x7f9   :  { %vm1406_vm14 = vmor %vm1404_vm13, %vm1405_vm11 }
 0x7fa   :  { %v1400_v37 = vmul.f32 %v2238_v31, %v1399_v35 }
 0x7fc   :  { %v1401_v39 = vmul.f32 0.5, %v1400_v37 }
 0x7fe   :  { %v1402_v40 = vsub.f32 1.5, %v1401_v39 }
 0x800   :  { %v1403_v47 = vmul.f32 %v2238_v31, %v1402_v40 }
 0x802   :  { %v1407_v49 = vsel %vm1406_vm14, %v2238_v31, %v1403_v47 }
 0x803   :  { %v1408_v52 = vmul.f32 %v1407_v49, %v336_v45 }
 0x805   :  { %v1409_v48 = vmul.f32 %v1408_v52, %v1385_v22  ;;  %v1412_v51 = vperm.slane %v1408_v52, 0 }
 0x807   :  { %v1410_v54 = vsub.f32 %v337_v41, %v1409_v48  ;;  %v1414_v56 = vmul.f32 %v1412_v51, %v1376_v4  ;;  %v362_v41 = vld [vmem:[%s3265_s22 + $0x58] sm:$0xff]  ;;  %v360_v51 = vld [vmem:[%s3265_s22 + $0x48] sm:$0xff] }
 0x808   :  { %1631 = vmatpush.msrb.mxu0 %v362_v41 }
 0x809   :  { %v1416_v57 = vperm.slane %v1410_v54, 0 }
 0x80a   :  { %1632 = vmatpush.msrb.mxu0 %v361_v42 }
 0x80b   :  { %v1418_v60 = vadd.f32 %v1416_v57, %v1414_v56  ;;  %v349_v57 = vld [vmem:[%s3266_s26] sm:$0x1]  ;;  %s2471_s26 = smov [#allocation11]  }
 0x80c   :  { %1633 = vmatpush.msrb.mxu0 %v360_v51 }
 0x80d   :  { %v1419_v61 = vadd.f32 %v1418_v60, %v1192_v59 }
 0x80f   :  { %v1420_v62 = vmax.f32 %v1419_v61, 0.0 }
 0x811   :  { %v1422_v63 = vrot.slane %v1420_v62, 4  ;;  %v1494_v0 = vrot.slane %v1420_v62, 6  ;;  %1426 = vst [vmem:[#allocation1] ss:$4 sm:$0xff] %v1420_v62  ;;  %v350_v62 = vld [vmem:[%s3267_s20] sm:$0x1] }
 0x812   :  { %s3177_s20 = sshll.u32 %s2471_s26, 4  ;;  %s2024_s20 = int_to_ptr.vmem [resolvable:$true] %s3177_s20 }
 0x813   :  { %v1497_v1 = vsel %vm539_vm8, %v1494_v0, 0.0  ;;  %1428 = vst [vmem:[#allocation1 + $0x1] ss:$4 sm:$0xff] %v1422_v63  ;;  %v1496_v2 = vsel %vm539_vm8, 0.0, %v1494_v0 }
 0x814   :  { %1509 = vst.sshfl [vmem:[#allocation1 + $0x10] sm:$0xff pattern:$0x75316420] %v1497_v1  ;;  %v1499_v4 = vrot.slane %v1496_v2, 4  ;;  %v2132_v8 = vrot.slane %v1496_v2, 10  ;;  %v1506_v9 = vrot.slane %v1497_v1, 6 }
 0x816   :  { %v1503_v6 = vrot.slane %v1499_v4, 6 }
 0x818   :  { %v1505_v7 = vrot.slane %v1503_v6, 4  ;;  %v1504_v10 = vsel %vm2854_vm2, %v2132_v8, %v1503_v6 }
 0x81a   :  { %v1429_v3 = vld.sshfl [vmem:[#allocation1] sm:$0xff pattern:$0x73625140]  ;;  %v1507_v12 = vsel %vm2854_vm2, %v1505_v7, %v1506_v9  ;;  %vm1452_vm2 = vcmask 257024  }
 0x81b   :  { %2131 = vmatmul.msk.f32.vlgmr.msra.gmra.mxu3 %vm888_vm3, %v1429_v3  ;;  %1508 = vst.sshfl [vmem:[#allocation1] sm:$0xff pattern:$0x75316420] %v1496_v2  ;;  %v1513_v46 = vld [vmem:[#allocation1 + $0x10] ss:$2 sm:$0xff] }
 0x81c   :  { %1514 = vst [vmem:[#allocation1] ss:$4 sm:$0xff] %v1496_v2 }
 0x822   :  { %v1511_v5 = vld [vmem:[#allocation1 + $0x1] ss:$2 sm:$0xff] }
 0x823   :  { %1516 = vst [vmem:[#allocation1 + $0x1] ss:$4 sm:$0xff] %v1499_v4 }
 0x82a   :  { %v1517_v11 = vld.sshfl [vmem:[#allocation1] sm:$0xff pattern:$0x73625140] }
 0x82b   :  { %1519 = vst [vmem:[#allocation1] ss:$4 sm:$0xff] %v1504_v10  ;;  %v359_v10 = vld [vmem:[%s3265_s22 + $0x40] sm:$0xff] }
 0x82c   :  { %1521 = vst [vmem:[#allocation1 + $0x1] ss:$4 sm:$0xff] %v1507_v12  ;;  %1634 = vmatpush.msrb.mxu0 %v359_v10  ;;  %v357_v12 = vld [vmem:[%s3265_s22 + $0x30] sm:$0xff] }
 0x833   :  { %v1522_v13 = vld.sshfl [vmem:[#allocation1] sm:$0xff pattern:$0x73625140] }
 0x834   :  { %1523 = vrot.lane.b32.xlu0 %v1522_v13, %s2466_s13  ;;  %1526 = vst [vmem:[#allocation1] ss:$4 sm:$0xff] %v1511_v5  ;;  %v356_v13 = vld [vmem:[%s3265_s22 + $0x28] sm:$0xff]  ;;  %s3273_s13 = sld [smem:[#allocation41_spill]] }
 0x835   :  { %1528 = vst [vmem:[#allocation1 + $0x1] ss:$4 sm:$0xff] %v1513_v46 }
 0x83c   :  { %v1529_v14 = vld.sshfl [vmem:[#allocation1] sm:$0xff pattern:$0x73625140] }
 0x83d   :  { %1530 = vrot.lane.b32.xlu1 %v1529_v14, %s2467_s24  ;;  %v355_v14 = vld [vmem:[%s3265_s22 + $0x20] sm:$0xff] }
 0x89e   :  { %v3008_v24 = vpop.f32.mrf.mxu3 }
 0x8a6   :  { %v1524_v20 = vpop.permute.xlu0 %1523 }
 0x8a7   :  { %v1533_v21 = vsel %vm888_vm3, %v1517_v11, %v1524_v20  ;;  %v358_v11 = vld [vmem:[%s3265_s22 + $0x38] sm:$0xff]  ;;  %s2003_s22 = sshll.u32 %s2748_s6, 4  ;;  %s2004_s22 = int_to_ptr.hbm [resolvable:$true] %s2003_s22 }
 0x8a8   :  { %1635 = vmatpush.msrb.mxu0 %v358_v11  ;;  %v413_v11 = vld [vmem:[%s3270_s7] sm:$0xff] }
 0x8aa   :  { %1636 = vmatpush.msrb.mxu0 %v357_v12 }
 0x8ac   :  { %1637 = vmatpush.msrb.mxu0 %v356_v13 }
 0x8ae   :  { %1638 = vmatpush.msrb.mxu0 %v355_v14 }
 0x8af   :  { %v1531_v22 = vpop.permute.xlu1 %1530 }
 0x8b0   :  { %v1534_v23 = vsel %vm1349_vm1, %v1533_v21, %v1531_v22  ;;  %1639 = vmatpush.msrb.mxu0 %v354_v15  ;;  %v2219_v22 = vld [vmem:[%s3268_s28] ss:$0 sm:$0xff]  ;;  %v382_v15 = vld [vmem:[%s3271_s5 + $0x58] sm:$0xff]  ;;  %s2335_s28 = sshra.s32 %s2015_s15, 4  ;;  %s2336_s28 = int_to_ptr.hbm [resolvable:$true] %s2335_s28 }
 0x8b1   :  { %2133 = vmatmul.msk.f32.vlgmr.msrb.gmra.mxu3 %vm1354_vm4, %v1534_v23  ;;  %vm1623_vm4 = vcmask 785408   ;;  %v3036_v23 = vadd.f32 %v2219_v22, %v3008_v24  ;;  %1783 = vmatpush.msrb.mxu1 %v382_v15  ;;  %p2340_p2 = scmp.lt.s32.totalorder %s2336_s28, %s2753_s12 }
 0x8b2   :  { %1640 = vmatpush.msrb.mxu0 %v353_v16  ;;  %v381_v16 = vld [vmem:[%s3271_s5 + $0x50] sm:$0xff] }
 0x8b3   :  { %1784 = vmatpush.msrb.mxu1 %v381_v16 }
 0x8b4   :  { %1641 = vmatpush.msrb.mxu0 %v352_v58  ;;  %v369_v58 = vld [vmem:[%s3272_s9] sm:$0x1] }
 0x8b6   :  { %1642 = vmatpush.msrb.mxu0 %v351_v17 }
 0x934   :  { %v1558_v26 = vpop.f32.mrf.mxu3 }
 0x935   :  { %v1559_v27 = vadd.f32 %v2220_v25, %v1558_v26  ;;  %v1453_v25 = vsel %vm1452_vm2, %v3036_v23, 0.0  ;;  %v1461_v26 = vmul.f32 %v3036_v23, %v3036_v23 }
 0x937   :  { %v1561_v28 = vsel %vm1452_vm2, %v1559_v27, 0.0  ;;  %v1569_v29 = vmul.f32 %v1559_v27, %v1559_v27 }
 0x938   :  { %v1562_v30 = vrot.slane %v1561_v28, 4 }
 0x939   :  { %v1570_v31 = vsel %vm1452_vm2, %v1569_v29, 0.0 }
 0x93a   :  { %v1563_v32 = vadd.f32 %v1562_v30, %v1561_v28  ;;  %v1571_v33 = vrot.slane %v1570_v31, 4  ;;  %v1462_v28 = vsel %vm1452_vm2, %v1461_v26, 0.0  ;;  %v370_v26 = vld [vmem:[%s3273_s13] sm:$0x1] }
 0x93b   :  { %v1463_v30 = vrot.slane %v1462_v28, 4 }
 0x93c   :  { %v1564_v34 = vrot.slane %v1563_v32, 2  ;;  %v1572_v35 = vadd.f32 %v1571_v33, %v1570_v31 }
 0x93e   :  { %v1565_v36 = vadd.f32 %v1564_v34, %v1563_v32  ;;  %v1573_v37 = vrot.slane %v1572_v35, 2  ;;  %v1464_v32 = vadd.f32 %v1463_v30, %v1462_v28 }
 0x940   :  { %v1566_v38 = vrot.slane %v1565_v36, 1  ;;  %v1574_v39 = vadd.f32 %v1573_v37, %v1572_v35  ;;  %v1465_v34 = vrot.slane %v1464_v32, 2 }
 0x942   :  { %v1567_v40 = vadd.f32 %v1566_v38, %v1565_v36  ;;  %v1575_v43 = vrot.slane %v1574_v39, 1  ;;  %v1466_v36 = vadd.f32 %v1465_v34, %v1464_v32  ;;  %v365_v32 = vld [vmem:[%s3275_s21] sm:$0x1] }
 0x944   :  { %v1568_v44 = vmul.f32 0.25, %v1567_v40  ;;  %v1576_v45 = vadd.f32 %v1575_v43, %v1574_v39  ;;  %v1467_v37 = vrot.slane %v1466_v36, 1 }
 0x946   :  { %v1577_v47 = vmul.f32 0.25, %v1576_v45  ;;  %v1578_v49 = vmul.f32 %v1568_v44, %v1568_v44  ;;  %v1468_v39 = vadd.f32 %v1467_v37, %v1466_v36  ;;  %v2221_v45 = vld [vmem:[%s3269_s2] ss:$0 sm:$0xff]  ;;  %s2337_s2 = scalar_lea.hbm %s2336_s28, 2 }
 0x947   :  { %p2338_p1 = scmp.ne.s32.totalorder %s2336_s28, %s2337_s2 }
 0x948   :  { %v1579_v50 = vsub.f32 %v1577_v47, %v1578_v49  ;;  %v1469_v40 = vmul.f32 0.25, %v1468_v39 }
 0x94a   :  { %v1580_v52 = vadd.f32 1e-05, %v1579_v50 }
 0x94c   :  { %2239 = vrsqrt.f32 %v1580_v52  ;;  %vm1587_vm12 = vweird.f32 %v1580_v52 }
 0x952   :  { %v2240_v48 = vpop.eup %2239 }
 0x953   :  { %v1582_v53 = vmul.f32 %v2240_v48, %v1580_v52  ;;  %vm1588_vm3 = vweird.f32 %v2240_v48 }
 0x954   :  { %vm1589_vm15 = vmor %vm1587_vm12, %vm1588_vm3 }
 0x955   :  { %v1583_v54 = vmul.f32 %v2240_v48, %v1582_v53 }
 0x957   :  { %v1584_v55 = vmul.f32 0.5, %v1583_v54 }
 0x959   :  { %v1585_v56 = vsub.f32 1.5, %v1584_v55 }
 0x95b   :  { %v1586_v59 = vmul.f32 %v2240_v48, %v1585_v56 }
 0x95d   :  { %v1590_v60 = vsel %vm1589_vm15, %v2240_v48, %v1586_v59 }
 0x95e   :  { %v1591_v61 = vmul.f32 %v1590_v60, %v349_v57 }
 0x960   :  { %v1592_v63 = vmul.f32 %v1591_v61, %v1568_v44  ;;  %v1595_v0 = vperm.slane %v1591_v61, 0 }
 0x962   :  { %v1593_v1 = vsub.f32 %v350_v62, %v1592_v63  ;;  %v1597_v2 = vmul.f32 %v1595_v0, %v1559_v27  ;;  %v1454_v27 = vrot.slane %v1453_v25, 4 }
 0x964   :  { %v1599_v3 = vperm.slane %v1593_v1, 0  ;;  %v1455_v29 = vadd.f32 %v1454_v27, %v1453_v25  ;;  %v364_v27 = vld [vmem:[%s3274_s17] sm:$0x1] }
 0x966   :  { %v1601_v46 = vadd.f32 %v1599_v3, %v1597_v2  ;;  %v1456_v31 = vrot.slane %v1455_v29, 2 }
 0x968   :  { %v1602_v4 = vmax.f32 %v1601_v46, 0.0  ;;  %v1457_v33 = vadd.f32 %v1456_v31, %v1455_v29  ;;  %v416_v46 = vld [vmem:[%s3270_s7 + $0x18] sm:$0xff] }
 0x969   :  { %1708 = vmatpush.msrb.mxu2 %v416_v46 }
 0x96a   :  { %v1604_v5 = vrot.slane %v1602_v4, 6  ;;  %v1458_v35 = vrot.slane %v1457_v33, 1 }
 0x96c   :  { %v1606_v6 = vsel %vm539_vm8, 0.0, %v1604_v5  ;;  %v1459_v24 = vadd.f32 %v1458_v35, %v1457_v33 }
 0x96d   :  { %v1607_v7 = vsel %vm556_vm9, %v1606_v6, 0.0  ;;  %v415_v6 = vld [vmem:[%s3270_s7 + $0x10] sm:$0xff] }
 0x96e   :  { %v1613_v8 = vrot.slane %v1607_v7, 4  ;;  %v1609_v9 = vrot.slane %v1607_v7, 2  ;;  %v1460_v38 = vmul.f32 0.25, %v1459_v24  ;;  %1709 = vmatpush.msrb.mxu2 %v415_v6 }
 0x970   :  { %1614 = vrot.lane.b32.xlu0 %v1613_v8, %s2468_s1  ;;  %1610 = vrot.lane.b32.xlu2 %v1609_v9, %s2467_s24  ;;  %v1470_v43 = vmul.f32 %v1460_v38, %v1460_v38  ;;  %v414_v9 = vld [vmem:[%s3270_s7 + $0x8] sm:$0xff]  ;;  %s2339_s7 = scalar_lea.hbm %s2753_s12, 2 }
 0x971   :  { %1710 = vmatpush.msrb.mxu2 %v414_v9  ;;  %p2341_p3 = scmp.lt.s32.totalorder %s2339_s7, %s2337_s2 }
 0x972   :  { %v1471_v44 = vsub.f32 %v1469_v40, %v1470_v43 }
 0x973   :  { %1711 = vmatpush.msrb.mxu2 %v413_v11  ;;  %p2342_p4 = por %p2341_p3, %p2340_p2 }
 0x974   :  { %v1472_v47 = vadd.f32 1e-05, %v1471_v44 }
 0x975   :  { %p2343_p5 = pnand %p2342_p4, %p2338_p1 }
 0x976   :  { %2241 = vrsqrt.f32 %v1472_v47  ;;  %vm1479_vm6 = vweird.f32 %v1472_v47 }
 0x97c   :  { %v2242_v54 = vpop.eup %2241 }
 0x97d   :  { %v1474_v60 = vmul.f32 %v2242_v54, %v1472_v47  ;;  %vm1480_vm5 = vweird.f32 %v2242_v54 }
 0x97e   :  { %vm1481_vm7 = vmor %vm1479_vm6, %vm1480_vm5  ;;  %vm1969_vm6 = vcmask 74752  }
 0x97f   :  { %v1475_v1 = vmul.f32 %v2242_v54, %v1474_v60 }
 0x9ca   :  { %v1611_v18 = vpop.permute.xlu2 %1610 }
 0x9cb   :  { %v1617_v19 = vsel %vm1349_vm1, %v1607_v7, %v1611_v18  ;;  %v1476_v7 = vmul.f32 0.5, %v1475_v1 }
 0x9cd   :  { %v1477_v12 = vsub.f32 1.5, %v1476_v7 }
 0x9cf   :  { %v1478_v13 = vmul.f32 %v2242_v54, %v1477_v12 }
 0x9d1   :  { %v1482_v17 = vsel %vm1481_vm7, %v2242_v54, %v1478_v13  ;;  %v375_v54 = vld [vmem:[%s3271_s5 + $0x20] sm:$0xff] }
 0x9e2   :  { %v1615_v20 = vpop.permute.xlu0 %1614 }
 0x9e3   :  { %v1619_v21 = vsel %vm1618_vm0, %v1617_v19, %v1615_v20  ;;  %v1483_v20 = vmul.f32 %v1482_v17, %v369_v58  ;;  %v408_v58 = vld [vmem:[%s3277_s29 + $0xb0] sm:$0xff] }
 0x9e4   :  { %2134 = vmatmul.msk.f32.vlgmr.msrb.gmra.mxu0 %vm1623_vm4, %v1619_v21 }
 0x9e5   :  { %v1484_v25 = vmul.f32 %v1483_v20, %v1460_v38  ;;  %v1487_v33 = vperm.slane %v1483_v20, 0 }
 0x9e7   :  { %v1485_v30 = vsub.f32 %v370_v26, %v1484_v25  ;;  %v1489_v37 = vmul.f32 %v1487_v33, %v3036_v23  ;;  %v405_v26 = vld [vmem:[%s3277_s29 + $0x98] sm:$0xff] }
 0x9e9   :  { %v1491_v36 = vperm.slane %v1485_v30, 0  ;;  %v402_v30 = vld [vmem:[%s3277_s29 + $0x80] sm:$0xff] }
 0x9eb   :  { %v1493_v40 = vadd.f32 %v1491_v36, %v1489_v37  ;;  %v398_v36 = vld [vmem:[%s3277_s29 + $0x60] sm:$0xff]  ;;  %v397_v37 = vld [vmem:[%s3277_s29 + $0x58] sm:$0xff] }
 0xa61   :  { %v1644_v49 = vpop.f32.mrf.mxu0 }
 0xa62   :  { %v3044_v50 = vadd.f32 %v2221_v45, %v1644_v49 }
 0xa64   :  { %v1647_v52 = vsel %vm1452_vm2, %v3044_v50, 0.0  ;;  %v1655_v41 = vmul.f32 %v3044_v50, %v3044_v50 }
 0xa65   :  { %v1648_v42 = vrot.slane %v1647_v52, 4 }
 0xa66   :  { %v1656_v48 = vsel %vm1452_vm2, %v1655_v41, 0.0 }
 0xa67   :  { %v1649_v51 = vadd.f32 %v1648_v42, %v1647_v52  ;;  %v1657_v53 = vrot.slane %v1656_v48, 4  ;;  %v379_v42 = vld [vmem:[%s3271_s5 + $0x40] sm:$0xff] }
 0xa69   :  { %v1650_v55 = vrot.slane %v1649_v51, 2  ;;  %v1658_v56 = vadd.f32 %v1657_v53, %v1656_v48  ;;  %v378_v48 = vld [vmem:[%s3271_s5 + $0x38] sm:$0xff]  ;;  %v376_v53 = vld [vmem:[%s3271_s5 + $0x28] sm:$0xff] }
 0xa6b   :  { %v1651_v57 = vadd.f32 %v1650_v55, %v1649_v51  ;;  %v1659_v59 = vrot.slane %v1658_v56, 2  ;;  %v377_v51 = vld [vmem:[%s3271_s5 + $0x30] sm:$0xff]  ;;  %v374_v55 = vld [vmem:[%s3271_s5 + $0x18] sm:$0xff] }
 0xa6d   :  { %v1652_v61 = vrot.slane %v1651_v57, 1  ;;  %v1660_v62 = vadd.f32 %v1659_v59, %v1658_v56  ;;  %v373_v56 = vld [vmem:[%s3271_s5 + $0x10] sm:$0xff]  ;;  %v371_v59 = vld [vmem:[%s3271_s5] sm:$0xff] }
 0xa6f   :  { %v1653_v63 = vadd.f32 %v1652_v61, %v1651_v57  ;;  %v1661_v0 = vrot.slane %v1660_v62, 1  ;;  %v372_v57 = vld [vmem:[%s3271_s5 + $0x8] sm:$0xff] }
 0xa71   :  { %v1654_v2 = vmul.f32 0.25, %v1653_v63  ;;  %v1662_v3 = vadd.f32 %v1661_v0, %v1660_v62  ;;  %v2223_v0 = vld [vmem:[%s3276_s25] ss:$0 sm:$0xff] }
 0xa73   :  { %v1663_v4 = vmul.f32 0.25, %v1662_v3  ;;  %v1664_v5 = vmul.f32 %v1654_v2, %v1654_v2 }
 0xa75   :  { %v1665_v8 = vsub.f32 %v1663_v4, %v1664_v5 }
 0xa77   :  { %v1666_v10 = vadd.f32 1e-05, %v1665_v8 }
 0xa79   :  { %2243 = vrsqrt.f32 %v1666_v10  ;;  %vm1673_vm13 = vweird.f32 %v1666_v10 }
 0xa7f   :  { %v2244_v14 = vpop.eup %2243 }
 0xa80   :  { %v1668_v18 = vmul.f32 %v2244_v14, %v1666_v10  ;;  %vm1674_vm11 = vweird.f32 %v2244_v14 }
 0xa81   :  { %vm1675_vm14 = vmor %vm1673_vm13, %vm1674_vm11 }
 0xa82   :  { %v1669_v19 = vmul.f32 %v2244_v14, %v1668_v18 }
 0xa84   :  { %v1670_v21 = vmul.f32 0.5, %v1669_v19  ;;  %v407_v19 = vld [vmem:[%s3277_s29 + $0xa8] sm:$0xff] }
 0xa86   :  { %v1671_v22 = vsub.f32 1.5, %v1670_v21 }
 0xa88   :  { %v1672_v28 = vmul.f32 %v2244_v14, %v1671_v22  ;;  %v406_v22 = vld [vmem:[%s3277_s29 + $0xa0] sm:$0xff] }
 0xa8a   :  { %v1676_v29 = vsel %vm1675_vm14, %v2244_v14, %v1672_v28  ;;  %v409_v14 = vld [vmem:[%s3277_s29 + $0xb8] sm:$0xff]  ;;  %v404_v28 = vld [vmem:[%s3277_s29 + $0x90] sm:$0xff] }
 0xa8b   :  { %v1677_v31 = vmul.f32 %v1676_v29, %v364_v27  ;;  %1886 = vmatpush.msra.mxu3 %v409_v14  ;;  %v403_v29 = vld [vmem:[%s3277_s29 + $0x88] sm:$0xff] }
 0xa8d   :  { %v1678_v34 = vmul.f32 %v1677_v31, %v1654_v2  ;;  %v1681_v35 = vperm.slane %v1677_v31, 0  ;;  %1887 = vmatpush.msra.mxu3 %v408_v58  ;;  %v401_v31 = vld [vmem:[%s3277_s29 + $0x78] sm:$0xff] }
 0xa8e   :  { %1858 = vmatpush.msra.mxu2 %v401_v31 }
 0xa8f   :  { %v1679_v24 = vsub.f32 %v365_v32, %v1678_v34  ;;  %v1683_v38 = vmul.f32 %v1681_v35, %v3044_v50  ;;  %v380_v50 = vld [vmem:[%s3271_s5 + $0x48] sm:$0xff]  ;;  %1888 = vmatpush.msra.mxu3 %v407_v19  ;;  %v400_v32 = vld [vmem:[%s3277_s29 + $0x70] sm:$0xff] }
 0xa90   :  { %1785 = vmatpush.msrb.mxu1 %v380_v50  ;;  %v399_v34 = vld [vmem:[%s3277_s29 + $0x68] sm:$0xff]  ;;  %1859 = vmatpush.msra.mxu2 %v400_v32 }
 0xa91   :  { %v1685_v39 = vperm.slane %v1679_v24, 0  ;;  %1889 = vmatpush.msra.mxu3 %v406_v22 }
 0xa92   :  { %1786 = vmatpush.msrb.mxu1 %v379_v42  ;;  %1860 = vmatpush.msra.mxu2 %v399_v34 }
 0xa93   :  { %v1687_v43 = vadd.f32 %v1685_v39, %v1683_v38  ;;  %1890 = vmatpush.msra.mxu3 %v405_v26  ;;  %v396_v39 = vld [vmem:[%s3277_s29 + $0x50] sm:$0xff] }
 0xa94   :  { %1787 = vmatpush.msrb.mxu1 %v378_v48  ;;  %1861 = vmatpush.msra.mxu2 %v398_v36  ;;  %v392_v48 = vld [vmem:[%s3277_s29 + $0x30] sm:$0xff] }
 0xa95   :  { %v1688_v44 = vadd.f32 %v1687_v43, %v1493_v40  ;;  %1891 = vmatpush.msra.mxu3 %v404_v28  ;;  %v395_v43 = vld [vmem:[%s3277_s29 + $0x48] sm:$0xff] }
 0xa96   :  { %1788 = vmatpush.msrb.mxu1 %v377_v51  ;;  %1862 = vmatpush.msra.mxu2 %v397_v37 }
 0xa97   :  { %v1689_v45 = vmax.f32 %v1688_v44, 0.0  ;;  %1892 = vmatpush.msra.mxu3 %v403_v29  ;;  %v384_v44 = vld [vmem:[%s3278_s3] sm:$0x1] }
 0xa98   :  { %1789 = vmatpush.msrb.mxu1 %v376_v53  ;;  %1863 = vmatpush.msra.mxu2 %v396_v39  ;;  %v391_v53 = vld [vmem:[%s3277_s29 + $0x28] sm:$0xff]  ;;  %v2224_v29 = vld [vmem:[%s3281_s19] ss:$0 sm:$0xff] }
 0xa99   :  { %2135 = vmatmul.msk.f32.vlgmr.msrb.gmra.mxu2 %vm1349_vm1, %v1689_v45  ;;  %v1758_v47 = vrot.slane %v1689_v45, 6  ;;  %1893 = vmatpush.msra.mxu3 %v402_v30 }
 0xa9a   :  { %1790 = vmatpush.msrb.mxu1 %v375_v54  ;;  %1864 = vmatpush.msra.mxu2 %v395_v43 }
 0xa9b   :  { %v1760_v49 = vsel %vm539_vm8, 0.0, %v1758_v47  ;;  %v394_v47 = vld [vmem:[%s3277_s29 + $0x40] sm:$0xff] }
 0xa9c   :  { %v1761_v52 = vsel %vm556_vm9, %v1760_v49, 0.0  ;;  %1791 = vmatpush.msrb.mxu1 %v374_v55  ;;  %vm1716_vm9 = vcmask 517120   ;;  %1865 = vmatpush.msra.mxu2 %v394_v47  ;;  %v436_v47 = vld [vmem:[%s3283_s30 + $0x38] sm:$0xff] }
 0xa9d   :  { %v1767_v23 = vrot.slane %v1761_v52, 4  ;;  %v1763_v41 = vrot.slane %v1761_v52, 2 }
 0xa9e   :  { %1792 = vmatpush.msrb.mxu1 %v373_v56  ;;  %v390_v56 = vld [vmem:[%s3277_s29 + $0x20] sm:$0xff] }
 0xa9f   :  { %1768 = vrot.lane.b32.xlu2 %v1767_v23, %s2468_s1  ;;  %1764 = vrot.lane.b32.xlu1 %v1763_v41, %s2467_s24  ;;  %v393_v23 = vld [vmem:[%s3277_s29 + $0x38] sm:$0xff]  ;;  %v385_v41 = vld [vmem:[%s3279_s8] sm:$0x1]  ;;  %s3282_s24 = sld [smem:[#allocation53_spill]] }
 0xaa0   :  { %1793 = vmatpush.msrb.mxu1 %v372_v57  ;;  %1866 = vmatpush.msra.mxu2 %v393_v23 }
 0xaa2   :  { %1794 = vmatpush.msrb.mxu1 %v371_v59  ;;  %1867 = vmatpush.msra.mxu2 %v392_v48  ;;  %v389_v59 = vld [vmem:[%s3277_s29 + $0x18] sm:$0xff] }
 0xaa4   :  { %1868 = vmatpush.msra.mxu2 %v391_v53  ;;  %1982 = vmatpush.msra.mxu1 %v436_v47  ;;  %v434_v53 = vld [vmem:[%s3283_s30 + $0x28] sm:$0xff] }
 0xaa5   :  { %v426_v23 = vld [vmem:[%s3282_s24 + $0x30] sm:$0xff] }
 0xaa6   :  { %1869 = vmatpush.msra.mxu2 %v390_v56  ;;  %v424_v56 = vld [vmem:[%s3282_s24 + $0x20] sm:$0xff] }
 0xaa8   :  { %1870 = vmatpush.msra.mxu2 %v389_v59 }
 0xaf9   :  { %v1769_v61 = vpop.permute.xlu2 %1768 }
 0xb11   :  { %v1765_v60 = vpop.permute.xlu1 %1764 }
 0xb12   :  { %v1771_v62 = vsel %vm1349_vm1, %v1761_v52, %v1765_v60 }
 0xb13   :  { %v1772_v63 = vsel %vm1618_vm0, %v1771_v62, %v1769_v61  ;;  %v388_v61 = vld [vmem:[%s3277_s29 + $0x10] sm:$0xff] }
 0xb14   :  { %2136 = vmatmul.msk.f32.vlgmr.msrb.gmra.mxu1 %vm1623_vm4, %v1772_v63  ;;  %v387_v63 = vld [vmem:[%s3277_s29 + $0x8] sm:$0xff]  ;;  %1871 = vmatpush.msra.mxu2 %v388_v61 }
 0xb16   :  { %1872 = vmatpush.msra.mxu2 %v387_v63  ;;  %v432_v63 = vld [vmem:[%s3283_s30 + $0x18] sm:$0xff] }
 0xb91   :  { %v1796_v1 = vpop.f32.mrf.mxu1 }
 0xb92   :  { %v3082_v2 = vadd.f32 %v2223_v0, %v1796_v1 }
 0xb94   :  { %v1799_v3 = vsel %vm1716_vm9, %v3082_v2, 0.0  ;;  %v1807_v46 = vmul.f32 %v3082_v2, %v3082_v2 }
 0xb95   :  { %v1800_v4 = vrot.slane %v1799_v3, 4 }
 0xb96   :  { %v1808_v5 = vsel %vm1716_vm9, %v1807_v46, 0.0  ;;  %v386_v46 = vld [vmem:[%s3277_s29] sm:$0xff] }
 0xb97   :  { %v1801_v6 = vadd.f32 %v1800_v4, %v1799_v3  ;;  %v1809_v7 = vrot.slane %v1808_v5, 4  ;;  %1873 = vmatpush.msra.mxu2 %v386_v46 }
 0xb99   :  { %v1802_v8 = vrot.slane %v1801_v6, 2  ;;  %v1810_v9 = vadd.f32 %v1809_v7, %v1808_v5  ;;  %v1713_v7 = vpop.f32.mrf.mxu2 }
 0xb9b   :  { %v1803_v10 = vadd.f32 %v1802_v8, %v1801_v6  ;;  %v1811_v11 = vrot.slane %v1810_v9, 2  ;;  %v2222_v6 = vld [vmem:[%s3280_s14] ss:$0 sm:$0xff] }
 0xb9c   :  { %v3122_v8 = vadd.f32 %v2222_v6, %v1713_v7  ;;  %v430_v6 = vld [vmem:[%s3283_s30 + $0x8] sm:$0xff] }
 0xb9d   :  { %v1804_v12 = vrot.slane %v1803_v10, 1  ;;  %v1812_v13 = vadd.f32 %v1811_v11, %v1810_v9 }
 0xb9e   :  { %v1717_v9 = vsel %vm1716_vm9, %v3122_v8, 0.0 }
 0xb9f   :  { %v1805_v15 = vadd.f32 %v1804_v12, %v1803_v10  ;;  %v1813_v16 = vrot.slane %v1812_v13, 1  ;;  %v1725_v10 = vmul.f32 %v3122_v8, %v3122_v8  ;;  %v1718_v11 = vrot.slane %v1717_v9, 4 }
 0xba1   :  { %v1806_v17 = vmul.f32 0.5, %v1805_v15  ;;  %v1814_v18 = vadd.f32 %v1813_v16, %v1812_v13  ;;  %v1726_v12 = vsel %vm1716_vm9, %v1725_v10, 0.0  ;;  %v1719_v13 = vadd.f32 %v1718_v11, %v1717_v9  ;;  %v420_v9 = vld [vmem:[%s3282_s24] sm:$0xff] }
 0xba2   :  { %v1727_v14 = vrot.slane %v1726_v12, 4  ;;  %v429_v10 = vld [vmem:[%s3283_s30] sm:$0xff] }
 0xba3   :  { %v1815_v20 = vmul.f32 0.5, %v1814_v18  ;;  %v1816_v21 = vmul.f32 %v1806_v17, %v1806_v17  ;;  %v1720_v15 = vrot.slane %v1719_v13, 2 }
 0xba4   :  { %v1728_v16 = vadd.f32 %v1727_v14, %v1726_v12  ;;  %v418_v14 = vld [vmem:[%s3284_s4] sm:$0x1] }
 0xba5   :  { %v1817_v25 = vsub.f32 %v1815_v20, %v1816_v21  ;;  %v1721_v58 = vadd.f32 %v1720_v15, %v1719_v13 }
 0xba7   :  { %v1818_v27 = vadd.f32 1e-05, %v1817_v25  ;;  %v1722_v18 = vrot.slane %v1721_v58, 1 }
 0xba9   :  { %2245 = vrsqrt.f32 %v1818_v27  ;;  %vm1825_vm2 = vweird.f32 %v1818_v27  ;;  %v1723_v20 = vadd.f32 %v1722_v18, %v1721_v58 }
 0xbab   :  { %v3129_v22 = vmul.f32 0.5, %v1723_v20 }
 0xbaf   :  { %v2246_v33 = vpop.eup %2245 }
 0xbb0   :  { %v1820_v35 = vmul.f32 %v2246_v33, %v1818_v27  ;;  %vm1826_vm1 = vweird.f32 %v2246_v33  ;;  %v1734_v27 = vmul.f32 %v3129_v22, %v3129_v22 }
 0xbb1   :  { %vm1827_vm3 = vmor %vm1825_vm2, %vm1826_vm1 }
 0xbb2   :  { %v1821_v24 = vmul.f32 %v2246_v33, %v1820_v35 }
 0xbb4   :  { %v1822_v38 = vmul.f32 0.5, %v1821_v24 }
 0xbb6   :  { %v1823_v40 = vsub.f32 1.5, %v1822_v38 }
 0xbb8   :  { %v1824_v45 = vmul.f32 %v2246_v33, %v1823_v40 }
 0xbba   :  { %v1828_v49 = vsel %vm1827_vm3, %v2246_v33, %v1824_v45  ;;  %v427_v45 = vld [vmem:[%s3282_s24 + $0x38] sm:$0xff] }
 0xbbb   :  { %v1829_v52 = vmul.f32 %v1828_v49, %v384_v44  ;;  %1957 = vmatpush.msra.mxu0 %v427_v45  ;;  %v2226_v45 = vld [vmem:[#allocation7] ss:$0 sm:$0xff] }
 0xbbd   :  { %v1830_v50 = vmul.f32 %v1829_v52, %v1806_v17  ;;  %v1833_v42 = vperm.slane %v1829_v52, 0  ;;  %v1729_v17 = vrot.slane %v1728_v16, 2  ;;  %1958 = vmatpush.msra.mxu0 %v426_v23 }
 0xbbf   :  { %v1831_v51 = vsub.f32 %v385_v41, %v1830_v50  ;;  %v1835_v54 = vmul.f32 %v1833_v42, %v3082_v2  ;;  %v1730_v19 = vadd.f32 %v1729_v17, %v1728_v16  ;;  %v435_v41 = vld [vmem:[%s3283_s30 + $0x30] sm:$0xff] }
 0xbc0   :  { %1983 = vmatpush.msra.mxu1 %v435_v41 }
 0xbc1   :  { %v1837_v55 = vperm.slane %v1831_v51, 0  ;;  %v1731_v21 = vrot.slane %v1730_v19, 1  ;;  %v425_v51 = vld [vmem:[%s3282_s24 + $0x28] sm:$0xff] }
 0xbc2   :  { %1959 = vmatpush.msra.mxu0 %v425_v51  ;;  %1984 = vmatpush.msra.mxu1 %v434_v53 }
 0xbc3   :  { %v1839_v57 = vadd.f32 %v1837_v55, %v1835_v54  ;;  %v1732_v25 = vadd.f32 %v1731_v21, %v1730_v19  ;;  %v419_v21 = vld [vmem:[#allocation2] sm:$0x1] }
 0xbc4   :  { %1960 = vmatpush.msra.mxu0 %v424_v56 }
 0xbc5   :  { %v1840_v60 = vmax.f32 %v1839_v57, 0.0  ;;  %v1733_v26 = vmul.f32 0.5, %v1732_v25  ;;  %v433_v57 = vld [vmem:[%s3283_s30 + $0x20] sm:$0xff] }
 0xbc6   :  { %1985 = vmatpush.msra.mxu1 %v433_v57  ;;  %v411_v25 = vld [vmem:[%s3285_s10] sm:$0x1] }
 0xbc7   :  { %v1842_v62 = vrot.slane %v1840_v60, 6  ;;  %v1735_v28 = vsub.f32 %v1733_v26, %v1734_v27 }
 0xbc8   :  { %1986 = vmatpush.msra.mxu1 %v432_v63 }
 0xbc9   :  { %v1844_v0 = vsel %vm539_vm8, 0.0, %v1842_v62  ;;  %v3134_v30 = vadd.f32 1e-05, %v1735_v28  ;;  %v423_v62 = vld [vmem:[%s3282_s24 + $0x18] sm:$0xff] }
 0xbca   :  { %v1845_v1 = vsel %vm578_vm10, %v1844_v0, 0.0  ;;  %1961 = vmatpush.msra.mxu0 %v423_v62 }
 0xbcb   :  { %v1851_v2 = vrot.slane %v1845_v1, 4  ;;  %v1847_v3 = vrot.slane %v1845_v1, 2  ;;  %2247 = vrsqrt.f32 %v3134_v30  ;;  %vm1743_vm10 = vweird.f32 %v3134_v30 }
 0xbcd   :  { %2137 = vmatmul.msk.f32.vlgmr.msra.gmra.mxu3 %vm1618_vm0, %v1851_v2  ;;  %1848 = vrot.lane.b32.xlu0 %v1847_v3, %s2468_s1  ;;  %v422_v2 = vld [vmem:[%s3282_s24 + $0x10] sm:$0xff]  ;;  %s2025_s1 = sshll.u32 %s2758_s27, 4  ;;  %s3183_s1 = int_to_ptr.hbm [resolvable:$true] %s2025_s1 }
 0xbce   :  { %v431_v3 = vld [vmem:[%s3283_s30 + $0x10] sm:$0xff]  ;;  %1962 = vmatpush.msra.mxu0 %v422_v2 }
 0xbcf   :  { %1987 = vmatpush.msra.mxu1 %v431_v3 }
 0xbd1   :  { %v2248_v40 = vpop.eup %2247  ;;  %1988 = vmatpush.msra.mxu1 %v430_v6 }
 0xbd2   :  { %v1738_v50 = vmul.f32 %v2248_v40, %v3134_v30  ;;  %vm1744_vm8 = vweird.f32 %v2248_v40  ;;  %v412_v30 = vld [vmem:[%s3286_s11] sm:$0x1] }
 0xbd3   :  { %1989 = vmatpush.msra.mxu1 %v429_v10  ;;  %vm1745_vm12 = vmor %vm1743_vm10, %vm1744_vm8 }
 0xbd4   :  { %v1739_v59 = vmul.f32 %v2248_v40, %v1738_v50 }
 0xbd6   :  { %v1740_v46 = vmul.f32 0.5, %v1739_v59 }
 0xbd8   :  { %v1741_v11 = vsub.f32 1.5, %v1740_v46 }
 0xbda   :  { %v1742_v12 = vmul.f32 %v2248_v40, %v1741_v11 }
 0xbdc   :  { %v1746_v15 = vsel %vm1745_vm12, %v2248_v40, %v1742_v12 }
 0xbdd   :  { %v1747_v17 = vmul.f32 %v1746_v15, %v418_v14 }
 0xbdf   :  { %v1748_v20 = vmul.f32 %v1747_v17, %v3129_v22 }
 0xbe1   :  { %v1749_v28 = vsub.f32 %v419_v21, %v1748_v20 }
 0xc3f   :  { %v1849_v4 = vpop.permute.xlu0 %1848 }
 0xc40   :  { %v1852_v5 = vsel %vm1618_vm0, %v1845_v1, %v1849_v4 }
 0xc41   :  { %1874 = vmatmul.f32.vlgmr.msra.gmra.mxu2 %v1852_v5  ;;  %v421_v5 = vld [vmem:[%s3282_s24 + $0x8] sm:$0xff] }
 0xc42   :  { %1963 = vmatpush.msra.mxu0 %v421_v5 }
 0xc44   :  { %1964 = vmatpush.msra.mxu0 %v420_v9 }
 0xc50   :  { %v1895_v33 = vpop.f32.mrf.mxu3 }
 0xcc4   :  { %v1875_v31 = vpop.f32.mrf.mxu2 }
 0xcc5   :  { %v1876_v32 = vadd.f32 %v2224_v29, %v1875_v31  ;;  %v1751_v31 = vperm.slane %v1747_v17, 0 }
 0xcc7   :  { %v3136_v34 = vadd.f32 %v1895_v33, %v1876_v32 }
 0xcc9   :  { %v1898_v35 = vsel %vm1716_vm9, %v3136_v34, 0.0  ;;  %v1906_v36 = vmul.f32 %v3136_v34, %v3136_v34 }
 0xcca   :  { %v1899_v24 = vrot.slane %v1898_v35, 4 }
 0xccb   :  { %v1907_v37 = vsel %vm1716_vm9, %v1906_v36, 0.0 }
 0xccc   :  { %v1900_v38 = vadd.f32 %v1899_v24, %v1898_v35  ;;  %v1908_v39 = vrot.slane %v1907_v37, 4  ;;  %v1755_v35 = vperm.slane %v1749_v28, 0  ;;  %v1753_v24 = vmul.f32 %v1751_v31, %v3122_v8 }
 0xcce   :  { %v1901_v43 = vrot.slane %v1900_v38, 2  ;;  %v1909_v44 = vadd.f32 %v1908_v39, %v1907_v37 }
 0xcd0   :  { %v1902_v49 = vadd.f32 %v1901_v43, %v1900_v38  ;;  %v1910_v52 = vrot.slane %v1909_v44, 2  ;;  %v1757_v38 = vadd.f32 %v1755_v35, %v1753_v24 }
 0xcd2   :  { %v1903_v42 = vrot.slane %v1902_v49, 1  ;;  %v1911_v48 = vadd.f32 %v1910_v52, %v1909_v44  ;;  %v2225_v44 = vld [vmem:[#allocation5] ss:$0 sm:$0xff] }
 0xcd4   :  { %v1904_v54 = vadd.f32 %v1903_v42, %v1902_v49  ;;  %v1912_v55 = vrot.slane %v1911_v48, 1 }
 0xcd6   :  { %v1905_v60 = vmul.f32 0.5, %v1904_v54  ;;  %v1913_v61 = vadd.f32 %v1912_v55, %v1911_v48 }
 0xcd8   :  { %v1914_v0 = vmul.f32 0.5, %v1913_v61  ;;  %v1915_v1 = vmul.f32 %v1905_v60, %v1905_v60 }
 0xcda   :  { %v1916_v4 = vsub.f32 %v1914_v0, %v1915_v1 }
 0xcdc   :  { %v1917_v7 = vadd.f32 1e-05, %v1916_v4 }
 0xcde   :  { %2249 = vrsqrt.f32 %v1917_v7  ;;  %vm1924_vm4 = vweird.f32 %v1917_v7 }
 0xce4   :  { %v2250_v13 = vpop.eup %2249 }
 0xce5   :  { %v1919_v16 = vmul.f32 %v2250_v13, %v1917_v7  ;;  %vm1925_vm15 = vweird.f32 %v2250_v13 }
 0xce6   :  { %vm1926_vm5 = vmor %vm1924_vm4, %vm1925_vm15 }
 0xce7   :  { %v1920_v58 = vmul.f32 %v2250_v13, %v1919_v16 }
 0xce9   :  { %v1921_v18 = vmul.f32 0.5, %v1920_v58 }
 0xceb   :  { %v1922_v19 = vsub.f32 1.5, %v1921_v18 }
 0xced   :  { %v1923_v26 = vmul.f32 %v2250_v13, %v1922_v19 }
 0xcef   :  { %v1927_v27 = vsel %vm1926_vm5, %v2250_v13, %v1923_v26 }
 0xcf0   :  { %v1928_v29 = vmul.f32 %v1927_v27, %v411_v25 }
 0xcf2   :  { %v1929_v32 = vmul.f32 %v1928_v29, %v1905_v60  ;;  %v1932_v33 = vperm.slane %v1928_v29, 0 }
 0xcf4   :  { %v1930_v36 = vsub.f32 %v412_v30, %v1929_v32  ;;  %v1934_v37 = vmul.f32 %v1932_v33, %v3136_v34 }
 0xcf6   :  { %v1936_v22 = vperm.slane %v1930_v36, 0 }
 0xcf8   :  { %v1938_v39 = vadd.f32 %v1936_v22, %v1934_v37 }
 0xcfa   :  { %v1939_v40 = vadd.f32 %v1938_v39, %v1757_v38 }
 0xcfc   :  { %v1940_v43 = vmax.f32 %v1939_v40, 0.0 }
 0xcfe   :  { %1942 = vst.msk [vmem:[#allocation11] sm:$0x3] %vm1716_vm9, %v1940_v43  ;;  %2138 = vmatmul.msk.f32.vlgmr.msra.gmra.mxu0 %vm1618_vm0, %v1940_v43  ;;  %2139 = vmatmul.msk.f32.vlgmr.msra.gmra.mxu1 %vm1618_vm0, %v1940_v43  ;;  %vm1994_vm0 = vcmask 50176  }
 0xd7b   :  { %v1966_v8 = vpop.f32.mrf.mxu0  ;;  %v1991_v34 = vpop.f32.mrf.mxu1 }
 0xd7c   :  { %v1967_v47 = vadd.f32 %v2225_v44, %v1966_v8  ;;  %v1992_v49 = vadd.f32 %v2226_v45, %v1991_v34 }
 0xd7e   :  { %1970 = vst.msk [vmem:[#allocation9] sm:$0x3] %vm1969_vm6, %v1967_v47 }
 0xd7f   :  { %2346 = shalt.err (!%p2343_p5)
}
 0xd80   :  { %2017 = dma.vmem_to_hbm [thread:$0]  %s2013_s0, 32, %s2015_s15, [#allocation10]   ;;  %1995 = vst.msk [vmem:[#allocation8] sm:$0x3] %vm1994_vm0, %v1992_v49 }
 0xd81   :  { %s2359_s5 = sshra.s32 %s2004_s22, 4  ;;  %s2363_s13 = scalar_lea.hbm %s2748_s6, 2  ;;  %s2360_s5 = int_to_ptr.hbm [resolvable:$true] %s2359_s5 }
 0xd82   :  { %s2361_s9 = scalar_lea.hbm %s2360_s5, 2  ;;  %p2364_p7 = scmp.lt.s32.totalorder %s2360_s5, %s2748_s6 }
 0xd83   :  { %p2362_p6 = scmp.ne.s32.totalorder %s2360_s5, %s2361_s9  ;;  %p2365_p8 = scmp.lt.s32.totalorder %s2363_s13, %s2361_s9 }
 0xd85   :  { %p2366_p9 = por %p2365_p8, %p2364_p7 }
 0xd87   :  { %p2367_p10 = pnand %p2366_p9, %p2362_p6 }
 0xd89   :  { %2370 = shalt.err (!%p2367_p10)
}
 0xd8a   :  { %2006 = dma.vmem_to_hbm [thread:$0]  %s2002_s23, 32, %s2004_s22, [#allocation4]  }
 0xd8b   :  { %s2383_s12 = sshra.s32 %s3183_s1, 4  ;;  %s2387_s21 = scalar_lea.hbm %s2758_s27, 2  ;;  %s2384_s12 = int_to_ptr.hbm [resolvable:$true] %s2383_s12 }
 0xd8c   :  { %s2385_s17 = scalar_lea.hbm %s2384_s12, 2  ;;  %p2388_p12 = scmp.lt.s32.totalorder %s2384_s12, %s2758_s27 }
 0xd8d   :  { %p2386_p11 = scmp.ne.s32.totalorder %s2384_s12, %s2385_s17  ;;  %p2389_p13 = scmp.lt.s32.totalorder %s2387_s21, %s2385_s17 }
 0xd8f   :  { %p2390_p0 = por %p2389_p13, %p2388_p12 }
 0xd91   :  { %p2391_p1 = pnand %p2390_p0, %p2386_p11 }
 0xd93   :  { %2394 = shalt.err (!%p2391_p1)
}
 0xd94   :  { %2028 = dma.vmem_to_hbm [thread:$0]  %s2024_s20, 32, %s3183_s1, [#allocation10]  }
 0xd95   :  { %2399 = dma.done.wait [#allocation4], 32  }
 0xd96   :  { %2400 = vsyncadd [#allocation4], 4294967264 }
 0xd97   :  { %2401 = dma.done.wait [#allocation10], 64  }
 0xd98   :  { %2402 = vsyncadd [#allocation10], 4294967232 }
 0xd99   :  { %2041 = vsyncpa [#allocation3], 1 }
 0xd9a   :  { %2042 = vsyncpa [#allocation6], 1 }
 0xd9b   :  { %2043 = vsyncpa [#allocation4], 1 }
 0xd9c   :  { %2044 = vsyncpa [#allocation10], 1 }

</bundles_post_ra>
